<compile_context>
chip_gen: v7x
topology: tpu7x:2x2x1
jax: 0.10.0
libtpu: 0.0.40
codegen_flags: <defaults>
</compile_context>

<pallas_src>
import functools

import jax
import jax.numpy as jnp
from jax import lax
from jax.experimental import pallas as pl
from jax.experimental.pallas import tpu as pltpu

EPS = 1e-12          # TF-style LayerNorm epsilon (inside the sqrt), as in the module
D4 = 1024 * 4        # PositionwiseFeedForward inner width (d_hidden * 4)


# ----------------------------------------------------------------------------- kernel ---

def _layernorm(x, g, b):
    """TF-style LayerNorm, one-pass mean/variance, f32 math, rsqrt on the EUP."""
    m = jnp.mean(x, axis=-1, keepdims=True)
    m2 = jnp.mean(x * x, axis=-1, keepdims=True)
    var = jnp.maximum(m2 - m * m, 0.0)          # guard f32 cancellation going negative
    return g * ((x - m) * lax.rsqrt(var + EPS)) + b


def range_model_kernel(*refs):
    # Inputs: x, {w1c, w1s, pff_vecs, w2c, w2s, b2}, 5*4 OutputLayer params, (wl, bl); out.
    (x_ref, w1c_ref, w1s_ref, pffv_ref, w2c_ref, w2s_ref, b2_ref) = refs[:7]
    blk_refs = refs[7:27]
    wl_ref, bl_ref = refs[27:29]
    o_ref = refs[29]

    x = x_ref[...]                                               # (TB, emb) f32
    cls_dim = w1c_ref.shape[0]
    vec = pffv_ref[...]                                          # (6, D4) f32

    def branch(xpart, w1_ref, b1, g1, be1, w2_ref):
        # Stage 1: (TB, k) @ (k, 4096), bf16 MXU inputs, f32 accumulation + f32 bias.
        h = jnp.dot(xpart.astype(jnp.bfloat16), w1_ref[...],
                    preferred_element_type=jnp.float32) + b1     # (TB, 4096)
        h = jnp.maximum(h, 0.0)
        h = _layernorm(h, g1, be1)                               # Dropout = identity
        # Stage 2: (TB, 4096) @ (4096, hid) -> (TB, hid) f32.
        return jnp.dot(h.astype(jnp.bfloat16), w2_ref[...],
                       preferred_element_type=jnp.float32)

    e1 = branch(x[:, :cls_dim], w1c_ref, vec[0:1], vec[1:2], vec[2:3], w2c_ref)
    e2 = branch(x[:, cls_dim:], w1s_ref, vec[3:4], vec[4:5], vec[5:6], w2s_ref)
    # Lane-concat of two (TB, hid) halves inside one 128-lane group + fused bias add.
    h = jnp.concatenate([e1, e2], axis=-1) + b2_ref[...]         # (TB, 2*hid)

    # --- OutputLayer: 5 x (Linear -> ReLU -> LayerNorm -> Dropout=id) ----------------
    for blk in range(5):
        w_ref, b_ref, g_ref, be_ref = blk_refs[4 * blk: 4 * blk + 4]
        h = jnp.dot(h.astype(jnp.bfloat16), w_ref[...],
                    preferred_element_type=jnp.float32) + b_ref[...]
        h = jnp.maximum(h, 0.0)
        h = _layernorm(h, g_ref[...], be_ref[...])

    # --- final Linear(128 -> 1): VPU multiply + lane reduction (skip N=1 MXU op) -----
    o_ref[...] = jnp.sum(h * wl_ref[...], axis=-1, keepdims=True) + bl_ref[...]


# ---------------------------------------------------------------------------- wrapper ---

@functools.partial(jax.jit, static_argnums=(2, 3))
def _range_model_call(x, params, tb, vmem_limit_bytes):
    B, E = x.shape
    grid = (B // tb,)

    in_specs = [pl.BlockSpec((tb, E), lambda i: (i, 0))]
    for p in params:
        # Whole-array weight blocks with a constant index map -> never re-fetched
        # across batch tiles (all params are 2-D).
        in_specs.append(pl.BlockSpec(p.shape, lambda i: (0, 0)))
    out_specs = pl.BlockSpec((tb, 1), lambda i: (i, 0))

    # Advisory cost: bf16 params are exactly the (non-padded) MXU weight matrices.
    matmul_flops = 2 * B * sum(int(p.shape[0]) * int(p.shape[1])
                               for p in params if p.dtype == jnp.bfloat16)
    bytes_accessed = int(x.nbytes + sum(int(p.nbytes) for p in params) + B * 4)

    return pl.pallas_call(
        range_model_kernel,
        out_shape=jax.ShapeDtypeStruct((B, 1), jnp.float32),
        grid=grid,
        in_specs=in_specs,
        out_specs=out_specs,
        compiler_params=pltpu.CompilerParams(
            dimension_semantics=("parallel",),
            vmem_limit_bytes=vmem_limit_bytes),
        cost_estimate=pl.CostEstimate(
            flops=matmul_flops,
            transcendentals=7 * B,          # 7 LayerNorm rsqrts per row
            bytes_accessed=bytes_accessed),
    )(x, *params)


def range_model(x, fused_params, *, block_rows=None, vmem_limit_bytes=None):
    """RangeModel forward.  `fused_params` must come from `fuse_params`.

    block_rows defaults to min(batch, 256) so large batches tile the (rows, 4096) PFF
    intermediates, keep VMEM bounded and shard the batch grid across v7x's TensorCores.
    On v5e prefer block_rows<=128 (smallest default scoped VMEM); on v6e you may pass a
    larger block_rows together with vmem_limit_bytes (e.g. 64<<20).
    """
    B = x.shape[0]
    tb = min(B, 256) if block_rows is None else min(block_rows, B)
    if B % tb != 0:
        raise ValueError(f"batch {B} must be divisible by block_rows {tb}")
    if tb != B and tb % 8 != 0:
        raise ValueError(f"block_rows {tb} must be a multiple of 8 (f32 sublane)")
    return _range_model_call(x, tuple(fused_params), tb, vmem_limit_bytes)


# ------------------------------------------------------------------- parameter handling --

def init_raw_params(key, cls_dim, score_dim, hid_dim):
    """Deterministic synthetic parameters in the ORIGINAL module layout (all f32).

    Order: cls_map PFF (6), score_map PFF (6), OutputLayer 5x(w,b,g,be) + (w_out,b_out).
    LayerNorm params are randomized slightly (instead of ones/zeros) so the self-check
    exercises the gamma/beta path.
    """
    H = 2 * hid_dim
    H2 = 2 * H

    def lin(key, din, dout):
        key, kw, kb = jax.random.split(key, 3)
        w = jax.random.normal(kw, (din, dout), jnp.float32) * 0.02
        b = jax.random.normal(kb, (1, dout), jnp.float32) * 0.02
        return key, w, b

    def ln(key, d):
        key, kg, kb = jax.random.split(key, 3)
        g = 1.0 + 0.1 * jax.random.normal(kg, (1, d), jnp.float32)
        be = 0.1 * jax.random.normal(kb, (1, d), jnp.float32)
        return key, g, be

    params = []
    for model_dim in (cls_dim, score_dim):          # cls_map, score_map
        key, w1, b1 = lin(key, model_dim, D4)
        key, g, be = ln(key, D4)
        key, w2, b2 = lin(key, D4, hid_dim)
        params += [w1, b1, g, be, w2, b2]
    for din, dout in [(H, H2)] + [(H2, H2)] * 4:    # threshold_score_func (OutputLayer)
        key, w, b = lin(key, din, dout)
        key, g, be = ln(key, dout)
        params += [w, b, g, be]
    key, w, b = lin(key, H2, 1)
    params += [w, b]
    return params


def fuse_params(raw):
    """Build the kernel parameter list: bf16 matmul weights, packed PFF vectors."""
    (w1c, b1c, g1c, be1c, w2c, b2c,
     w1s, b1s, g1s, be1s, w2s, b2s) = raw[:12]
    out_raw = raw[12:]

    # Pack the six (1, 4096) PFF bias/gamma/beta rows into one (6, 4096) f32 array so the
    # 8-sublane padding is paid once instead of six times.
    pff_vecs = jnp.concatenate([b1c, g1c, be1c, b1s, g1s, be1s], axis=0)
    b2 = jnp.concatenate([b2c, b2s], axis=-1)       # bias of the concatenated embedding

    fused = [w1c.astype(jnp.bfloat16), w1s.astype(jnp.bfloat16), pff_vecs,
             w2c.astype(jnp.bfloat16), w2s.astype(jnp.bfloat16), b2]

    i = 0
    for _ in range(5):
        w, b, g, be = out_raw[i:i + 4]
        i += 4
        fused += [w.astype(jnp.bfloat16), b, g, be]
    w_last, b_last = out_raw[i:i + 2]
    fused += [w_last.reshape(1, -1), b_last]        # (1, 128) f32 row, (1, 1) f32
    return fused


# --------------------------------------------------------------------------- reference ---

def _ref_linear(h, w, b):
    # Mirror the kernel's MXU numerics: bf16 inputs, f32 accumulation, f32 bias.
    return jnp.dot(h.astype(jnp.bfloat16), w.astype(jnp.bfloat16),
                   preferred_element_type=jnp.float32) + b


def _ref_layernorm(x, g, b):
    u = jnp.mean(x, axis=-1, keepdims=True)
    s = jnp.mean((x - u) ** 2, axis=-1, keepdims=True)
    return g * ((x - u) / jnp.sqrt(s + EPS)) + b


def reference_forward(x, raw, cls_dim):
    """Pure-JAX reference with the ORIGINAL (unfused) RangeModel structure."""
    p = raw

    def pff(h, w1, b1, g, be, w2, b2):
        h = jnp.maximum(_ref_linear(h, w1, b1), 0.0)
        h = _ref_layernorm(h, g, be)
        return _ref_linear(h, w2, b2)               # Dropout = identity (eval)

    cls_emb = pff(x[:, :cls_dim], *p[0:6])
    score_emb = pff(x[:, cls_dim:], *p[6:12])
    h = jnp.concatenate([cls_emb, score_emb], axis=-1)

    i = 12
    for _ in range(5):
        w, b, g, be = p[i:i + 4]
        i += 4
        h = jnp.maximum(_ref_linear(h, w, b), 0.0)
        h = _ref_layernorm(h, g, be)
    w, b = p[i:i + 2]
    return jnp.dot(h, w) + b                         # final 128 -> 1, f32


# -------------------------------------------------------------------------------- main ---

if __name__ == "__main__":
    # Small shapes consistent with RangeModel's forward:
    #   emb_dim = 48, cls_emb_dim = 16 -> score_dim = 32, hid_dim = 32, batch = 8
    B, EMB_DIM, CLS_DIM, HID_DIM = 8, 48, 16, 32

    key = jax.random.PRNGKey(0)
    kx, kp = jax.random.split(key)
    x = jax.random.normal(kx, (B, EMB_DIM), jnp.float32)

    raw_params = init_raw_params(kp, CLS_DIM, EMB_DIM - CLS_DIM, HID_DIM)
    fused_params = fuse_params(raw_params)

    out = range_model(x, fused_params)
    out = jax.block_until_ready(out)

    # Check against an independent (original-structure, two-pass LN) pure-JAX reference.
    ref = reference_forward(x, raw_params, CLS_DIM)
    assert out.shape == (B, 1), out.shape
    assert jnp.allclose(out, ref, atol=1e-2, rtol=1e-2), (out, ref)

    print("KERNEL_OK")
</pallas_src>

<mosaic_0001>
module attributes {stable_mosaic.version = 11 : i64} {
  func.func @range_model_kernel(%arg0: i32, %arg1: memref<8x48xf32, #tpu.memory_space<vmem>>, %arg2: memref<16x4096xbf16, #tpu.memory_space<vmem>>, %arg3: memref<32x4096xbf16, #tpu.memory_space<vmem>>, %arg4: memref<6x4096xf32, #tpu.memory_space<vmem>>, %arg5: memref<4096x32xbf16, #tpu.memory_space<vmem>>, %arg6: memref<4096x32xbf16, #tpu.memory_space<vmem>>, %arg7: memref<1x64xf32, #tpu.memory_space<vmem>>, %arg8: memref<64x128xbf16, #tpu.memory_space<vmem>>, %arg9: memref<1x128xf32, #tpu.memory_space<vmem>>, %arg10: memref<1x128xf32, #tpu.memory_space<vmem>>, %arg11: memref<1x128xf32, #tpu.memory_space<vmem>>, %arg12: memref<128x128xbf16, #tpu.memory_space<vmem>>, %arg13: memref<1x128xf32, #tpu.memory_space<vmem>>, %arg14: memref<1x128xf32, #tpu.memory_space<vmem>>, %arg15: memref<1x128xf32, #tpu.memory_space<vmem>>, %arg16: memref<128x128xbf16, #tpu.memory_space<vmem>>, %arg17: memref<1x128xf32, #tpu.memory_space<vmem>>, %arg18: memref<1x128xf32, #tpu.memory_space<vmem>>, %arg19: memref<1x128xf32, #tpu.memory_space<vmem>>, %arg20: memref<128x128xbf16, #tpu.memory_space<vmem>>, %arg21: memref<1x128xf32, #tpu.memory_space<vmem>>, %arg22: memref<1x128xf32, #tpu.memory_space<vmem>>, %arg23: memref<1x128xf32, #tpu.memory_space<vmem>>, %arg24: memref<128x128xbf16, #tpu.memory_space<vmem>>, %arg25: memref<1x128xf32, #tpu.memory_space<vmem>>, %arg26: memref<1x128xf32, #tpu.memory_space<vmem>>, %arg27: memref<1x128xf32, #tpu.memory_space<vmem>>, %arg28: memref<1x128xf32, #tpu.memory_space<vmem>>, %arg29: memref<1x1xf32, #tpu.memory_space<vmem>>, %arg30: memref<8x1xf32, #tpu.memory_space<vmem>>) attributes {dimension_semantics = [#tpu.dimension_semantics<parallel>], iteration_bounds = array<i64: 1>, scalar_prefetch = 0 : i64, scratch_operands = 0 : i64, tpu.core_type = #tpu.core_type<tc>, window_params = [{transform_indices = @transform_0, window_bounds = array<i64: 8, 48>}, {pipeline_mode = #tpu.pipeline_mode<synchronous>, transform_indices = @transform_1, window_bounds = array<i64: 16, 4096>}, {pipeline_mode = #tpu.pipeline_mode<synchronous>, transform_indices = @transform_2, window_bounds = array<i64: 32, 4096>}, {pipeline_mode = #tpu.pipeline_mode<synchronous>, transform_indices = @transform_3, window_bounds = array<i64: 6, 4096>}, {pipeline_mode = #tpu.pipeline_mode<synchronous>, transform_indices = @transform_4, window_bounds = array<i64: 4096, 32>}, {pipeline_mode = #tpu.pipeline_mode<synchronous>, transform_indices = @transform_5, window_bounds = array<i64: 4096, 32>}, {pipeline_mode = #tpu.pipeline_mode<synchronous>, transform_indices = @transform_6, window_bounds = array<i64: 1, 64>}, {pipeline_mode = #tpu.pipeline_mode<synchronous>, transform_indices = @transform_7, window_bounds = array<i64: 64, 128>}, {pipeline_mode = #tpu.pipeline_mode<synchronous>, transform_indices = @transform_8, window_bounds = array<i64: 1, 128>}, {pipeline_mode = #tpu.pipeline_mode<synchronous>, transform_indices = @transform_9, window_bounds = array<i64: 1, 128>}, {pipeline_mode = #tpu.pipeline_mode<synchronous>, transform_indices = @transform_10, window_bounds = array<i64: 1, 128>}, {pipeline_mode = #tpu.pipeline_mode<synchronous>, transform_indices = @transform_11, window_bounds = array<i64: 128, 128>}, {pipeline_mode = #tpu.pipeline_mode<synchronous>, transform_indices = @transform_12, window_bounds = array<i64: 1, 128>}, {pipeline_mode = #tpu.pipeline_mode<synchronous>, transform_indices = @transform_13, window_bounds = array<i64: 1, 128>}, {pipeline_mode = #tpu.pipeline_mode<synchronous>, transform_indices = @transform_14, window_bounds = array<i64: 1, 128>}, {pipeline_mode = #tpu.pipeline_mode<synchronous>, transform_indices = @transform_15, window_bounds = array<i64: 128, 128>}, {pipeline_mode = #tpu.pipeline_mode<synchronous>, transform_indices = @transform_16, window_bounds = array<i64: 1, 128>}, {pipeline_mode = #tpu.pipeline_mode<synchronous>, transform_indices = @transform_17, window_bounds = array<i64: 1, 128>}, {pipeline_mode = #tpu.pipeline_mode<synchronous>, transform_indices = @transform_18, window_bounds = array<i64: 1, 128>}, {pipeline_mode = #tpu.pipeline_mode<synchronous>, transform_indices = @transform_19, window_bounds = array<i64: 128, 128>}, {pipeline_mode = #tpu.pipeline_mode<synchronous>, transform_indices = @transform_20, window_bounds = array<i64: 1, 128>}, {pipeline_mode = #tpu.pipeline_mode<synchronous>, transform_indices = @transform_21, window_bounds = array<i64: 1, 128>}, {pipeline_mode = #tpu.pipeline_mode<synchronous>, transform_indices = @transform_22, window_bounds = array<i64: 1, 128>}, {pipeline_mode = #tpu.pipeline_mode<synchronous>, transform_indices = @transform_23, window_bounds = array<i64: 128, 128>}, {pipeline_mode = #tpu.pipeline_mode<synchronous>, transform_indices = @transform_24, window_bounds = array<i64: 1, 128>}, {pipeline_mode = #tpu.pipeline_mode<synchronous>, transform_indices = @transform_25, window_bounds = array<i64: 1, 128>}, {pipeline_mode = #tpu.pipeline_mode<synchronous>, transform_indices = @transform_26, window_bounds = array<i64: 1, 128>}, {pipeline_mode = #tpu.pipeline_mode<synchronous>, transform_indices = @transform_27, window_bounds = array<i64: 1, 128>}, {pipeline_mode = #tpu.pipeline_mode<synchronous>, transform_indices = @transform_28, window_bounds = array<i64: 1, 1>}, {transform_indices = @transform_29, window_bounds = array<i64: 8, 1>}]} {
    %c0 = arith.constant 0 : index
    %c0_0 = arith.constant 0 : index
    %0 = vector.load %arg1[%c0, %c0_0] : memref<8x48xf32, #tpu.memory_space<vmem>>, vector<8x48xf32>
    %c0_1 = arith.constant 0 : index
    %c0_2 = arith.constant 0 : index
    %1 = vector.load %arg4[%c0_1, %c0_2] : memref<6x4096xf32, #tpu.memory_space<vmem>>, vector<6x4096xf32>
    %2 = vector.extract_strided_slice %0 {offsets = [0, 0], sizes = [8, 16], strides = [1, 1]} : vector<8x48xf32> to vector<8x16xf32>
    %3 = vector.extract_strided_slice %1 {offsets = [0, 0], sizes = [1, 4096], strides = [1, 1]} : vector<6x4096xf32> to vector<1x4096xf32>
    %4 = vector.extract_strided_slice %1 {offsets = [1, 0], sizes = [1, 4096], strides = [1, 1]} : vector<6x4096xf32> to vector<1x4096xf32>
    %5 = vector.extract_strided_slice %1 {offsets = [2, 0], sizes = [1, 4096], strides = [1, 1]} : vector<6x4096xf32> to vector<1x4096xf32>
    %6 = arith.truncf %2 : vector<8x16xf32> to vector<8x16xbf16>
    %c0_3 = arith.constant 0 : index
    %c0_4 = arith.constant 0 : index
    %7 = vector.load %arg2[%c0_3, %c0_4] : memref<16x4096xbf16, #tpu.memory_space<vmem>>, vector<16x4096xbf16>
    %cst = arith.constant dense<0.000000e+00> : vector<8x4096xf32>
    %8 = tpu.matmul %6, %7, %cst {dimension_numbers = #tpu.dot_dimension_numbers<[1], [0], [0], [1], [0, 0, 1, 1], [], []>} : vector<8x16xbf16>, vector<16x4096xbf16>, vector<8x4096xf32> -> vector<8x4096xf32>
    %9 = vector.broadcast %3 : vector<1x4096xf32> to vector<8x4096xf32>
    %10 = arith.addf %8, %9 : vector<8x4096xf32>
    %cst_5 = arith.constant 0.000000e+00 : f32
    %11 = vector.broadcast %cst_5 : f32 to vector<8x4096xf32>
    %12 = arith.maximumf %10, %11 : vector<8x4096xf32>
    %cst_6 = arith.constant dense<0.000000e+00> : vector<8xf32>
    %13 = vector.multi_reduction <add>, %12, %cst_6 [1] : vector<8x4096xf32> to vector<8xf32>
    %14 = vector.shape_cast %13 : vector<8xf32> to vector<8x1xf32>
    %cst_7 = arith.constant 4.096000e+03 : f32
    %15 = vector.broadcast %cst_7 : f32 to vector<8x1xf32>
    %16 = arith.divf %14, %15 : vector<8x1xf32>
    %17 = arith.mulf %12, %12 : vector<8x4096xf32>
    %cst_8 = arith.constant dense<0.000000e+00> : vector<8xf32>
    %18 = vector.multi_reduction <add>, %17, %cst_8 [1] : vector<8x4096xf32> to vector<8xf32>
    %19 = vector.shape_cast %18 : vector<8xf32> to vector<8x1xf32>
    %cst_9 = arith.constant 4.096000e+03 : f32
    %20 = vector.broadcast %cst_9 : f32 to vector<8x1xf32>
    %21 = arith.divf %19, %20 : vector<8x1xf32>
    %22 = arith.mulf %16, %16 : vector<8x1xf32>
    %23 = arith.subf %21, %22 : vector<8x1xf32>
    %cst_10 = arith.constant 0.000000e+00 : f32
    %24 = vector.broadcast %cst_10 : f32 to vector<8x1xf32>
    %25 = arith.maximumf %23, %24 : vector<8x1xf32>
    %26 = vector.broadcast %16 : vector<8x1xf32> to vector<8x4096xf32>
    %27 = arith.subf %12, %26 : vector<8x4096xf32>
    %cst_11 = arith.constant 9.99999996E-13 : f32
    %28 = vector.broadcast %cst_11 : f32 to vector<8x1xf32>
    %29 = arith.addf %25, %28 : vector<8x1xf32>
    %30 = math.rsqrt %29 : vector<8x1xf32>
    %31 = vector.broadcast %30 : vector<8x1xf32> to vector<8x4096xf32>
    %32 = arith.mulf %27, %31 : vector<8x4096xf32>
    %33 = vector.broadcast %4 : vector<1x4096xf32> to vector<8x4096xf32>
    %34 = arith.mulf %33, %32 : vector<8x4096xf32>
    %35 = vector.broadcast %5 : vector<1x4096xf32> to vector<8x4096xf32>
    %36 = arith.addf %34, %35 : vector<8x4096xf32>
    %37 = arith.truncf %36 : vector<8x4096xf32> to vector<8x4096xbf16>
    %c0_12 = arith.constant 0 : index
    %c0_13 = arith.constant 0 : index
    %38 = vector.load %arg5[%c0_12, %c0_13] : memref<4096x32xbf16, #tpu.memory_space<vmem>>, vector<4096x32xbf16>
    %cst_14 = arith.constant dense<0.000000e+00> : vector<8x32xf32>
    %39 = tpu.matmul %37, %38, %cst_14 {dimension_numbers = #tpu.dot_dimension_numbers<[1], [0], [0], [1], [0, 0, 1, 1], [], []>} : vector<8x4096xbf16>, vector<4096x32xbf16>, vector<8x32xf32> -> vector<8x32xf32>
    %40 = vector.extract_strided_slice %0 {offsets = [0, 16], sizes = [8, 32], strides = [1, 1]} : vector<8x48xf32> to vector<8x32xf32>
    %41 = vector.extract_strided_slice %1 {offsets = [3, 0], sizes = [1, 4096], strides = [1, 1]} : vector<6x4096xf32> to vector<1x4096xf32>
    %42 = vector.extract_strided_slice %1 {offsets = [4, 0], sizes = [1, 4096], strides = [1, 1]} : vector<6x4096xf32> to vector<1x4096xf32>
    %43 = vector.extract_strided_slice %1 {offsets = [5, 0], sizes = [1, 4096], strides = [1, 1]} : vector<6x4096xf32> to vector<1x4096xf32>
    %44 = arith.truncf %40 : vector<8x32xf32> to vector<8x32xbf16>
    %c0_15 = arith.constant 0 : index
    %c0_16 = arith.constant 0 : index
    %45 = vector.load %arg3[%c0_15, %c0_16] : memref<32x4096xbf16, #tpu.memory_space<vmem>>, vector<32x4096xbf16>
    %cst_17 = arith.constant dense<0.000000e+00> : vector<8x4096xf32>
    %46 = tpu.matmul %44, %45, %cst_17 {dimension_numbers = #tpu.dot_dimension_numbers<[1], [0], [0], [1], [0, 0, 1, 1], [], []>} : vector<8x32xbf16>, vector<32x4096xbf16>, vector<8x4096xf32> -> vector<8x4096xf32>
    %47 = vector.broadcast %41 : vector<1x4096xf32> to vector<8x4096xf32>
    %48 = arith.addf %46, %47 : vector<8x4096xf32>
    %cst_18 = arith.constant 0.000000e+00 : f32
    %49 = vector.broadcast %cst_18 : f32 to vector<8x4096xf32>
    %50 = arith.maximumf %48, %49 : vector<8x4096xf32>
    %cst_19 = arith.constant dense<0.000000e+00> : vector<8xf32>
    %51 = vector.multi_reduction <add>, %50, %cst_19 [1] : vector<8x4096xf32> to vector<8xf32>
    %52 = vector.shape_cast %51 : vector<8xf32> to vector<8x1xf32>
    %cst_20 = arith.constant 4.096000e+03 : f32
    %53 = vector.broadcast %cst_20 : f32 to vector<8x1xf32>
    %54 = arith.divf %52, %53 : vector<8x1xf32>
    %55 = arith.mulf %50, %50 : vector<8x4096xf32>
    %cst_21 = arith.constant dense<0.000000e+00> : vector<8xf32>
    %56 = vector.multi_reduction <add>, %55, %cst_21 [1] : vector<8x4096xf32> to vector<8xf32>
    %57 = vector.shape_cast %56 : vector<8xf32> to vector<8x1xf32>
    %cst_22 = arith.constant 4.096000e+03 : f32
    %58 = vector.broadcast %cst_22 : f32 to vector<8x1xf32>
    %59 = arith.divf %57, %58 : vector<8x1xf32>
    %60 = arith.mulf %54, %54 : vector<8x1xf32>
    %61 = arith.subf %59, %60 : vector<8x1xf32>
    %cst_23 = arith.constant 0.000000e+00 : f32
    %62 = vector.broadcast %cst_23 : f32 to vector<8x1xf32>
    %63 = arith.maximumf %61, %62 : vector<8x1xf32>
    %64 = vector.broadcast %54 : vector<8x1xf32> to vector<8x4096xf32>
    %65 = arith.subf %50, %64 : vector<8x4096xf32>
    %cst_24 = arith.constant 9.99999996E-13 : f32
    %66 = vector.broadcast %cst_24 : f32 to vector<8x1xf32>
    %67 = arith.addf %63, %66 : vector<8x1xf32>
    %68 = math.rsqrt %67 : vector<8x1xf32>
    %69 = vector.broadcast %68 : vector<8x1xf32> to vector<8x4096xf32>
    %70 = arith.mulf %65, %69 : vector<8x4096xf32>
    %71 = vector.broadcast %42 : vector<1x4096xf32> to vector<8x4096xf32>
    %72 = arith.mulf %71, %70 : vector<8x4096xf32>
    %73 = vector.broadcast %43 : vector<1x4096xf32> to vector<8x4096xf32>
    %74 = arith.addf %72, %73 : vector<8x4096xf32>
    %75 = arith.truncf %74 : vector<8x4096xf32> to vector<8x4096xbf16>
    %c0_25 = arith.constant 0 : index
    %c0_26 = arith.constant 0 : index
    %76 = vector.load %arg6[%c0_25, %c0_26] : memref<4096x32xbf16, #tpu.memory_space<vmem>>, vector<4096x32xbf16>
    %cst_27 = arith.constant dense<0.000000e+00> : vector<8x32xf32>
    %77 = tpu.matmul %75, %76, %cst_27 {dimension_numbers = #tpu.dot_dimension_numbers<[1], [0], [0], [1], [0, 0, 1, 1], [], []>} : vector<8x4096xbf16>, vector<4096x32xbf16>, vector<8x32xf32> -> vector<8x32xf32>
    %78 = tpu.concatenate %39, %77 in 1 : vector<8x32xf32>, vector<8x32xf32> -> vector<8x64xf32>
    %c0_28 = arith.constant 0 : index
    %c0_29 = arith.constant 0 : index
    %79 = vector.load %arg7[%c0_28, %c0_29] : memref<1x64xf32, #tpu.memory_space<vmem>>, vector<1x64xf32>
    %80 = vector.broadcast %79 : vector<1x64xf32> to vector<8x64xf32>
    %81 = arith.addf %78, %80 : vector<8x64xf32>
    %82 = arith.truncf %81 : vector<8x64xf32> to vector<8x64xbf16>
    %c0_30 = arith.constant 0 : index
    %c0_31 = arith.constant 0 : index
    %83 = vector.load %arg8[%c0_30, %c0_31] : memref<64x128xbf16, #tpu.memory_space<vmem>>, vector<64x128xbf16>
    %cst_32 = arith.constant dense<0.000000e+00> : vector<8x128xf32>
    %84 = tpu.matmul %82, %83, %cst_32 {dimension_numbers = #tpu.dot_dimension_numbers<[1], [0], [0], [1], [0, 0, 1, 1], [], []>} : vector<8x64xbf16>, vector<64x128xbf16>, vector<8x128xf32> -> vector<8x128xf32>
    %c0_33 = arith.constant 0 : index
    %c0_34 = arith.constant 0 : index
    %85 = vector.load %arg9[%c0_33, %c0_34] : memref<1x128xf32, #tpu.memory_space<vmem>>, vector<1x128xf32>
    %86 = vector.broadcast %85 : vector<1x128xf32> to vector<8x128xf32>
    %87 = arith.addf %84, %86 : vector<8x128xf32>
    %cst_35 = arith.constant 0.000000e+00 : f32
    %88 = vector.broadcast %cst_35 : f32 to vector<8x128xf32>
    %89 = arith.maximumf %87, %88 : vector<8x128xf32>
    %c0_36 = arith.constant 0 : index
    %c0_37 = arith.constant 0 : index
    %90 = vector.load %arg10[%c0_36, %c0_37] : memref<1x128xf32, #tpu.memory_space<vmem>>, vector<1x128xf32>
    %c0_38 = arith.constant 0 : index
    %c0_39 = arith.constant 0 : index
    %91 = vector.load %arg11[%c0_38, %c0_39] : memref<1x128xf32, #tpu.memory_space<vmem>>, vector<1x128xf32>
    %cst_40 = arith.constant dense<0.000000e+00> : vector<8xf32>
    %92 = vector.multi_reduction <add>, %89, %cst_40 [1] : vector<8x128xf32> to vector<8xf32>
    %93 = vector.shape_cast %92 : vector<8xf32> to vector<8x1xf32>
    %cst_41 = arith.constant 1.280000e+02 : f32
    %94 = vector.broadcast %cst_41 : f32 to vector<8x1xf32>
    %95 = arith.divf %93, %94 : vector<8x1xf32>
    %96 = arith.mulf %89, %89 : vector<8x128xf32>
    %cst_42 = arith.constant dense<0.000000e+00> : vector<8xf32>
    %97 = vector.multi_reduction <add>, %96, %cst_42 [1] : vector<8x128xf32> to vector<8xf32>
    %98 = vector.shape_cast %97 : vector<8xf32> to vector<8x1xf32>
    %cst_43 = arith.constant 1.280000e+02 : f32
    %99 = vector.broadcast %cst_43 : f32 to vector<8x1xf32>
    %100 = arith.divf %98, %99 : vector<8x1xf32>
    %101 = arith.mulf %95, %95 : vector<8x1xf32>
    %102 = arith.subf %100, %101 : vector<8x1xf32>
    %cst_44 = arith.constant 0.000000e+00 : f32
    %103 = vector.broadcast %cst_44 : f32 to vector<8x1xf32>
    %104 = arith.maximumf %102, %103 : vector<8x1xf32>
    %105 = vector.broadcast %95 : vector<8x1xf32> to vector<8x128xf32>
    %106 = arith.subf %89, %105 : vector<8x128xf32>
    %cst_45 = arith.constant 9.99999996E-13 : f32
    %107 = vector.broadcast %cst_45 : f32 to vector<8x1xf32>
    %108 = arith.addf %104, %107 : vector<8x1xf32>
    %109 = math.rsqrt %108 : vector<8x1xf32>
    %110 = vector.broadcast %109 : vector<8x1xf32> to vector<8x128xf32>
    %111 = arith.mulf %106, %110 : vector<8x128xf32>
    %112 = vector.broadcast %90 : vector<1x128xf32> to vector<8x128xf32>
    %113 = arith.mulf %112, %111 : vector<8x128xf32>
    %114 = vector.broadcast %91 : vector<1x128xf32> to vector<8x128xf32>
    %115 = arith.addf %113, %114 : vector<8x128xf32>
    %116 = arith.truncf %115 : vector<8x128xf32> to vector<8x128xbf16>
    %c0_46 = arith.constant 0 : index
    %c0_47 = arith.constant 0 : index
    %117 = vector.load %arg12[%c0_46, %c0_47] : memref<128x128xbf16, #tpu.memory_space<vmem>>, vector<128x128xbf16>
    %cst_48 = arith.constant dense<0.000000e+00> : vector<8x128xf32>
    %118 = tpu.matmul %116, %117, %cst_48 {dimension_numbers = #tpu.dot_dimension_numbers<[1], [0], [0], [1], [0, 0, 1, 1], [], []>} : vector<8x128xbf16>, vector<128x128xbf16>, vector<8x128xf32> -> vector<8x128xf32>
    %c0_49 = arith.constant 0 : index
    %c0_50 = arith.constant 0 : index
    %119 = vector.load %arg13[%c0_49, %c0_50] : memref<1x128xf32, #tpu.memory_space<vmem>>, vector<1x128xf32>
    %120 = vector.broadcast %119 : vector<1x128xf32> to vector<8x128xf32>
    %121 = arith.addf %118, %120 : vector<8x128xf32>
    %cst_51 = arith.constant 0.000000e+00 : f32
    %122 = vector.broadcast %cst_51 : f32 to vector<8x128xf32>
    %123 = arith.maximumf %121, %122 : vector<8x128xf32>
    %c0_52 = arith.constant 0 : index
    %c0_53 = arith.constant 0 : index
    %124 = vector.load %arg14[%c0_52, %c0_53] : memref<1x128xf32, #tpu.memory_space<vmem>>, vector<1x128xf32>
    %c0_54 = arith.constant 0 : index
    %c0_55 = arith.constant 0 : index
    %125 = vector.load %arg15[%c0_54, %c0_55] : memref<1x128xf32, #tpu.memory_space<vmem>>, vector<1x128xf32>
    %cst_56 = arith.constant dense<0.000000e+00> : vector<8xf32>
    %126 = vector.multi_reduction <add>, %123, %cst_56 [1] : vector<8x128xf32> to vector<8xf32>
    %127 = vector.shape_cast %126 : vector<8xf32> to vector<8x1xf32>
    %cst_57 = arith.constant 1.280000e+02 : f32
    %128 = vector.broadcast %cst_57 : f32 to vector<8x1xf32>
    %129 = arith.divf %127, %128 : vector<8x1xf32>
    %130 = arith.mulf %123, %123 : vector<8x128xf32>
    %cst_58 = arith.constant dense<0.000000e+00> : vector<8xf32>
    %131 = vector.multi_reduction <add>, %130, %cst_58 [1] : vector<8x128xf32> to vector<8xf32>
    %132 = vector.shape_cast %131 : vector<8xf32> to vector<8x1xf32>
    %cst_59 = arith.constant 1.280000e+02 : f32
    %133 = vector.broadcast %cst_59 : f32 to vector<8x1xf32>
    %134 = arith.divf %132, %133 : vector<8x1xf32>
    %135 = arith.mulf %129, %129 : vector<8x1xf32>
    %136 = arith.subf %134, %135 : vector<8x1xf32>
    %cst_60 = arith.constant 0.000000e+00 : f32
    %137 = vector.broadcast %cst_60 : f32 to vector<8x1xf32>
    %138 = arith.maximumf %136, %137 : vector<8x1xf32>
    %139 = vector.broadcast %129 : vector<8x1xf32> to vector<8x128xf32>
    %140 = arith.subf %123, %139 : vector<8x128xf32>
    %cst_61 = arith.constant 9.99999996E-13 : f32
    %141 = vector.broadcast %cst_61 : f32 to vector<8x1xf32>
    %142 = arith.addf %138, %141 : vector<8x1xf32>
    %143 = math.rsqrt %142 : vector<8x1xf32>
    %144 = vector.broadcast %143 : vector<8x1xf32> to vector<8x128xf32>
    %145 = arith.mulf %140, %144 : vector<8x128xf32>
    %146 = vector.broadcast %124 : vector<1x128xf32> to vector<8x128xf32>
    %147 = arith.mulf %146, %145 : vector<8x128xf32>
    %148 = vector.broadcast %125 : vector<1x128xf32> to vector<8x128xf32>
    %149 = arith.addf %147, %148 : vector<8x128xf32>
    %150 = arith.truncf %149 : vector<8x128xf32> to vector<8x128xbf16>
    %c0_62 = arith.constant 0 : index
    %c0_63 = arith.constant 0 : index
    %151 = vector.load %arg16[%c0_62, %c0_63] : memref<128x128xbf16, #tpu.memory_space<vmem>>, vector<128x128xbf16>
    %cst_64 = arith.constant dense<0.000000e+00> : vector<8x128xf32>
    %152 = tpu.matmul %150, %151, %cst_64 {dimension_numbers = #tpu.dot_dimension_numbers<[1], [0], [0], [1], [0, 0, 1, 1], [], []>} : vector<8x128xbf16>, vector<128x128xbf16>, vector<8x128xf32> -> vector<8x128xf32>
    %c0_65 = arith.constant 0 : index
    %c0_66 = arith.constant 0 : index
    %153 = vector.load %arg17[%c0_65, %c0_66] : memref<1x128xf32, #tpu.memory_space<vmem>>, vector<1x128xf32>
    %154 = vector.broadcast %153 : vector<1x128xf32> to vector<8x128xf32>
    %155 = arith.addf %152, %154 : vector<8x128xf32>
    %cst_67 = arith.constant 0.000000e+00 : f32
    %156 = vector.broadcast %cst_67 : f32 to vector<8x128xf32>
    %157 = arith.maximumf %155, %156 : vector<8x128xf32>
    %c0_68 = arith.constant 0 : index
    %c0_69 = arith.constant 0 : index
    %158 = vector.load %arg18[%c0_68, %c0_69] : memref<1x128xf32, #tpu.memory_space<vmem>>, vector<1x128xf32>
    %c0_70 = arith.constant 0 : index
    %c0_71 = arith.constant 0 : index
    %159 = vector.load %arg19[%c0_70, %c0_71] : memref<1x128xf32, #tpu.memory_space<vmem>>, vector<1x128xf32>
    %cst_72 = arith.constant dense<0.000000e+00> : vector<8xf32>
    %160 = vector.multi_reduction <add>, %157, %cst_72 [1] : vector<8x128xf32> to vector<8xf32>
    %161 = vector.shape_cast %160 : vector<8xf32> to vector<8x1xf32>
    %cst_73 = arith.constant 1.280000e+02 : f32
    %162 = vector.broadcast %cst_73 : f32 to vector<8x1xf32>
    %163 = arith.divf %161, %162 : vector<8x1xf32>
    %164 = arith.mulf %157, %157 : vector<8x128xf32>
    %cst_74 = arith.constant dense<0.000000e+00> : vector<8xf32>
    %165 = vector.multi_reduction <add>, %164, %cst_74 [1] : vector<8x128xf32> to vector<8xf32>
    %166 = vector.shape_cast %165 : vector<8xf32> to vector<8x1xf32>
    %cst_75 = arith.constant 1.280000e+02 : f32
    %167 = vector.broadcast %cst_75 : f32 to vector<8x1xf32>
    %168 = arith.divf %166, %167 : vector<8x1xf32>
    %169 = arith.mulf %163, %163 : vector<8x1xf32>
    %170 = arith.subf %168, %169 : vector<8x1xf32>
    %cst_76 = arith.constant 0.000000e+00 : f32
    %171 = vector.broadcast %cst_76 : f32 to vector<8x1xf32>
    %172 = arith.maximumf %170, %171 : vector<8x1xf32>
    %173 = vector.broadcast %163 : vector<8x1xf32> to vector<8x128xf32>
    %174 = arith.subf %157, %173 : vector<8x128xf32>
    %cst_77 = arith.constant 9.99999996E-13 : f32
    %175 = vector.broadcast %cst_77 : f32 to vector<8x1xf32>
    %176 = arith.addf %172, %175 : vector<8x1xf32>
    %177 = math.rsqrt %176 : vector<8x1xf32>
    %178 = vector.broadcast %177 : vector<8x1xf32> to vector<8x128xf32>
    %179 = arith.mulf %174, %178 : vector<8x128xf32>
    %180 = vector.broadcast %158 : vector<1x128xf32> to vector<8x128xf32>
    %181 = arith.mulf %180, %179 : vector<8x128xf32>
    %182 = vector.broadcast %159 : vector<1x128xf32> to vector<8x128xf32>
    %183 = arith.addf %181, %182 : vector<8x128xf32>
    %184 = arith.truncf %183 : vector<8x128xf32> to vector<8x128xbf16>
    %c0_78 = arith.constant 0 : index
    %c0_79 = arith.constant 0 : index
    %185 = vector.load %arg20[%c0_78, %c0_79] : memref<128x128xbf16, #tpu.memory_space<vmem>>, vector<128x128xbf16>
    %cst_80 = arith.constant dense<0.000000e+00> : vector<8x128xf32>
    %186 = tpu.matmul %184, %185, %cst_80 {dimension_numbers = #tpu.dot_dimension_numbers<[1], [0], [0], [1], [0, 0, 1, 1], [], []>} : vector<8x128xbf16>, vector<128x128xbf16>, vector<8x128xf32> -> vector<8x128xf32>
    %c0_81 = arith.constant 0 : index
    %c0_82 = arith.constant 0 : index
    %187 = vector.load %arg21[%c0_81, %c0_82] : memref<1x128xf32, #tpu.memory_space<vmem>>, vector<1x128xf32>
    %188 = vector.broadcast %187 : vector<1x128xf32> to vector<8x128xf32>
    %189 = arith.addf %186, %188 : vector<8x128xf32>
    %cst_83 = arith.constant 0.000000e+00 : f32
    %190 = vector.broadcast %cst_83 : f32 to vector<8x128xf32>
    %191 = arith.maximumf %189, %190 : vector<8x128xf32>
    %c0_84 = arith.constant 0 : index
    %c0_85 = arith.constant 0 : index
    %192 = vector.load %arg22[%c0_84, %c0_85] : memref<1x128xf32, #tpu.memory_space<vmem>>, vector<1x128xf32>
    %c0_86 = arith.constant 0 : index
    %c0_87 = arith.constant 0 : index
    %193 = vector.load %arg23[%c0_86, %c0_87] : memref<1x128xf32, #tpu.memory_space<vmem>>, vector<1x128xf32>
    %cst_88 = arith.constant dense<0.000000e+00> : vector<8xf32>
    %194 = vector.multi_reduction <add>, %191, %cst_88 [1] : vector<8x128xf32> to vector<8xf32>
    %195 = vector.shape_cast %194 : vector<8xf32> to vector<8x1xf32>
    %cst_89 = arith.constant 1.280000e+02 : f32
    %196 = vector.broadcast %cst_89 : f32 to vector<8x1xf32>
    %197 = arith.divf %195, %196 : vector<8x1xf32>
    %198 = arith.mulf %191, %191 : vector<8x128xf32>
    %cst_90 = arith.constant dense<0.000000e+00> : vector<8xf32>
    %199 = vector.multi_reduction <add>, %198, %cst_90 [1] : vector<8x128xf32> to vector<8xf32>
    %200 = vector.shape_cast %199 : vector<8xf32> to vector<8x1xf32>
    %cst_91 = arith.constant 1.280000e+02 : f32
    %201 = vector.broadcast %cst_91 : f32 to vector<8x1xf32>
    %202 = arith.divf %200, %201 : vector<8x1xf32>
    %203 = arith.mulf %197, %197 : vector<8x1xf32>
    %204 = arith.subf %202, %203 : vector<8x1xf32>
    %cst_92 = arith.constant 0.000000e+00 : f32
    %205 = vector.broadcast %cst_92 : f32 to vector<8x1xf32>
    %206 = arith.maximumf %204, %205 : vector<8x1xf32>
    %207 = vector.broadcast %197 : vector<8x1xf32> to vector<8x128xf32>
    %208 = arith.subf %191, %207 : vector<8x128xf32>
    %cst_93 = arith.constant 9.99999996E-13 : f32
    %209 = vector.broadcast %cst_93 : f32 to vector<8x1xf32>
    %210 = arith.addf %206, %209 : vector<8x1xf32>
    %211 = math.rsqrt %210 : vector<8x1xf32>
    %212 = vector.broadcast %211 : vector<8x1xf32> to vector<8x128xf32>
    %213 = arith.mulf %208, %212 : vector<8x128xf32>
    %214 = vector.broadcast %192 : vector<1x128xf32> to vector<8x128xf32>
    %215 = arith.mulf %214, %213 : vector<8x128xf32>
    %216 = vector.broadcast %193 : vector<1x128xf32> to vector<8x128xf32>
    %217 = arith.addf %215, %216 : vector<8x128xf32>
    %218 = arith.truncf %217 : vector<8x128xf32> to vector<8x128xbf16>
    %c0_94 = arith.constant 0 : index
    %c0_95 = arith.constant 0 : index
    %219 = vector.load %arg24[%c0_94, %c0_95] : memref<128x128xbf16, #tpu.memory_space<vmem>>, vector<128x128xbf16>
    %cst_96 = arith.constant dense<0.000000e+00> : vector<8x128xf32>
    %220 = tpu.matmul %218, %219, %cst_96 {dimension_numbers = #tpu.dot_dimension_numbers<[1], [0], [0], [1], [0, 0, 1, 1], [], []>} : vector<8x128xbf16>, vector<128x128xbf16>, vector<8x128xf32> -> vector<8x128xf32>
    %c0_97 = arith.constant 0 : index
    %c0_98 = arith.constant 0 : index
    %221 = vector.load %arg25[%c0_97, %c0_98] : memref<1x128xf32, #tpu.memory_space<vmem>>, vector<1x128xf32>
    %222 = vector.broadcast %221 : vector<1x128xf32> to vector<8x128xf32>
    %223 = arith.addf %220, %222 : vector<8x128xf32>
    %cst_99 = arith.constant 0.000000e+00 : f32
    %224 = vector.broadcast %cst_99 : f32 to vector<8x128xf32>
    %225 = arith.maximumf %223, %224 : vector<8x128xf32>
    %c0_100 = arith.constant 0 : index
    %c0_101 = arith.constant 0 : index
    %226 = vector.load %arg26[%c0_100, %c0_101] : memref<1x128xf32, #tpu.memory_space<vmem>>, vector<1x128xf32>
    %c0_102 = arith.constant 0 : index
    %c0_103 = arith.constant 0 : index
    %227 = vector.load %arg27[%c0_102, %c0_103] : memref<1x128xf32, #tpu.memory_space<vmem>>, vector<1x128xf32>
    %cst_104 = arith.constant dense<0.000000e+00> : vector<8xf32>
    %228 = vector.multi_reduction <add>, %225, %cst_104 [1] : vector<8x128xf32> to vector<8xf32>
    %229 = vector.shape_cast %228 : vector<8xf32> to vector<8x1xf32>
    %cst_105 = arith.constant 1.280000e+02 : f32
    %230 = vector.broadcast %cst_105 : f32 to vector<8x1xf32>
    %231 = arith.divf %229, %230 : vector<8x1xf32>
    %232 = arith.mulf %225, %225 : vector<8x128xf32>
    %cst_106 = arith.constant dense<0.000000e+00> : vector<8xf32>
    %233 = vector.multi_reduction <add>, %232, %cst_106 [1] : vector<8x128xf32> to vector<8xf32>
    %234 = vector.shape_cast %233 : vector<8xf32> to vector<8x1xf32>
    %cst_107 = arith.constant 1.280000e+02 : f32
    %235 = vector.broadcast %cst_107 : f32 to vector<8x1xf32>
    %236 = arith.divf %234, %235 : vector<8x1xf32>
    %237 = arith.mulf %231, %231 : vector<8x1xf32>
    %238 = arith.subf %236, %237 : vector<8x1xf32>
    %cst_108 = arith.constant 0.000000e+00 : f32
    %239 = vector.broadcast %cst_108 : f32 to vector<8x1xf32>
    %240 = arith.maximumf %238, %239 : vector<8x1xf32>
    %241 = vector.broadcast %231 : vector<8x1xf32> to vector<8x128xf32>
    %242 = arith.subf %225, %241 : vector<8x128xf32>
    %cst_109 = arith.constant 9.99999996E-13 : f32
    %243 = vector.broadcast %cst_109 : f32 to vector<8x1xf32>
    %244 = arith.addf %240, %243 : vector<8x1xf32>
    %245 = math.rsqrt %244 : vector<8x1xf32>
    %246 = vector.broadcast %245 : vector<8x1xf32> to vector<8x128xf32>
    %247 = arith.mulf %242, %246 : vector<8x128xf32>
    %248 = vector.broadcast %226 : vector<1x128xf32> to vector<8x128xf32>
    %249 = arith.mulf %248, %247 : vector<8x128xf32>
    %250 = vector.broadcast %227 : vector<1x128xf32> to vector<8x128xf32>
    %251 = arith.addf %249, %250 : vector<8x128xf32>
    %c0_110 = arith.constant 0 : index
    %c0_111 = arith.constant 0 : index
    %252 = vector.load %arg28[%c0_110, %c0_111] : memref<1x128xf32, #tpu.memory_space<vmem>>, vector<1x128xf32>
    %253 = vector.broadcast %252 : vector<1x128xf32> to vector<8x128xf32>
    %254 = arith.mulf %251, %253 : vector<8x128xf32>
    %cst_112 = arith.constant dense<0.000000e+00> : vector<8xf32>
    %255 = vector.multi_reduction <add>, %254, %cst_112 [1] : vector<8x128xf32> to vector<8xf32>
    %256 = vector.shape_cast %255 : vector<8xf32> to vector<8x1xf32>
    %c0_113 = arith.constant 0 : index
    %c0_114 = arith.constant 0 : index
    %257 = vector.load %arg29[%c0_113, %c0_114] : memref<1x1xf32, #tpu.memory_space<vmem>>, vector<1x1xf32>
    %258 = vector.broadcast %257 : vector<1x1xf32> to vector<8x1xf32>
    %259 = arith.addf %256, %258 : vector<8x1xf32>
    %c0_115 = arith.constant 0 : index
    %c0_116 = arith.constant 0 : index
    %260 = vector.load %arg30[%c0_115, %c0_116] : memref<8x1xf32, #tpu.memory_space<vmem>>, vector<8x1xf32>
    tpu.vector_store %arg30[%c0_115, %c0_116], %259 {strides = array<i32>} : memref<8x1xf32, #tpu.memory_space<vmem>>, vector<8x1xf32>,
    return
  }
  func.func @transform_0(%arg0: i32) -> (i32, i32) {
    %c0_i32 = arith.constant 0 : i32
    %c0_i32_0 = arith.constant 0 : i32
    return %arg0, %c0_i32 : i32, i32
  }
  func.func @transform_1(%arg0: i32) -> (i32, i32) {
    %c0_i32 = arith.constant 0 : i32
    %c0_i32_0 = arith.constant 0 : i32
    %c0_i32_1 = arith.constant 0 : i32
    return %c0_i32, %c0_i32_0 : i32, i32
  }
  func.func @transform_2(%arg0: i32) -> (i32, i32) {
    %c0_i32 = arith.constant 0 : i32
    %c0_i32_0 = arith.constant 0 : i32
    %c0_i32_1 = arith.constant 0 : i32
    return %c0_i32, %c0_i32_0 : i32, i32
  }
  func.func @transform_3(%arg0: i32) -> (i32, i32) {
    %c0_i32 = arith.constant 0 : i32
    %c0_i32_0 = arith.constant 0 : i32
    %c0_i32_1 = arith.constant 0 : i32
    return %c0_i32, %c0_i32_0 : i32, i32
  }
  func.func @transform_4(%arg0: i32) -> (i32, i32) {
    %c0_i32 = arith.constant 0 : i32
    %c0_i32_0 = arith.constant 0 : i32
    %c0_i32_1 = arith.constant 0 : i32
    return %c0_i32, %c0_i32_0 : i32, i32
  }
  func.func @transform_5(%arg0: i32) -> (i32, i32) {
    %c0_i32 = arith.constant 0 : i32
    %c0_i32_0 = arith.constant 0 : i32
    %c0_i32_1 = arith.constant 0 : i32
    return %c0_i32, %c0_i32_0 : i32, i32
  }
  func.func @transform_6(%arg0: i32) -> (i32, i32) {
    %c0_i32 = arith.constant 0 : i32
    %c0_i32_0 = arith.constant 0 : i32
    %c0_i32_1 = arith.constant 0 : i32
    return %c0_i32, %c0_i32_0 : i32, i32
  }
  func.func @transform_7(%arg0: i32) -> (i32, i32) {
    %c0_i32 = arith.constant 0 : i32
    %c0_i32_0 = arith.constant 0 : i32
    %c0_i32_1 = arith.constant 0 : i32
    return %c0_i32, %c0_i32_0 : i32, i32
  }
  func.func @transform_8(%arg0: i32) -> (i32, i32) {
    %c0_i32 = arith.constant 0 : i32
    %c0_i32_0 = arith.constant 0 : i32
    %c0_i32_1 = arith.constant 0 : i32
    return %c0_i32, %c0_i32_0 : i32, i32
  }
  func.func @transform_9(%arg0: i32) -> (i32, i32) {
    %c0_i32 = arith.constant 0 : i32
    %c0_i32_0 = arith.constant 0 : i32
    %c0_i32_1 = arith.constant 0 : i32
    return %c0_i32, %c0_i32_0 : i32, i32
  }
  func.func @transform_10(%arg0: i32) -> (i32, i32) {
    %c0_i32 = arith.constant 0 : i32
    %c0_i32_0 = arith.constant 0 : i32
    %c0_i32_1 = arith.constant 0 : i32
    return %c0_i32, %c0_i32_0 : i32, i32
  }
  func.func @transform_11(%arg0: i32) -> (i32, i32) {
    %c0_i32 = arith.constant 0 : i32
    %c0_i32_0 = arith.constant 0 : i32
    %c0_i32_1 = arith.constant 0 : i32
    return %c0_i32, %c0_i32_0 : i32, i32
  }
  func.func @transform_12(%arg0: i32) -> (i32, i32) {
    %c0_i32 = arith.constant 0 : i32
    %c0_i32_0 = arith.constant 0 : i32
    %c0_i32_1 = arith.constant 0 : i32
    return %c0_i32, %c0_i32_0 : i32, i32
  }
  func.func @transform_13(%arg0: i32) -> (i32, i32) {
    %c0_i32 = arith.constant 0 : i32
    %c0_i32_0 = arith.constant 0 : i32
    %c0_i32_1 = arith.constant 0 : i32
    return %c0_i32, %c0_i32_0 : i32, i32
  }
  func.func @transform_14(%arg0: i32) -> (i32, i32) {
    %c0_i32 = arith.constant 0 : i32
    %c0_i32_0 = arith.constant 0 : i32
    %c0_i32_1 = arith.constant 0 : i32
    return %c0_i32, %c0_i32_0 : i32, i32
  }
  func.func @transform_15(%arg0: i32) -> (i32, i32) {
    %c0_i32 = arith.constant 0 : i32
    %c0_i32_0 = arith.constant 0 : i32
    %c0_i32_1 = arith.constant 0 : i32
    return %c0_i32, %c0_i32_0 : i32, i32
  }
  func.func @transform_16(%arg0: i32) -> (i32, i32) {
    %c0_i32 = arith.constant 0 : i32
    %c0_i32_0 = arith.constant 0 : i32
    %c0_i32_1 = arith.constant 0 : i32
    return %c0_i32, %c0_i32_0 : i32, i32
  }
  func.func @transform_17(%arg0: i32) -> (i32, i32) {
    %c0_i32 = arith.constant 0 : i32
    %c0_i32_0 = arith.constant 0 : i32
    %c0_i32_1 = arith.constant 0 : i32
    return %c0_i32, %c0_i32_0 : i32, i32
  }
  func.func @transform_18(%arg0: i32) -> (i32, i32) {
    %c0_i32 = arith.constant 0 : i32
    %c0_i32_0 = arith.constant 0 : i32
    %c0_i32_1 = arith.constant 0 : i32
    return %c0_i32, %c0_i32_0 : i32, i32
  }
  func.func @transform_19(%arg0: i32) -> (i32, i32) {
    %c0_i32 = arith.constant 0 : i32
    %c0_i32_0 = arith.constant 0 : i32
    %c0_i32_1 = arith.constant 0 : i32
    return %c0_i32, %c0_i32_0 : i32, i32
  }
  func.func @transform_20(%arg0: i32) -> (i32, i32) {
    %c0_i32 = arith.constant 0 : i32
    %c0_i32_0 = arith.constant 0 : i32
    %c0_i32_1 = arith.constant 0 : i32
    return %c0_i32, %c0_i32_0 : i32, i32
  }
  func.func @transform_21(%arg0: i32) -> (i32, i32) {
    %c0_i32 = arith.constant 0 : i32
    %c0_i32_0 = arith.constant 0 : i32
    %c0_i32_1 = arith.constant 0 : i32
    return %c0_i32, %c0_i32_0 : i32, i32
  }
  func.func @transform_22(%arg0: i32) -> (i32, i32) {
    %c0_i32 = arith.constant 0 : i32
    %c0_i32_0 = arith.constant 0 : i32
    %c0_i32_1 = arith.constant 0 : i32
    return %c0_i32, %c0_i32_0 : i32, i32
  }
  func.func @transform_23(%arg0: i32) -> (i32, i32) {
    %c0_i32 = arith.constant 0 : i32
    %c0_i32_0 = arith.constant 0 : i32
    %c0_i32_1 = arith.constant 0 : i32
    return %c0_i32, %c0_i32_0 : i32, i32
  }
  func.func @transform_24(%arg0: i32) -> (i32, i32) {
    %c0_i32 = arith.constant 0 : i32
    %c0_i32_0 = arith.constant 0 : i32
    %c0_i32_1 = arith.constant 0 : i32
    return %c0_i32, %c0_i32_0 : i32, i32
  }
  func.func @transform_25(%arg0: i32) -> (i32, i32) {
    %c0_i32 = arith.constant 0 : i32
    %c0_i32_0 = arith.constant 0 : i32
    %c0_i32_1 = arith.constant 0 : i32
    return %c0_i32, %c0_i32_0 : i32, i32
  }
  func.func @transform_26(%arg0: i32) -> (i32, i32) {
    %c0_i32 = arith.constant 0 : i32
    %c0_i32_0 = arith.constant 0 : i32
    %c0_i32_1 = arith.constant 0 : i32
    return %c0_i32, %c0_i32_0 : i32, i32
  }
  func.func @transform_27(%arg0: i32) -> (i32, i32) {
    %c0_i32 = arith.constant 0 : i32
    %c0_i32_0 = arith.constant 0 : i32
    %c0_i32_1 = arith.constant 0 : i32
    return %c0_i32, %c0_i32_0 : i32, i32
  }
  func.func @transform_28(%arg0: i32) -> (i32, i32) {
    %c0_i32 = arith.constant 0 : i32
    %c0_i32_0 = arith.constant 0 : i32
    %c0_i32_1 = arith.constant 0 : i32
    return %c0_i32, %c0_i32_0 : i32, i32
  }
  func.func @transform_29(%arg0: i32) -> (i32, i32) {
    %c0_i32 = arith.constant 0 : i32
    %c0_i32_0 = arith.constant 0 : i32
    return %arg0, %c0_i32 : i32, i32
  }
}

</mosaic_0001>

<bundles_post_ra>
// kernel: _range_model_call.1
= control target key start
LH: loop header
LB: loop body
LE: loop exit
PB: predicated region body
PF: predicated region fallthrough
CT: control target
= control target key end

     0   :  { %s11775_s3 = smov 1   ;;  %v14404_v0 = vmov 0   ;;  %vm479_vm0 = vcmask 130048   ;;  %s11777_s10 = smov 4   ;;  %vm4896_vm1 = vcmask 261120   ;;  %vm11784_vm2 = vmmov 0   ;;  %s14403_s0 = inlined_call_operand.smem [shape: u32[30], index: -1, kind: input, shape index: {}] }
   0x1   :  { %s11817_s6 = sld [smem:[%s14403_s0 + %s11775_s3]]   ;;  %515 = vmatprep.mubr.bf16.mxu1 %v14404_v0  ;;  %597 = vmatprep.mubr.bf16.mxu0 %v14404_v0  ;;  %s11778_s14 = smov 3   ;;  %vm8850_vm3 = vcmask 523264   ;;  %vm9516_vm4 = vcmask 7168  }
   0x2   :  { %s1_s9 = sld [smem:[%s14403_s0]]   ;;  %s11779_s18 = smov 112  }
   0x3   :  { %s11907_s13 = sld [smem:[%s14403_s0 + %s11777_s10]]   ;;  %s11780_s19 = smov 2  }
   0x4   :  { %s11919_s17 = sld [smem:[%s14403_s0 + %s11778_s14]]   ;;  %s11781_s23 = smov 5  }
   0x5   :  { %s13012_s22 = sld [smem:[%s14403_s0 + %s11780_s19]]   ;;  %s11783_s27 = smov 7  }
   0x6   :  { %s13151_s26 = sld [smem:[%s14403_s0 + %s11781_s23]]   ;;  %s11785_s1 = smov 32  }
   0x7   :  { %v159_v1 = vld [vmem:[%s11817_s6] sm:$0xff]  ;;  %v160_v6 = vld [vmem:[%s11817_s6 + $0x8] sm:$0xff]  ;;  %v161_v8 = vld [vmem:[%s11817_s6 + $0x10] sm:$0xff]  ;;  %s14271_s30 = sld [smem:[%s14403_s0 + %s11783_s27]]   ;;  %s11786_s2 = smov 6  }
   0x8   :  { %v175_v2 = vld [vmem:[%s11817_s6 + $0x80] sm:$0xff]  ;;  %v176_v7 = vld [vmem:[%s11817_s6 + $0x88] sm:$0xff]  ;;  %v177_v10 = vld [vmem:[%s11817_s6 + $0x90] sm:$0xff]  ;;  %s9527_s5 = sld [smem:[%s14403_s0 + %s11786_s2]]   ;;  %s11788_s10 = smov 8  }
   0x9   :  { %v125_v3 = vld [vmem:[%s1_s9] sm:$0xff]  ;;  %v9552_v4 = vcombine.high %v159_v1, %v175_v2  ;;  %v9551_v5 = vcombine.low %v159_v1, %v175_v2  ;;  %v9554_v9 = vcombine.high %v160_v6, %v176_v7  ;;  %v162_v11 = vld [vmem:[%s11817_s6 + $0x18] sm:$0xff]  ;;  %v9556_v14 = vcombine.high %v161_v8, %v177_v10  ;;  %v165_v20 = vld [vmem:[%s11817_s6 + $0x30] sm:$0xff]  ;;  %s11789_s14 = smov 9   ;;  %s11794_s4 = smov 14  }
   0xa   :  { %v178_v12 = vld [vmem:[%s11817_s6 + $0x98] sm:$0xff]  ;;  %v11832_v13 = vpack.c.bf16 %v125_v3, %v125_v3  ;;  %v9555_v15 = vcombine.low %v161_v8, %v177_v10  ;;  %v163_v16 = vld [vmem:[%s11817_s6 + $0x20] sm:$0xff]  ;;  %v9553_v18 = vcombine.low %v160_v6, %v176_v7  ;;  %v181_v21 = vld [vmem:[%s11817_s6 + $0xb0] sm:$0xff]  ;;  %s9535_s7 = sld [smem:[%s14403_s0 + %s11794_s4]]   ;;  %s11795_s8 = smov 16  }
   0xb   :  { %483 = vmatprep.subr.bf16.mxu1 %v9552_v4  ;;  %v179_v17 = vld [vmem:[%s11817_s6 + $0xa0] sm:$0xff]  ;;  %565 = vmatprep.subr.bf16.mxu0 %v9556_v14  ;;  %v9558_v22 = vcombine.high %v162_v11, %v178_v12  ;;  %v9564_v24 = vcombine.high %v165_v20, %v181_v21  ;;  %v164_v25 = vld [vmem:[%s11817_s6 + $0x28] sm:$0xff]  ;;  %v9557_v27 = vcombine.low %v162_v11, %v178_v12  ;;  %v166_v33 = vld [vmem:[%s11817_s6 + $0x38] sm:$0xff]  ;;  %v191_v4 = vlaneseq  ;;  %s9537_s11 = sld [smem:[%s14403_s0 + %s11795_s8]]   ;;  %s11796_s12 = smov 19  }
   0xc   :  { %484 = vmatpush1.bf16.msra.mxu1 %v9551_v5  ;;  %v9560_v19 = vcombine.high %v163_v16, %v179_v17  ;;  %566 = vmatpush1.bf16.msra.mxu0 %v9555_v15  ;;  %v9559_v23 = vcombine.low %v163_v16, %v179_v17  ;;  %v180_v26 = vld [vmem:[%s11817_s6 + $0xa8] sm:$0xff]  ;;  %v167_v28 = vld [vmem:[%s11817_s6 + $0x40] sm:$0xff]  ;;  %v9563_v31 = vcombine.low %v165_v20, %v181_v21  ;;  %v182_v34 = vld [vmem:[%s11817_s6 + $0xb8] sm:$0xff]  ;;  %s9540_s15 = sld [smem:[%s14403_s0 + %s11796_s12]]   ;;  %s11797_s16 = smov 17  }
   0xd   :  { %524 = vmatprep.subr.bf16.mxu1 %v9554_v9  ;;  %v183_v29 = vld [vmem:[%s11817_s6 + $0xc0] sm:$0xff]  ;;  %v9562_v30 = vcombine.high %v164_v25, %v180_v26  ;;  %v9561_v35 = vcombine.low %v164_v25, %v180_v26  ;;  %v169_v36 = vld [vmem:[%s11817_s6 + $0x50] sm:$0xff]  ;;  %v9566_v38 = vcombine.high %v166_v33, %v182_v34  ;;  %v168_v41 = vld [vmem:[%s11817_s6 + $0x48] sm:$0xff]  ;;  %v9565_v43 = vcombine.low %v166_v33, %v182_v34  ;;  %s9538_s19 = sld [smem:[%s14403_s0 + %s11797_s16]]   ;;  %s11798_s20 = smov 18  }
   0xe   :  { %647 = vmatprep.subr.bf16.mxu0 %v9560_v19  ;;  %v9568_v32 = vcombine.high %v167_v28, %v183_v29  ;;  %v185_v37 = vld [vmem:[%s11817_s6 + $0xd0] sm:$0xff]  ;;  %v9567_v39 = vcombine.low %v167_v28, %v183_v29  ;;  %v184_v42 = vld [vmem:[%s11817_s6 + $0xc8] sm:$0xff]  ;;  %v171_v44 = vld [vmem:[%s11817_s6 + $0x60] sm:$0xff]  ;;  %v11909_v5 = vshrl.u32 %v191_v4, 7  ;;  %4574 = vrot.lane.b32.xlu1 %v11832_v13, %s11779_s18  ;;  %s11790_s18 = smov 10   ;;  %s9539_s23 = sld [smem:[%s14403_s0 + %s11798_s20]]  }
   0xf   :  { %9583 = vmatmul.mubr.msk.bf16.vlgmr.msra.gmra.mrb[0].mxu1 %vm479_vm0, %v11832_v13  ;;  %9585 = vmatmul.mubr.msk.bf16.vlgmr.msra.gmra.mrb[0].mxu0 %vm479_vm0, %v11832_v13  ;;  %v9572_v40 = vcombine.high %v169_v36, %v185_v37  ;;  %v187_v45 = vld [vmem:[%s11817_s6 + $0xe0] sm:$0xff]  ;;  %v9570_v46 = vcombine.high %v168_v41, %v184_v42  ;;  %v9571_v47 = vcombine.low %v169_v36, %v185_v37  ;;  %v170_v49 = vld [vmem:[%s11817_s6 + $0x58] sm:$0xff]  ;;  %v173_v52 = vld [vmem:[%s11817_s6 + $0x70] sm:$0xff]  ;;  %s9531_s21 = sld [smem:[%s14403_s0 + %s11790_s18]]   ;;  %s11799_s24 = smov 20  }
  0x10   :  { %525 = vmatpush1.bf16.msra.mxu1 %v9553_v18  ;;  %556 = vmatprep.mubr.bf16.mxu1 %v14404_v0  ;;  %v9576_v48 = vcombine.high %v171_v44, %v187_v45  ;;  %v186_v50 = vld [vmem:[%s11817_s6 + $0xd8] sm:$0xff]  ;;  %v9569_v51 = vcombine.low %v168_v41, %v184_v42  ;;  %v189_v53 = vld [vmem:[%s11817_s6 + $0xf0] sm:$0xff]  ;;  %v9575_v55 = vcombine.low %v171_v44, %v187_v45  ;;  %v172_v57 = vld [vmem:[%s11817_s6 + $0x68] sm:$0xff]  ;;  %v11913_v7 = vsub.s32 0, %v11909_v5  ;;  %s9541_s27 = sld [smem:[%s14403_s0 + %s11799_s24]]   ;;  %s11800_s28 = smov 23  }
  0x11   :  { %606 = vmatprep.subr.bf16.mxu1 %v9558_v22  ;;  %648 = vmatpush1.bf16.msra.mxu0 %v9559_v23  ;;  %v9574_v54 = vcombine.high %v170_v49, %v186_v50  ;;  %v9580_v56 = vcombine.high %v173_v52, %v189_v53  ;;  %v188_v58 = vld [vmem:[%s11817_s6 + $0xe8] sm:$0xff]  ;;  %v9573_v59 = vcombine.low %v170_v49, %v186_v50  ;;  %v174_v62 = vld [vmem:[%s11817_s6 + $0x78] sm:$0xff]  ;;  %v11117_v6 = vld [vmem:[%s11907_s13 + $0x40] sm:$0xff]   ;;  %s11801_s2 = smov 21   ;;  %s11805_s18 = smov 25  }
  0x12   :  { %679 = vmatprep.mubr.bf16.mxu0 %v14404_v0  ;;  %729 = vmatprep.subr.bf16.mxu0 %v9564_v24  ;;  %v9578_v60 = vcombine.high %v172_v57, %v188_v58  ;;  %v9579_v61 = vcombine.low %v173_v52, %v189_v53  ;;  %v190_v63 = vld [vmem:[%s11817_s6 + $0xf8] sm:$0xff]  ;;  %v9577_v1 = vcombine.low %v172_v57, %v188_v58  ;;  %v11118_v8 = vld [vmem:[%s11907_s13 + $0xc0] sm:$0xff]   ;;  %v127_v10 = vld [vmem:[%s11919_s17 + $0x8] sm:$0x3f]  ;;  %s11787_s6 = smov 11  }
  0x13   :  { %v9582_v2 = vcombine.high %v174_v62, %v190_v63  ;;  %v9581_v3 = vcombine.low %v174_v62, %v190_v63  ;;  %14426 = vst [vmem:[#allocation3_spill] sm:$0xff] %v11909_v5  ;;  %v126_v9 = vld [vmem:[%s11919_s17] sm:$0x3f]  ;;  %v198_v12 = vrot.slane %v127_v10, %v11913_v7  ;;  %v128_v16 = vld [vmem:[%s11919_s17 + $0x10] sm:$0x3f]  ;;  %s14296_s9 = sld [smem:[%s14403_s0 + %s11787_s6]]   ;;  %s11802_s6 = smov 22  }
  0x14   :  { %v194_v11 = vrot.slane %v126_v9, %v11913_v7  ;;  %v130_v14 = vld [vmem:[%s11919_s17 + $0x20] sm:$0x3f]  ;;  %v129_v19 = vld [vmem:[%s11919_s17 + $0x18] sm:$0x3f]  ;;  %v131_v25 = vld [vmem:[%s11919_s17 + $0x28] sm:$0x3f] }
  0x15   :  { %v210_v24 = vrot.slane %v130_v14, %v11913_v7  ;;  %v214_v33 = vrot.slane %v131_v25, %v11913_v7  ;;  %v134_v34 = vld [vmem:[%s11919_s17 + $0x40] sm:$0x3f]  ;;  %v132_v37 = vld [vmem:[%s11919_s17 + $0x30] sm:$0x3f]  ;;  %v133_v42 = vld [vmem:[%s11919_s17 + $0x38] sm:$0x3f] }
  0x16   :  { %v226_v52 = vrot.slane %v134_v34, %v11913_v7  ;;  %v136_v10 = vld [vmem:[%s11919_s17 + $0x50] sm:$0x3f] }
  0x17   :  { %9584 = vmatmul.mubr.msk.bf16.vlgmr.msra.gmra.mrb[4].mxu1 %vm479_vm0, %v11832_v13  ;;  %9587 = vmatmul.mubr.msk.bf16.vlgmr.msra.gmra.mrb[4].mxu0 %vm479_vm0, %v11832_v13 }
  0x18   :  { %607 = vmatpush1.bf16.msra.mxu1 %v9557_v27  ;;  %638 = vmatprep.mubr.bf16.mxu1 %v14404_v0 }
  0x19   :  { %688 = vmatprep.subr.bf16.mxu1 %v9562_v30  ;;  %730 = vmatpush1.bf16.msra.mxu0 %v9563_v31  ;;  %v202_v30 = vrot.slane %v128_v16, %v11913_v7  ;;  %v137_v16 = vld [vmem:[%s11919_s17 + $0x58] sm:$0x3f] }
  0x1a   :  { %761 = vmatprep.mubr.bf16.mxu0 %v14404_v0  ;;  %811 = vmatprep.subr.bf16.mxu0 %v9568_v32  ;;  %v206_v32 = vrot.slane %v129_v19, %v11913_v7 }
  0x1f   :  { %9586 = vmatmul.mubr.msk.bf16.vlgmr.msra.gmra.mrb[8].mxu1 %vm479_vm0, %v11832_v13  ;;  %9589 = vmatmul.mubr.msk.bf16.vlgmr.msra.gmra.mrb[8].mxu0 %vm479_vm0, %v11832_v13 }
  0x20   :  { %689 = vmatpush1.bf16.msra.mxu1 %v9561_v35  ;;  %720 = vmatprep.mubr.bf16.mxu1 %v14404_v0 }
  0x21   :  { %770 = vmatprep.subr.bf16.mxu1 %v9566_v38  ;;  %812 = vmatpush1.bf16.msra.mxu0 %v9567_v39 }
  0x22   :  { %843 = vmatprep.mubr.bf16.mxu0 %v14404_v0  ;;  %893 = vmatprep.subr.bf16.mxu0 %v9572_v40 }
  0x27   :  { %9588 = vmatmul.mubr.msk.bf16.vlgmr.msra.gmra.mrb[12].mxu1 %vm479_vm0, %v11832_v13  ;;  %9591 = vmatmul.mubr.msk.bf16.vlgmr.msra.gmra.mrb[12].mxu0 %vm479_vm0, %v11832_v13 }
  0x28   :  { %771 = vmatpush1.bf16.msra.mxu1 %v9565_v43  ;;  %802 = vmatprep.mubr.bf16.mxu1 %v14404_v0  ;;  %v135_v43 = vld [vmem:[%s11919_s17 + $0x48] sm:$0x3f] }
  0x29   :  { %852 = vmatprep.subr.bf16.mxu1 %v9570_v46  ;;  %894 = vmatpush1.bf16.msra.mxu0 %v9571_v47 }
  0x2a   :  { %925 = vmatprep.mubr.bf16.mxu0 %v14404_v0  ;;  %975 = vmatprep.subr.bf16.mxu0 %v9576_v48 }
  0x2f   :  { %9590 = vmatmul.mubr.msk.bf16.vlgmr.msra.gmra.mrb[16].mxu1 %vm479_vm0, %v11832_v13  ;;  %9593 = vmatmul.mubr.msk.bf16.vlgmr.msra.gmra.mrb[16].mxu0 %vm479_vm0, %v11832_v13 }
  0x30   :  { %853 = vmatpush1.bf16.msra.mxu1 %v9569_v51  ;;  %884 = vmatprep.mubr.bf16.mxu1 %v14404_v0 }
  0x31   :  { %934 = vmatprep.subr.bf16.mxu1 %v9574_v54  ;;  %976 = vmatpush1.bf16.msra.mxu0 %v9575_v55 }
  0x32   :  { %1007 = vmatprep.mubr.bf16.mxu0 %v14404_v0  ;;  %1057 = vmatprep.subr.bf16.mxu0 %v9580_v56 }
  0x37   :  { %9592 = vmatmul.mubr.msk.bf16.vlgmr.msra.gmra.mrb[20].mxu1 %vm479_vm0, %v11832_v13  ;;  %9595 = vmatmul.mubr.msk.bf16.vlgmr.msra.gmra.mrb[20].mxu0 %vm479_vm0, %v11832_v13 }
  0x38   :  { %935 = vmatpush1.bf16.msra.mxu1 %v9573_v59  ;;  %966 = vmatprep.mubr.bf16.mxu1 %v14404_v0  ;;  %v218_v59 = vrot.slane %v132_v37, %v11913_v7  ;;  %v234_v37 = vrot.slane %v136_v10, %v11913_v7 }
  0x39   :  { %1016 = vmatprep.subr.bf16.mxu1 %v9578_v60  ;;  %1058 = vmatpush1.bf16.msra.mxu0 %v9579_v61  ;;  %v138_v61 = vld [vmem:[%s11919_s17 + $0x60] sm:$0x3f] }
  0x3a   :  { %1089 = vmatprep.mubr.bf16.mxu0 %v14404_v0  ;;  %10246 = vmatprep.subr.bf16.mxu0 %v11117_v6 }
  0x3f   :  { %9594 = vmatmul.mubr.msk.bf16.vlgmr.msra.gmra.mrb[24].mxu1 %vm479_vm0, %v11832_v13  ;;  %9597 = vmatmul.mubr.msk.bf16.vlgmr.msra.gmra.mrb[24].mxu0 %vm479_vm0, %v11832_v13 }
  0x40   :  { %1017 = vmatpush1.bf16.msra.mxu1 %v9577_v1  ;;  %1048 = vmatprep.mubr.bf16.mxu1 %v14404_v0  ;;  %v222_v1 = vrot.slane %v133_v42, %v11913_v7  ;;  %v238_v42 = vrot.slane %v137_v16, %v11913_v7 }
  0x41   :  { %1098 = vmatprep.subr.bf16.mxu1 %v9582_v2  ;;  %v230_v2 = vrot.slane %v135_v43, %v11913_v7 }
  0x47   :  { %9596 = vmatmul.mubr.msk.bf16.vlgmr.msra.gmra.mrb[28].mxu1 %vm479_vm0, %v11832_v13 }
  0x48   :  { %1099 = vmatpush1.bf16.msra.mxu1 %v9581_v3  ;;  %1130 = vmatprep.mubr.bf16.mxu1 %v14404_v0 }
  0x49   :  { %10268 = vmatprep.subr.bf16.mxu1 %v11118_v8 }
  0x4f   :  { %9598 = vmatmul.mubr.msk.bf16.vlgmr.msra.gmra.mrb[32].mxu1 %vm479_vm0, %v11832_v13  ;;  %v12489_v13 = vld [vmem:[%s11919_s17 + $0xd8] sm:$0x3f] }
  0xe2   :  { %v517_v15 = vpop.f32.mrb[0].mxu1  ;;  %v599_v22 = vpop.f32.mrb[0].mxu0 }
  0xe3   :  { %v518_v17 = vadd.f32 %v517_v15, %v194_v11  ;;  %v519_v18 = vpop.f32.mrb[1].mxu1  ;;  %v601_v26 = vpop.f32.mrb[1].mxu0  ;;  %v600_v35 = vadd.f32 %v599_v22, %v210_v24  ;;  %v242_v22 = vrot.slane %v138_v61, %v11913_v7 }
  0xe4   :  { %v520_v20 = vadd.f32 %v519_v18, %v198_v12  ;;  %v521_v21 = vpop.f32.mrb[2].mxu1  ;;  %v603_v28 = vpop.f32.mrb[2].mxu0  ;;  %v602_v46 = vadd.f32 %v601_v26, %v214_v33 }
  0xe5   :  { %v522_v23 = vpop.f32.mrb[3].mxu1  ;;  %v11930_v27 = vmax.f32 %v518_v17, 0.0  ;;  %v604_v31 = vpop.f32.mrb[3].mxu0  ;;  %v11949_v50 = vmax.f32 %v600_v35, 0.0  ;;  %v139_v17 = vld [vmem:[%s11919_s17 + $0x68] sm:$0x3f] }
  0xe6   :  { %v11932_v29 = vmax.f32 %v520_v20, 0.0  ;;  %v11961_v63 = vmax.f32 %v602_v46, 0.0  ;;  %v246_v43 = vrot.slane %v139_v17, %v11913_v7 }
  0xe7   :  { %v1206_v38 = vmul.f32 %v11930_v27, %v11930_v27  ;;  %14427 = vst [vmem:[#allocation4_spill] sm:$0xff] %v11949_v50  ;;  %v1210_v6 = vmul.f32 %v11949_v50, %v11949_v50 }
  0xe8   :  { %v1207_v39 = vmul.f32 %v11932_v29, %v11932_v29  ;;  %v1171_v48 = vadd.f32 %v11932_v29, %v11930_v27  ;;  %v1211_v18 = vmul.f32 %v11961_v63, %v11961_v63 }
  0xea   :  { %v558_v36 = vpop.f32.mrb[4].mxu1  ;;  %v681_v47 = vpop.f32.mrb[4].mxu0  ;;  %v1238_v56 = vadd.f32 %v1207_v39, %v1206_v38  ;;  %v142_v39 = vld [vmem:[%s11919_s17 + $0x80] sm:$0x3f] }
  0xeb   :  { %v559_v40 = vadd.f32 %v558_v36, %v202_v30  ;;  %v560_v41 = vpop.f32.mrb[5].mxu1  ;;  %v683_v53 = vpop.f32.mrb[5].mxu0  ;;  %v682_v8 = vadd.f32 %v681_v47, %v226_v52 }
  0xec   :  { %v561_v44 = vadd.f32 %v560_v41, %v206_v32  ;;  %v562_v45 = vpop.f32.mrb[6].mxu1  ;;  %v685_v55 = vpop.f32.mrb[6].mxu0  ;;  %v684_v21 = vadd.f32 %v683_v53, %v230_v2 }
  0xed   :  { %v11947_v49 = vmax.f32 %v559_v40, 0.0  ;;  %v563_v51 = vpop.f32.mrb[7].mxu1  ;;  %v686_v60 = vpop.f32.mrb[7].mxu0  ;;  %v11978_v28 = vmax.f32 %v682_v8, 0.0 }
  0xee   :  { %v11952_v54 = vmax.f32 %v561_v44, 0.0  ;;  %v11989_v41 = vmax.f32 %v684_v21, 0.0  ;;  %v140_v51 = vld [vmem:[%s11919_s17 + $0x70] sm:$0x3f] }
  0xef   :  { %v1172_v57 = vadd.f32 %v1171_v48, %v11947_v49  ;;  %v1208_v58 = vmul.f32 %v11947_v49, %v11947_v49  ;;  %v1214_v46 = vmul.f32 %v11978_v28, %v11978_v28  ;;  %v250_v17 = vrot.slane %v140_v51, %v11913_v7 }
  0xf0   :  { %v1209_v62 = vmul.f32 %v11952_v54, %v11952_v54  ;;  %14429 = vst [vmem:[#allocation6_spill] sm:$0xff] %v11989_v41 }
  0xf1   :  { %v1239_v3 = vadd.f32 %v1238_v56, %v1208_v58  ;;  %v1173_v4 = vadd.f32 %v1172_v57, %v11952_v54  ;;  %v141_v57 = vld [vmem:[%s11919_s17 + $0x78] sm:$0x3f]  ;;  %v143_v58 = vld [vmem:[%s11919_s17 + $0x88] sm:$0x3f] }
  0xf2   :  { %v640_v9 = vpop.f32.mrb[8].mxu1  ;;  %v763_v23 = vpop.f32.mrb[8].mxu0 }
  0xf3   :  { %v1240_v11 = vadd.f32 %v1239_v3, %v1209_v62  ;;  %v1174_v12 = vadd.f32 %v1173_v4, %v11949_v50  ;;  %v641_v14 = vadd.f32 %v640_v9, %v218_v59  ;;  %v642_v15 = vpop.f32.mrb[9].mxu1  ;;  %v765_v31 = vpop.f32.mrb[9].mxu0  ;;  %v764_v47 = vadd.f32 %v763_v23, %v242_v22 }
  0xf4   :  { %v643_v19 = vadd.f32 %v642_v15, %v222_v1  ;;  %v644_v20 = vpop.f32.mrb[10].mxu1  ;;  %v767_v33 = vpop.f32.mrb[10].mxu0  ;;  %v1215_v59 = vmul.f32 %v11989_v41, %v11989_v41  ;;  %v766_v62 = vadd.f32 %v765_v31, %v246_v43  ;;  %v258_v1 = vrot.slane %v142_v39, %v11913_v7  ;;  %v145_v39 = vld [vmem:[%s11919_s17 + $0x98] sm:$0x3f] }
  0xf5   :  { %v1241_v24 = vadd.f32 %v1240_v11, %v1210_v6  ;;  %v1175_v25 = vadd.f32 %v1174_v12, %v11961_v63  ;;  %v11976_v26 = vmax.f32 %v641_v14, 0.0  ;;  %v645_v30 = vpop.f32.mrb[11].mxu1  ;;  %v768_v38 = vpop.f32.mrb[11].mxu0  ;;  %v12006_v8 = vmax.f32 %v764_v47, 0.0 }
  0xf6   :  { %v11980_v32 = vmax.f32 %v643_v19, 0.0  ;;  %v146_v19 = vld [vmem:[%s11919_s17 + $0xa0] sm:$0x3f]  ;;  %v12017_v21 = vmax.f32 %v766_v62, 0.0  ;;  %v254_v22 = vrot.slane %v141_v57, %v11913_v7  ;;  %v262_v23 = vrot.slane %v143_v58, %v11913_v7 }
  0xf7   :  { %14428 = vst [vmem:[#allocation5_spill] sm:$0xff] %v11976_v26  ;;  %v1242_v34 = vadd.f32 %v1241_v24, %v1211_v18  ;;  %v1176_v35 = vadd.f32 %v1175_v25, %v11976_v26  ;;  %v1212_v36 = vmul.f32 %v11976_v26, %v11976_v26  ;;  %v1218_v30 = vmul.f32 %v12006_v8, %v12006_v8 }
  0xf8   :  { %v1213_v40 = vmul.f32 %v11980_v32, %v11980_v32 }
  0xf9   :  { %v1243_v44 = vadd.f32 %v1242_v34, %v1212_v36  ;;  %v1177_v45 = vadd.f32 %v1176_v35, %v11980_v32  ;;  %v144_v34 = vld [vmem:[%s11919_s17 + $0x90] sm:$0x3f] }
  0xfa   :  { %v722_v48 = vpop.f32.mrb[12].mxu1  ;;  %v845_v2 = vpop.f32.mrb[12].mxu0  ;;  %v266_v62 = vrot.slane %v144_v34, %v11913_v7 }
  0xfb   :  { %v1244_v52 = vadd.f32 %v1243_v44, %v1213_v40  ;;  %v1178_v53 = vadd.f32 %v1177_v45, %v11978_v28  ;;  %v723_v55 = vadd.f32 %v722_v48, %v234_v37  ;;  %v724_v56 = vpop.f32.mrb[13].mxu1  ;;  %v847_v10 = vpop.f32.mrb[13].mxu0  ;;  %v846_v31 = vadd.f32 %v845_v2, %v258_v1  ;;  %v147_v40 = vld [vmem:[%s11919_s17 + $0xa8] sm:$0x3f]  ;;  %v150_v2 = vld [vmem:[%s11919_s17 + $0xc0] sm:$0x3f] }
  0xfc   :  { %v725_v60 = vadd.f32 %v724_v56, %v238_v42  ;;  %v726_v61 = vpop.f32.mrb[14].mxu1  ;;  %v849_v12 = vpop.f32.mrb[14].mxu0  ;;  %v1219_v42 = vmul.f32 %v12017_v21, %v12017_v21  ;;  %v848_v45 = vadd.f32 %v847_v10, %v262_v23  ;;  %v278_v10 = vrot.slane %v147_v40, %v11913_v7 }
  0xfd   :  { %v1245_v3 = vadd.f32 %v1244_v52, %v1214_v46  ;;  %v1179_v4 = vadd.f32 %v1178_v53, %v11989_v41  ;;  %v12004_v6 = vmax.f32 %v723_v55, 0.0  ;;  %v727_v9 = vpop.f32.mrb[15].mxu1  ;;  %v850_v18 = vpop.f32.mrb[15].mxu0  ;;  %v274_v46 = vrot.slane %v146_v19, %v11913_v7 }
  0xfe   :  { %v12008_v11 = vmax.f32 %v725_v60, 0.0  ;;  %v12034_v53 = vmax.f32 %v846_v31, 0.0  ;;  %v270_v9 = vrot.slane %v145_v39, %v11913_v7  ;;  %v12053_v18 = vld [vmem:[%s11919_s17 + $0xb0] sm:$0x3f] }
  0xff   :  { %v1246_v14 = vadd.f32 %v1245_v3, %v1215_v59  ;;  %v1180_v15 = vadd.f32 %v1179_v4, %v12004_v6  ;;  %v1216_v16 = vmul.f32 %v12004_v6, %v12004_v6  ;;  %v12045_v4 = vmax.f32 %v848_v45, 0.0 }
 0x100   :  { %14430 = vst [vmem:[#allocation7_spill] sm:$0xff] %v12008_v11  ;;  %v1217_v20 = vmul.f32 %v12008_v11, %v12008_v11 }
 0x101   :  { %v1247_v24 = vadd.f32 %v1246_v14, %v1216_v16  ;;  %v1181_v25 = vadd.f32 %v1180_v15, %v12008_v11  ;;  %v1222_v15 = vmul.f32 %v12034_v53, %v12034_v53 }
 0x102   :  { %v804_v33 = vpop.f32.mrb[16].mxu1  ;;  %v927_v47 = vpop.f32.mrb[16].mxu0 }
 0x103   :  { %v1248_v35 = vadd.f32 %v1247_v24, %v1217_v20  ;;  %v1182_v36 = vadd.f32 %v1181_v25, %v12006_v8  ;;  %v805_v37 = vadd.f32 %v804_v33, %v250_v17  ;;  %v806_v38 = vpop.f32.mrb[17].mxu1  ;;  %v929_v56 = vpop.f32.mrb[17].mxu0  ;;  %v928_v16 = vadd.f32 %v927_v47, %v274_v46  ;;  %v149_v24 = vld [vmem:[%s11919_s17 + $0xb8] sm:$0x3f]  ;;  %v151_v25 = vld [vmem:[%s11919_s17 + $0xc8] sm:$0x3f] }
 0x104   :  { %v807_v43 = vadd.f32 %v806_v38, %v254_v22  ;;  %v808_v44 = vpop.f32.mrb[18].mxu1  ;;  %v931_v58 = vpop.f32.mrb[18].mxu0  ;;  %v930_v34 = vadd.f32 %v929_v56, %v278_v10  ;;  %v12074_v56 = vld [vmem:[%s11919_s17 + $0xe0] sm:$0x3f] }
 0x105   :  { %v1249_v48 = vadd.f32 %v1248_v35, %v1218_v30  ;;  %v1183_v51 = vadd.f32 %v1182_v36, %v12017_v21  ;;  %v12032_v52 = vmax.f32 %v805_v37, 0.0  ;;  %v809_v55 = vpop.f32.mrb[19].mxu1  ;;  %v932_v1 = vpop.f32.mrb[19].mxu0  ;;  %v1223_v30 = vmul.f32 %v12045_v4, %v12045_v4 }
 0x106   :  { %v12036_v57 = vmax.f32 %v807_v43, 0.0  ;;  %v290_v35 = vrot.slane %v150_v2, %v11913_v7  ;;  %v12064_v40 = vmax.f32 %v928_v16, 0.0 }
 0x107   :  { %v1250_v59 = vadd.f32 %v1249_v48, %v1219_v42  ;;  %v1184_v60 = vadd.f32 %v1183_v51, %v12032_v52  ;;  %v1220_v61 = vmul.f32 %v12032_v52, %v12032_v52  ;;  %v282_v51 = vrot.slane %v12053_v18, %v11913_v7 }
 0x108   :  { %v1221_v3 = vmul.f32 %v12036_v57, %v12036_v57  ;;  %v1226_v2 = vmul.f32 %v12064_v40, %v12064_v40 }
 0x109   :  { %v1251_v12 = vadd.f32 %v1250_v59, %v1220_v61  ;;  %v1185_v14 = vadd.f32 %v1184_v60, %v12036_v57  ;;  %v12078_v59 = vmax.f32 %v930_v34, 0.0  ;;  %v286_v60 = vrot.slane %v149_v24, %v11913_v7 }
 0x10a   :  { %v886_v17 = vpop.f32.mrb[20].mxu1  ;;  %v1009_v36 = vpop.f32.mrb[20].mxu0  ;;  %v294_v61 = vrot.slane %v151_v25, %v11913_v7  ;;  %v306_v25 = vrot.slane %v12074_v56, %v11913_v7 }
 0x10b   :  { %v1252_v19 = vadd.f32 %v1251_v12, %v1221_v3  ;;  %v1186_v20 = vadd.f32 %v1185_v14, %v12034_v53  ;;  %v887_v22 = vadd.f32 %v886_v17, %v266_v62  ;;  %v888_v23 = vpop.f32.mrb[21].mxu1  ;;  %v1011_v43 = vpop.f32.mrb[21].mxu0  ;;  %v1010_v3 = vadd.f32 %v1009_v36, %v290_v35  ;;  %v12087_v12 = vld [vmem:[%s11919_s17 + $0xd0] sm:$0x3f] }
 0x10c   :  { %v889_v31 = vadd.f32 %v888_v23, %v270_v9  ;;  %v890_v33 = vpop.f32.mrb[22].mxu1  ;;  %v1013_v45 = vpop.f32.mrb[22].mxu0  ;;  %v155_v9 = vld [vmem:[%s11919_s17 + $0xe8] sm:$0x3f]  ;;  %v1012_v24 = vadd.f32 %v1011_v43, %v294_v61 }
 0x10d   :  { %v1253_v37 = vadd.f32 %v1252_v19, %v1222_v15  ;;  %v1187_v38 = vadd.f32 %v1186_v20, %v12045_v4  ;;  %v12062_v39 = vmax.f32 %v887_v22, 0.0  ;;  %v891_v42 = vpop.f32.mrb[23].mxu1  ;;  %v1014_v55 = vpop.f32.mrb[23].mxu0  ;;  %v153_v19 = vld [vmem:[%s11919_s17 + $0xd8] sm:$0x3f]  ;;  %v1227_v20 = vmul.f32 %v12078_v59, %v12078_v59 }
 0x10e   :  { %v12066_v44 = vmax.f32 %v889_v31, 0.0  ;;  %v12098_v35 = vmax.f32 %v1010_v3, 0.0  ;;  %v310_v42 = vrot.slane %v155_v9, %v11913_v7 }
 0x10f   :  { %v1254_v46 = vadd.f32 %v1253_v37, %v1223_v30  ;;  %v1188_v47 = vadd.f32 %v1187_v38, %v12062_v39  ;;  %v1224_v48 = vmul.f32 %v12062_v39, %v12062_v39 }
 0x110   :  { %v1225_v58 = vmul.f32 %v12066_v44, %v12066_v44 }
 0x111   :  { %v1255_v62 = vadd.f32 %v1254_v46, %v1224_v48  ;;  %v1189_v1 = vadd.f32 %v1188_v47, %v12066_v44  ;;  %v298_v48 = vrot.slane %v12087_v12, %v11913_v7 }
 0x112   :  { %v968_v10 = vpop.f32.mrb[24].mxu1  ;;  %v1091_v30 = vpop.f32.mrb[24].mxu0 }
 0x113   :  { %v1256_v14 = vadd.f32 %v1255_v62, %v1225_v58  ;;  %v1190_v15 = vadd.f32 %v1189_v1, %v12064_v40  ;;  %v969_v16 = vadd.f32 %v968_v10, %v282_v51  ;;  %v970_v17 = vpop.f32.mrb[25].mxu1  ;;  %v1093_v37 = vpop.f32.mrb[25].mxu0  ;;  %v12110_v58 = vmax.f32 %v1012_v24, 0.0  ;;  %v12117_v10 = vld [vmem:[%s11919_s17 + $0xf0] sm:$0x3f] }
 0x114   :  { %v971_v22 = vadd.f32 %v970_v17, %v286_v60  ;;  %v972_v23 = vpop.f32.mrb[26].mxu1  ;;  %v1095_v45 = vpop.f32.mrb[26].mxu0  ;;  %v302_v60 = vrot.slane %v153_v19, %v11913_v7  ;;  %v1092_v61 = vadd.f32 %v1091_v30, %v306_v25  ;;  %v1094_v9 = vadd.f32 %v1093_v37, %v310_v42  ;;  %14431 = vst [vmem:[#allocation8_spill] sm:$0xff] %v12117_v10 }
 0x115   :  { %v1257_v31 = vadd.f32 %v1256_v14, %v1226_v2  ;;  %v1191_v33 = vadd.f32 %v1190_v15, %v12078_v59  ;;  %v12096_v34 = vmax.f32 %v969_v16, 0.0  ;;  %v973_v36 = vpop.f32.mrb[27].mxu1  ;;  %v1096_v51 = vpop.f32.mrb[27].mxu0  ;;  %v1230_v2 = vmul.f32 %v12098_v35, %v12098_v35 }
 0x116   :  { %v12100_v38 = vmax.f32 %v971_v22, 0.0  ;;  %v12121_v23 = vmax.f32 %v1092_v61, 0.0  ;;  %v1231_v30 = vmul.f32 %v12110_v58, %v12110_v58  ;;  %v12130_v37 = vmax.f32 %v1094_v9, 0.0 }
 0x117   :  { %v1258_v43 = vadd.f32 %v1257_v31, %v1227_v20  ;;  %v1192_v46 = vadd.f32 %v1191_v33, %v12096_v34  ;;  %v1228_v47 = vmul.f32 %v12096_v34, %v12096_v34  ;;  %v157_v20 = vld [vmem:[%s11919_s17 + $0xf8] sm:$0x3f] }
 0x118   :  { %v1229_v55 = vmul.f32 %v12100_v38, %v12100_v38 }
 0x119   :  { %v1259_v62 = vadd.f32 %v1258_v43, %v1228_v47  ;;  %v1193_v1 = vadd.f32 %v1192_v46, %v12100_v38  ;;  %v314_v46 = vrot.slane %v12117_v10, %v11913_v7 }
 0x11a   :  { %v1050_v3 = vpop.f32.mrb[28].mxu1 }
 0x11b   :  { %v1260_v14 = vadd.f32 %v1259_v62, %v1229_v55  ;;  %v1194_v15 = vadd.f32 %v1193_v1, %v12098_v35  ;;  %v1051_v16 = vadd.f32 %v1050_v3, %v298_v48  ;;  %v1052_v17 = vpop.f32.mrb[29].mxu1  ;;  %v318_v48 = vrot.slane %v157_v20, %v11913_v7 }
 0x11c   :  { %v1053_v22 = vadd.f32 %v1052_v17, %v302_v60  ;;  %v1054_v19 = vpop.f32.mrb[30].mxu1  ;;  %v1234_v60 = vmul.f32 %v12121_v23, %v12121_v23 }
 0x11d   :  { %v1261_v24 = vadd.f32 %v1260_v14, %v1230_v2  ;;  %v1195_v25 = vadd.f32 %v1194_v15, %v12110_v58  ;;  %v12126_v31 = vmax.f32 %v1051_v16, 0.0  ;;  %v1055_v33 = vpop.f32.mrb[31].mxu1  ;;  %v1235_v15 = vmul.f32 %v12130_v37, %v12130_v37 }
 0x11e   :  { %v12128_v36 = vmax.f32 %v1053_v22, 0.0 }
 0x11f   :  { %v1262_v42 = vadd.f32 %v1261_v24, %v1231_v30  ;;  %v1196_v45 = vadd.f32 %v1195_v25, %v12126_v31  ;;  %v1232_v43 = vmul.f32 %v12126_v31, %v12126_v31 }
 0x120   :  { %v1233_v47 = vmul.f32 %v12128_v36, %v12128_v36 }
 0x121   :  { %v1263_v51 = vadd.f32 %v1262_v42, %v1232_v43  ;;  %v1197_v55 = vadd.f32 %v1196_v45, %v12128_v36  ;;  %v11119_v43 = vld [vmem:[%s11907_s13] sm:$0xff]  }
 0x122   :  { %v1132_v61 = vpop.f32.mrb[32].mxu1  ;;  %10247 = vmatpush3.bf16.msra.mxu0 %v11119_v43  ;;  %v11144_v43 = vld [vmem:[%s11907_s13 + $0xb0] sm:$0xff]  }
 0x123   :  { %v1264_v62 = vadd.f32 %v1263_v51, %v1233_v47  ;;  %v1198_v1 = vadd.f32 %v1197_v55, %v12121_v23  ;;  %v1133_v2 = vadd.f32 %v1132_v61, %v314_v46  ;;  %v1134_v3 = vpop.f32.mrb[33].mxu1  ;;  %v11120_v46 = vld [vmem:[%s11907_s13 + $0x80] sm:$0xff]   ;;  %v11121_v47 = vld [vmem:[%s11907_s13 + $0x48] sm:$0xff]   ;;  %v11126_v61 = vld [vmem:[%s11907_s13 + $0xd0] sm:$0xff]  }
 0x124   :  { %v1135_v9 = vadd.f32 %v1134_v3, %v318_v48  ;;  %v1136_v14 = vpop.f32.mrb[34].mxu1  ;;  %10269 = vmatpush3.bf16.msra.mxu1 %v11120_v46  ;;  %v11122_v48 = vld [vmem:[%s11907_s13 + $0xc8] sm:$0xff]   ;;  %10248 = vmatprep.subr.bf16.mxu0 %v11121_v47  ;;  %v11130_v3 = vld [vmem:[%s11907_s13 + $0xd8] sm:$0xff]  }
 0x125   :  { %v12146_v7 = vmax.f32 %v1133_v2, 0.0  ;;  %v1137_v16 = vpop.f32.mrb[35].mxu1  ;;  %v1199_v17 = vadd.f32 %v1198_v1, %v12130_v37  ;;  %v1265_v20 = vadd.f32 %v1264_v62, %v1234_v60  ;;  %10270 = vmatprep.subr.bf16.mxu1 %v11122_v48  ;;  %v11123_v51 = vld [vmem:[%s11907_s13 + $0x8] sm:$0xff]   ;;  %v11125_v60 = vld [vmem:[%s11907_s13 + $0x50] sm:$0xff]   ;;  %v11129_v2 = vld [vmem:[%s11907_s13 + $0x58] sm:$0xff]  }
 0x126   :  { %v12149_v22 = vmax.f32 %v1135_v9, 0.0  ;;  %v11124_v55 = vld [vmem:[%s11907_s13 + $0x88] sm:$0xff]   ;;  %10249 = vmatpush3.bf16.msra.mxu0 %v11123_v51  ;;  %v11127_v62 = vld [vmem:[%s11907_s13 + $0x10] sm:$0xff]   ;;  %v11131_v9 = vld [vmem:[%s11907_s13 + $0x18] sm:$0xff]  }
 0x127   :  { %v1200_v19 = vadd.f32 %v1199_v17, %v12146_v7  ;;  %v1236_v24 = vmul.f32 %v12146_v7, %v12146_v7  ;;  %v1266_v25 = vadd.f32 %v1265_v20, %v1235_v15  ;;  %v11128_v1 = vld [vmem:[%s11907_s13 + $0x90] sm:$0xff]   ;;  %10250 = vmatprep.subr.bf16.mxu0 %v11125_v60  ;;  %v11132_v14 = vld [vmem:[%s11907_s13 + $0x98] sm:$0xff]   ;;  %v11133_v15 = vld [vmem:[%s11907_s13 + $0x60] sm:$0xff]  }
 0x128   :  { %v1237_v33 = vmul.f32 %v12149_v22, %v12149_v22  ;;  %10271 = vmatpush3.bf16.msra.mxu1 %v11124_v55  ;;  %v11134_v16 = vld [vmem:[%s11907_s13 + $0xe0] sm:$0xff]   ;;  %v11145_v46 = vld [vmem:[%s11907_s13 + $0x78] sm:$0xff]  }
 0x129   :  { %v1201_v30 = vadd.f32 %v1200_v19, %v12149_v22  ;;  %v1267_v42 = vadd.f32 %v1266_v25, %v1236_v24  ;;  %10272 = vmatprep.subr.bf16.mxu1 %v11126_v61  ;;  %v11135_v17 = vld [vmem:[%s11907_s13 + $0x20] sm:$0xff]   ;;  %v11137_v19 = vld [vmem:[%s11907_s13 + $0x68] sm:$0xff]   ;;  %v11146_v47 = vld [vmem:[%s11907_s13 + $0xf8] sm:$0xff]  }
 0x12a   :  { %10251 = vmatpush3.bf16.msra.mxu0 %v11127_v62  ;;  %v11136_v20 = vld [vmem:[%s11907_s13 + $0xa0] sm:$0xff]   ;;  %v11138_v24 = vld [vmem:[%s11907_s13 + $0xe8] sm:$0xff]   ;;  %v11147_v48 = vld [vmem:[%s11907_s13 + $0x38] sm:$0xff]  }
 0x12b   :  { %1202 = vadd.xlane.f32.xlu0 %v1201_v30  ;;  %v1268_v45 = vadd.f32 %v1267_v42, %v1237_v33  ;;  %10252 = vmatprep.subr.bf16.mxu0 %v11129_v2  ;;  %v11139_v25 = vld [vmem:[%s11907_s13 + $0x28] sm:$0xff]   ;;  %v11141_v33 = vld [vmem:[%s11907_s13 + $0x70] sm:$0xff]   ;;  %v11148_v51 = vld [vmem:[%s11907_s13 + $0xb8] sm:$0xff]   ;;  %v12192_v2 = vsub.s32 1, %v11909_v5 }
 0x12c   :  { %10273 = vmatpush3.bf16.msra.mxu1 %v11128_v1  ;;  %v11140_v30 = vld [vmem:[%s11907_s13 + $0xa8] sm:$0xff]   ;;  %v11142_v42 = vld [vmem:[%s11907_s13 + $0xf0] sm:$0xff]   ;;  %v11149_v55 = vld [vmem:[%s11907_s13 + $0x140] sm:$0xff]  }
 0x12d   :  { %10274 = vmatprep.subr.bf16.mxu1 %v11130_v3  ;;  %v11150_v60 = vld [vmem:[%s11907_s13 + $0x1c0] sm:$0xff]  }
 0x12e   :  { %10253 = vmatpush3.bf16.msra.mxu0 %v11131_v9 }
 0x12f   :  { %1269 = vadd.xlane.f32.xlu0 %v1268_v45  ;;  %10254 = vmatprep.subr.bf16.mxu0 %v11133_v15  ;;  %v11143_v45 = vld [vmem:[%s11907_s13 + $0x30] sm:$0xff]   ;;  %v12197_v15 = vld [vmem:[%s11919_s17] sm:$0x3f] }
 0x130   :  { %10275 = vmatpush3.bf16.msra.mxu1 %v11132_v14 }
 0x131   :  { %10276 = vmatprep.subr.bf16.mxu1 %v11134_v16 }
 0x132   :  { %10255 = vmatpush3.bf16.msra.mxu0 %v11135_v17  ;;  %v12202_v17 = vld [vmem:[%s11919_s17 + $0x10] sm:$0x3f] }
 0x133   :  { %10256 = vmatprep.subr.bf16.mxu0 %v11137_v19  ;;  %v12207_v19 = vld [vmem:[%s11919_s17 + $0x40] sm:$0x3f] }
 0x134   :  { %10277 = vmatpush3.bf16.msra.mxu1 %v11136_v20  ;;  %v12324_v20 = vld [vmem:[%s11919_s17 + $0xa8] sm:$0x3f] }
 0x135   :  { %10278 = vmatprep.subr.bf16.mxu1 %v11138_v24 }
 0x136   :  { %10257 = vmatpush3.bf16.msra.mxu0 %v11139_v25 }
 0x137   :  { %10258 = vmatprep.subr.bf16.mxu0 %v11141_v33  ;;  %v12310_v33 = vld [vmem:[%s11919_s17 + $0x88] sm:$0x3f] }
 0x138   :  { %10279 = vmatpush3.bf16.msra.mxu1 %v11140_v30  ;;  %v12212_v30 = vld [vmem:[%s11919_s17 + $0x50] sm:$0x3f] }
 0x139   :  { %10280 = vmatprep.subr.bf16.mxu1 %v11142_v42  ;;  %v12217_v42 = vld [vmem:[%s11919_s17 + $0x60] sm:$0x3f] }
 0x13a   :  { %10259 = vmatpush3.bf16.msra.mxu0 %v11143_v45  ;;  %v12277_v45 = vld [vmem:[%s11919_s17 + $0x38] sm:$0x3f] }
 0x13b   :  { %10260 = vmatprep.subr.bf16.mxu0 %v11145_v46  ;;  %v12272_v46 = vld [vmem:[%s11919_s17 + $0x28] sm:$0x3f] }
 0x13c   :  { %10281 = vmatpush3.bf16.msra.mxu1 %v11144_v43  ;;  %v12222_v43 = vld [vmem:[%s11919_s17 + $0x70] sm:$0x3f] }
 0x13d   :  { %10282 = vmatprep.subr.bf16.mxu1 %v11146_v47  ;;  %v12227_v47 = vsub.s32 2, %v11909_v5  ;;  %v12319_v5 = vld [vmem:[%s11919_s17 + $0x98] sm:$0x3f] }
 0x13e   :  { %10261 = vmatpush3.bf16.msra.mxu0 %v11147_v48  ;;  %v12230_v48 = vld [vmem:[%s11919_s17 + $0x80] sm:$0x3f] }
 0x13f   :  { %10290 = vmatprep.subr.bf16.mxu0 %v11149_v55  ;;  %v12235_v55 = vld [vmem:[%s11919_s17 + $0x90] sm:$0x3f] }
 0x140   :  { %10283 = vmatpush3.bf16.msra.mxu1 %v11148_v51  ;;  %v12299_v51 = vld [vmem:[%s11919_s17 + $0x78] sm:$0x3f] }
 0x141   :  { %10312 = vmatprep.subr.bf16.mxu1 %v11150_v60 }
 0x1b8   :  { %v1203_v61 = vpop.xlane.xlu0 %1202 }
 0x1b9   :  { %v12189_v62 = vmul.f32 0.00024414063, %v1203_v61  ;;  %v12240_v61 = vld [vmem:[%s11919_s17 + $0xa0] sm:$0x3f] }
 0x1bb   :  { %14432 = vst [vmem:[#allocation9_spill] sm:$0xff] %v12189_v62  ;;  %v1272_v3 = vmul.f32 %v12189_v62, %v12189_v62  ;;  %v1275_v11 = vsub.f32 %v11930_v27, %v12189_v62  ;;  %v1276_v16 = vsub.f32 %v11932_v29, %v12189_v62  ;;  %v1277_v24 = vsub.f32 %v11947_v49, %v12189_v62 }
 0x1bc   :  { %v1270_v1 = vpop.xlane.xlu0 %1269  ;;  %v1278_v60 = vsub.f32 %v11952_v54, %v12189_v62  ;;  %v1280_v0 = vsub.f32 %v11961_v63, %v12189_v62  ;;  %v1282_v41 = vsub.f32 %v11980_v32, %v12189_v62  ;;  %v1285_v27 = vsub.f32 %v12004_v6, %v12189_v62 }
 0x1bd   :  { %v1271_v9 = vmul.f32 0.00024414063, %v1270_v1  ;;  %v12263_v1 = vld [vmem:[%s11919_s17 + $0x18] sm:$0x3f]  ;;  %v1287_v29 = vsub.f32 %v12006_v8, %v12189_v62  ;;  %v1288_v49 = vsub.f32 %v12017_v21, %v12189_v62  ;;  %v1289_v54 = vsub.f32 %v12032_v52, %v12189_v62 }
 0x1be   :  { %v1290_v63 = vsub.f32 %v12036_v57, %v12189_v62  ;;  %v1291_v32 = vsub.f32 %v12034_v53, %v12189_v62  ;;  %v1293_v6 = vsub.f32 %v12062_v39, %v12189_v62  ;;  %v1294_v8 = vsub.f32 %v12066_v44, %v12189_v62 }
 0x1bf   :  { %v1273_v14 = vsub.f32 %v1271_v9, %v1272_v3  ;;  %v12294_v9 = vld [vmem:[%s11919_s17 + $0x68] sm:$0x3f]  ;;  %v1295_v21 = vsub.f32 %v12064_v40, %v12189_v62  ;;  %v1296_v52 = vsub.f32 %v12078_v59, %v12189_v62  ;;  %v1297_v53 = vsub.f32 %v12096_v34, %v12189_v62 }
 0x1c0   :  { %v1298_v57 = vsub.f32 %v12100_v38, %v12189_v62  ;;  %v1300_v39 = vsub.f32 %v12110_v58, %v12189_v62  ;;  %v1301_v44 = vsub.f32 %v12126_v31, %v12189_v62  ;;  %v1302_v40 = vsub.f32 %v12128_v36, %v12189_v62 }
 0x1c1   :  { %v1274_v25 = vmax.f32 %v1273_v14, 0.0  ;;  %v12247_v14 = vld [vmem:[%s11919_s17 + $0xc0] sm:$0x3f]  ;;  %v1303_v59 = vsub.f32 %v12121_v23, %v12189_v62  ;;  %v1304_v34 = vsub.f32 %v12130_v37, %v12189_v62  ;;  %v1305_v38 = vsub.f32 %v12146_v7, %v12189_v62 }
 0x1c3   :  { %v1307_v3 = vadd.f32 1e-12, %v1274_v25  ;;  %v12258_v25 = vld [vmem:[%s11919_s17 + $0x8] sm:$0x3f] }
 0x1c5   :  { %11665 = vrsqrt.f32 %v1307_v3  ;;  %v1283_v3 = vsub.f32 %v11978_v28, %v12189_v62  ;;  %v1292_v28 = vsub.f32 %v12045_v4, %v12189_v62  ;;  %v1299_v4 = vsub.f32 %v12098_v35, %v12189_v62 }
 0x1c6   :  { %v1306_v35 = vsub.f32 %v12149_v22, %v12189_v62 }
 0x1cf   :  { %v12360_v26 = vpop.eup %11665 }
 0x1d0   :  { %14433 = vst [vmem:[#allocation10_spill] sm:$0xff] %v12360_v26  ;;  %v1309_v58 = vmul.f32 %v12360_v26, %v1275_v11  ;;  %v1311_v50 = vmul.f32 %v12360_v26, %v1277_v24  ;;  %v1317_v31 = vmul.f32 %v12360_v26, %v1283_v3  ;;  %v1319_v36 = vmul.f32 %v12360_v26, %v1285_v27 }
 0x1d1   :  { %v12391_v10 = vmul.f32 %v12360_v26, %v1287_v29  ;;  %v12394_v23 = vmul.f32 %v12360_v26, %v1288_v49  ;;  %v12397_v37 = vmul.f32 %v12360_v26, %v1289_v54  ;;  %v12400_v7 = vmul.f32 %v12360_v26, %v1290_v63 }
 0x1d2   :  { %v12403_v11 = vmul.f32 %v12360_v26, %v1291_v32  ;;  %v12406_v22 = vmul.f32 %v12360_v26, %v1292_v28  ;;  %v12409_v24 = vmul.f32 %v12360_v26, %v1293_v6  ;;  %v12412_v3 = vmul.f32 %v12360_v26, %v1294_v8 }
 0x1d3   :  { %v12415_v27 = vmul.f32 %v12360_v26, %v1295_v21  ;;  %v12418_v29 = vmul.f32 %v12360_v26, %v1296_v52  ;;  %v12421_v49 = vmul.f32 %v12360_v26, %v1297_v53  ;;  %v12424_v54 = vmul.f32 %v12360_v26, %v1298_v57 }
 0x1d4   :  { %v12427_v63 = vmul.f32 %v12360_v26, %v1299_v4  ;;  %v12430_v32 = vmul.f32 %v12360_v26, %v1300_v39  ;;  %v12433_v28 = vmul.f32 %v12360_v26, %v1301_v44  ;;  %v12436_v6 = vmul.f32 %v12360_v26, %v1302_v40 }
 0x1d5   :  { %v12439_v8 = vmul.f32 %v12360_v26, %v1303_v59  ;;  %v12442_v21 = vmul.f32 %v12360_v26, %v1304_v34  ;;  %v12445_v52 = vmul.f32 %v12360_v26, %v1305_v38  ;;  %v12448_v53 = vmul.f32 %v12360_v26, %v1306_v35 }
 0x1d6   :  { %v1310_v57 = vmul.f32 %v12360_v26, %v1276_v16  ;;  %v1312_v4 = vmul.f32 %v12360_v26, %v1278_v60  ;;  %v14436_v39 = vrot.slane %v12197_v15, %v12192_v2  ;;  %v14437_v40 = vrot.slane %v12202_v17, %v12192_v2  ;;  %v12484_v60 = vld [vmem:[%s11919_s17 + $0xb0] sm:$0x3f] }
 0x1d7   :  { %14434 = vst [vmem:[#allocation11_spill] sm:$0xff] %v12442_v21  ;;  %14435 = vst [vmem:[#allocation12_spill] sm:$0xff] %v12448_v53  ;;  %v1314_v34 = vmul.f32 %v12360_v26, %v1280_v0  ;;  %v1316_v38 = vmul.f32 %v12360_v26, %v1282_v41  ;;  %v12475_v0 = vld [vmem:[%s11919_s17 + $0xc8] sm:$0x3f]  ;;  %v14438_v41 = vrot.slane %v12258_v25, %v12192_v2 }
 0x1d8   :  { %v1469_v44 = vmul.f32 %v14436_v39, %v1309_v58  ;;  %v1471_v59 = vmul.f32 %v14437_v40, %v1311_v50  ;;  %v12470_v58 = vld [vmem:[%s11919_s17 + $0xb8] sm:$0x3f]  ;;  %v14439_v39 = vrot.slane %v12263_v1, %v12192_v2  ;;  %v14440_v40 = vrot.slane %v12197_v15, %v12227_v47 }
 0x1d9   :  { %v1470_v16 = vmul.f32 %v14438_v41, %v1310_v57  ;;  %v14441_v35 = vrot.slane %v12202_v17, %v12227_v47  ;;  %v14442_v21 = vrot.slane %v12207_v19, %v12192_v2  ;;  %v14443_v57 = vrot.slane %v12212_v30, %v12192_v2 }
 0x1da   :  { %v1472_v26 = vmul.f32 %v14439_v39, %v1312_v4  ;;  %v1629_v62 = vadd.f32 %v14440_v40, %v1469_v44  ;;  %v14444_v4 = vrot.slane %v12272_v46, %v12192_v2  ;;  %v14445_v15 = vrot.slane %v12277_v45, %v12192_v2 }
 0x1db   :  { %v1631_v53 = vadd.f32 %v14441_v35, %v1471_v59  ;;  %v1477_v50 = vmul.f32 %v14442_v21, %v1317_v31  ;;  %v1479_v41 = vmul.f32 %v14443_v57, %v1319_v36  ;;  %v14446_v17 = vrot.slane %v12258_v25, %v12227_v47  ;;  %v12526_v36 = vld [vmem:[%s11919_s17 + $0xe8] sm:$0x3f] }
 0x1dc   :  { %v1474_v39 = vmul.f32 %v14444_v4, %v1314_v34  ;;  %v1476_v44 = vmul.f32 %v14445_v15, %v1316_v38  ;;  %v14447_v31 = vrot.slane %v12263_v1, %v12227_v47  ;;  %v1604_v35 = vrot.slane %v12475_v0, %v12227_v47  ;;  %v11151_v15 = vld [vmem:[%s11907_s13 + $0x100] sm:$0xff]  }
 0x1dd   :  { %v1630_v59 = vadd.f32 %v14446_v17, %v1470_v16  ;;  %v1460_v34 = vrot.slane %v12526_v36, %v12192_v2  ;;  %v1661_v40 = vpack.c.bf16 %v1629_v62, %v1629_v62  ;;  %v1663_v57 = vpack.c.bf16 %v1631_v53, %v1631_v53  ;;  %v11152_v17 = vld [vmem:[%s11907_s13 + $0x180] sm:$0xff]  }
 0x1de   :  { %v1632_v21 = vadd.f32 %v14447_v31, %v1472_v26  ;;  %v14448_v38 = vrot.slane %v12272_v46, %v12227_v47  ;;  %v14449_v16 = vrot.slane %v12277_v45, %v12227_v47  ;;  %v1612_v31 = vrot.slane %v12489_v13, %v12227_v47 }
 0x1df   :  { %v1662_v1 = vpack.c.bf16 %v1630_v59, %v1630_v59  ;;  %v1600_v62 = vrot.slane %v12247_v14, %v12227_v47  ;;  %v14450_v46 = vrot.slane %v12217_v42, %v12192_v2  ;;  %v14451_v45 = vrot.slane %v12222_v43, %v12192_v2 }
 0x1e0   :  { %v1634_v25 = vadd.f32 %v14448_v38, %v1474_v39  ;;  %v1636_v26 = vadd.f32 %v14449_v16, %v1476_v44  ;;  %v1664_v4 = vpack.c.bf16 %v1632_v21, %v1632_v21  ;;  %v14452_v44 = vrot.slane %v12207_v19, %v12227_v47 }
 0x1e1   :  { %v1481_v53 = vmul.f32 %v14450_v46, %v12391_v10  ;;  %v1483_v39 = vmul.f32 %v14451_v45, %v12397_v37  ;;  %v14453_v21 = vrot.slane %v12212_v30, %v12227_v47  ;;  %v14454_v16 = vrot.slane %v12230_v48, %v12192_v2  ;;  %3773 = vmatprep.mubr.bf16.mxu0 %v1662_v1  ;;  %v11153_v37 = vld [vmem:[%s11907_s13 + $0x148] sm:$0xff]   ;;  %v12571_v30 = vld [vmem:[%s11919_s17 + $0xd0] sm:$0x3f] }
 0x1e2   :  { %v12553_v59 = vadd.f32 %v14452_v44, %v1477_v50  ;;  %3813 = vmatprep.mubr.bf16.mxu1 %v1664_v4  ;;  %v11154_v46 = vld [vmem:[%s11907_s13 + $0x1c8] sm:$0xff]   ;;  %v14455_v19 = vrot.slane %v12294_v9, %v12192_v2  ;;  %3774 = vmatmul.mubr.bf16.vlgmr.msra.gmra.mrb[28].mxu0 %v1661_v40  ;;  %v1668_v1 = vpack.c.bf16 %v1636_v26, %v1636_v26 }
 0x1e3   :  { %v12558_v38 = vadd.f32 %v14453_v21, %v1479_v41  ;;  %v1485_v10 = vmul.f32 %v14454_v16, %v12403_v11  ;;  %v1608_v41 = vrot.slane %v12571_v30, %v12227_v47  ;;  %3814 = vmatmul.mubr.bf16.vlgmr.msra.gmra.mrb[36].mxu1 %v1663_v57  ;;  %v1666_v11 = vpack.c.bf16 %v1634_v25, %v1634_v25  ;;  %v11155_v21 = vld [vmem:[%s11907_s13 + $0x108] sm:$0xff]   ;;  %v12591_v25 = vld [vmem:[%s11919_s17 + $0xf8] sm:$0x3f] }
 0x1e4   :  { %v1482_v50 = vmul.f32 %v14455_v19, %v12394_v23  ;;  %v14456_v4 = vrot.slane %v12299_v51, %v12192_v2  ;;  %v14457_v23 = vrot.slane %v12235_v55, %v12192_v2  ;;  %10291 = vmatpush3.bf16.msra.mxu0 %v11151_v15  ;;  %10313 = vmatpush3.bf16.msra.mxu1 %v11152_v17  ;;  %v11156_v16 = vld [vmem:[%s11907_s13 + $0x188] sm:$0xff]   ;;  %v11158_v19 = vld [vmem:[%s11907_s13 + $0x1d0] sm:$0xff]  }
 0x1e5   :  { %v14458_v40 = vrot.slane %v12294_v9, %v12227_v47  ;;  %v1468_v26 = vrot.slane %v12591_v25, %v12192_v2  ;;  %3853 = vmatprep.mubr.bf16.mxu0 %v1666_v11  ;;  %3893 = vmatprep.mubr.bf16.mxu1 %v1668_v1  ;;  %v14460_v9 = vrot.slane %v12217_v42, %v12227_v47  ;;  %v11169_v30 = vld [vmem:[%s11907_s13 + $0x168] sm:$0xff]  }
 0x1e6   :  { %v1484_v45 = vmul.f32 %v14456_v4, %v12400_v7  ;;  %v1487_v44 = vmul.f32 %v14457_v23, %v12409_v24  ;;  %v11157_v7 = vld [vmem:[%s11907_s13 + $0x150] sm:$0xff]   ;;  %v14459_v24 = vrot.slane %v12299_v51, %v12227_v47  ;;  %v14462_v11 = vrot.slane %v12240_v61, %v12192_v2  ;;  %10292 = vmatprep.subr.bf16.mxu0 %v11153_v37  ;;  %v11705_v23 = vld [vmem:[%s11919_s17 + $0xe0] sm:$0x3f] }
 0x1e7   :  { %v12588_v57 = vadd.f32 %v14458_v40, %v1482_v50  ;;  %v12605_v17 = vadd.f32 %v14460_v9, %v1481_v53  ;;  %v14461_v50 = vrot.slane %v12222_v43, %v12227_v47  ;;  %10314 = vmatprep.subr.bf16.mxu1 %v11154_v46  ;;  %v14463_v51 = vrot.slane %v12310_v33, %v12192_v2  ;;  %v11159_v40 = vld [vmem:[%s11907_s13 + $0x110] sm:$0xff]  }
 0x1e8   :  { %v12600_v15 = vadd.f32 %v14459_v24, %v1484_v45  ;;  %v1489_v1 = vmul.f32 %v14462_v11, %v12415_v27  ;;  %v14464_v53 = vrot.slane %v12319_v5, %v12192_v2  ;;  %v14466_v27 = vrot.slane %v12247_v14, %v12192_v2  ;;  %10293 = vmatpush3.bf16.msra.mxu0 %v11155_v21  ;;  %v11161_v21 = vld [vmem:[%s11907_s13 + $0x158] sm:$0xff]  }
 0x1e9   :  { %v12610_v4 = vadd.f32 %v14461_v50, %v1483_v39  ;;  %v1486_v42 = vmul.f32 %v14463_v51, %v12406_v22  ;;  %v14465_v39 = vrot.slane %v12053_v18, %v12192_v2  ;;  %v14467_v22 = vrot.slane %v12230_v48, %v12227_v47  ;;  %10315 = vmatpush3.bf16.msra.mxu1 %v11156_v16  ;;  %v11160_v18 = vld [vmem:[%s11907_s13 + $0x190] sm:$0xff]   ;;  %v11162_v16 = vld [vmem:[%s11907_s13 + $0x1d8] sm:$0xff]  }
 0x1ea   :  { %v1488_v43 = vmul.f32 %v14464_v53, %v12412_v3  ;;  %v1493_v37 = vmul.f32 %v14466_v27, %v12427_v63  ;;  %v1616_v3 = vrot.slane %v11705_v23, %v12227_v47  ;;  %v14469_v63 = vrot.slane %v12319_v5, %v12227_v47  ;;  %10294 = vmatprep.subr.bf16.mxu0 %v11157_v7  ;;  %v11706_v51 = vld [vmem:[%s11919_s17 + $0xf0] sm:$0x3f] }
 0x1eb   :  { %v1491_v45 = vmul.f32 %v14465_v39, %v12421_v49  ;;  %v12635_v46 = vadd.f32 %v14467_v22, %v1485_v10  ;;  %v14468_v49 = vrot.slane %v12310_v33, %v12227_v47  ;;  %v14470_v48 = vrot.slane %v12235_v55, %v12227_v47  ;;  %10316 = vmatprep.subr.bf16.mxu1 %v11158_v19 }
 0x1ec   :  { %v12649_v9 = vadd.f32 %v14469_v63, %v1488_v43  ;;  %v14471_v33 = vrot.slane %v12324_v20, %v12192_v2  ;;  %v14472_v5 = vrot.slane %v12470_v58, %v12192_v2  ;;  %v1624_v55 = vrot.slane %v11706_v51, %v12227_v47  ;;  %10295 = vmatpush3.bf16.msra.mxu0 %v11159_v40  ;;  %v14488_v51 = vld [vmem:[#allocation6_spill] sm:$0xff] }
 0x1ed   :  { %v12644_v24 = vadd.f32 %v14468_v49, %v1486_v42  ;;  %v12654_v10 = vadd.f32 %v14470_v48, %v1487_v44  ;;  %v14473_v44 = vrot.slane %v12087_v12, %v12192_v2  ;;  %v14474_v19 = vrot.slane %v12074_v56, %v12192_v2  ;;  %10317 = vmatpush3.bf16.msra.mxu1 %v11160_v18  ;;  %v14484_v49 = vld [vmem:[#allocation12_spill] sm:$0xff] }
 0x1ee   :  { %v1490_v50 = vmul.f32 %v14471_v33, %v12418_v29  ;;  %v1492_v11 = vmul.f32 %v14472_v5, %v12424_v54  ;;  %v14475_v29 = vld [vmem:[#allocation8_spill] sm:$0xff]  ;;  %v14477_v43 = vrot.slane %v12240_v61, %v12227_v47  ;;  %v14478_v12 = vrot.slane %v12324_v20, %v12227_v47  ;;  %v11163_v20 = vld [vmem:[%s11907_s13 + $0x118] sm:$0xff]   ;;  %10296 = vmatprep.subr.bf16.mxu0 %v11161_v21  ;;  %v11707_v33 = vld [vmem:[%s11919_s17 + $0x20] sm:$0x3f] }
 0x1ef   :  { %v1495_v7 = vmul.f32 %v14473_v44, %v12433_v28  ;;  %v1497_v42 = vmul.f32 %v14474_v19, %v12439_v8  ;;  %v14476_v53 = vrot.slane %v14475_v29, %v12192_v2  ;;  %v14479_v56 = vrot.slane %v12470_v58, %v12227_v47  ;;  %10318 = vmatprep.subr.bf16.mxu1 %v11162_v16  ;;  %v14487_v21 = vld [vmem:[#allocation5_spill] sm:$0xff]  ;;  %v11171_v44 = vld [vmem:[%s11907_s13 + $0x128] sm:$0xff]   ;;  %v14490_v29 = vld [vmem:[#allocation10_spill] sm:$0xff] }
 0x1f0   :  { %v12683_v39 = vadd.f32 %v14477_v43, %v1489_v1  ;;  %v12688_v28 = vadd.f32 %v14478_v12, %v1490_v50  ;;  %v14480_v27 = vrot.slane %v12484_v60, %v12227_v47  ;;  %v14481_v61 = vrot.slane %v12475_v0, %v12192_v2  ;;  %v11164_v1 = vld [vmem:[%s11907_s13 + $0x198] sm:$0xff]   ;;  %10297 = vmatpush3.bf16.msra.mxu0 %v11163_v20  ;;  %v11708_v5 = vld [vmem:[%s11919_s17 + $0x30] sm:$0x3f]  ;;  %v14489_v19 = vld [vmem:[#allocation7_spill] sm:$0xff] }
 0x1f1   :  { %v1499_v54 = vmul.f32 %v14476_v53, %v12445_v52  ;;  %v12693_v8 = vadd.f32 %v14479_v56, %v1492_v11  ;;  %v14482_v58 = vrot.slane %v12489_v13, %v12192_v2  ;;  %v12713_v60 = vadd.f32 %v1600_v62, %v1493_v37  ;;  %v14483_v37 = vld [vmem:[#allocation11_spill] sm:$0xff]  ;;  %10319 = vmatpush3.bf16.msra.mxu1 %v11164_v1  ;;  %v11173_v43 = vld [vmem:[%s11907_s13 + $0x170] sm:$0xff]   ;;  %v11710_v20 = vld [vmem:[%s11919_s17 + $0x58] sm:$0x3f] }
 0x1f2   :  { %v12698_v22 = vadd.f32 %v14480_v27, %v1491_v45  ;;  %v1494_v52 = vmul.f32 %v14481_v61, %v12430_v32  ;;  %v11165_v45 = vld [vmem:[%s11907_s13 + $0x160] sm:$0xff]   ;;  %v1620_v40 = vrot.slane %v12526_v36, %v12227_v47  ;;  %v1628_v18 = vrot.slane %v12591_v25, %v12227_v47  ;;  %v11174_v12 = vld [vmem:[%s11907_s13 + $0x1f0] sm:$0xff]   ;;  %v11709_v27 = vld [vmem:[%s11919_s17 + $0x48] sm:$0x3f] }
 0x1f3   :  { %v1496_v23 = vmul.f32 %v14482_v58, %v12436_v6  ;;  %v11166_v32 = vld [vmem:[%s11907_s13 + $0x1e0] sm:$0xff]   ;;  %v12734_v62 = vadd.f32 %v1608_v41, %v1495_v7  ;;  %v1498_v25 = vmul.f32 %v1460_v34, %v14483_v37  ;;  %v1500_v0 = vmul.f32 %v1468_v26, %v14484_v49  ;;  %10298 = vmatprep.subr.bf16.mxu0 %v11165_v45  ;;  %v11170_v41 = vld [vmem:[%s11907_s13 + $0x1e8] sm:$0xff]   ;;  %v14485_v26 = vld [vmem:[#allocation9_spill] sm:$0xff] }
 0x1f4   :  { %v12724_v14 = vadd.f32 %v1604_v35, %v1494_v52  ;;  %v12741_v35 = vadd.f32 %v1616_v3, %v1497_v42  ;;  %v12743_v63 = vadd.f32 %v1624_v55, %v1499_v54  ;;  %v11167_v13 = vld [vmem:[%s11907_s13 + $0x120] sm:$0xff]   ;;  %10320 = vmatprep.subr.bf16.mxu1 %v11166_v32  ;;  %v14486_v3 = vld [vmem:[#allocation4_spill] sm:$0xff]  ;;  %v1281_v16 = vsub.f32 %v14487_v21, %v14485_v26  ;;  %v11178_v37 = vld [vmem:[%s11907_s13 + $0x1f8] sm:$0xff]  }
 0x1f5   :  { %v12729_v6 = vadd.f32 %v1612_v31, %v1496_v23  ;;  %v11168_v31 = vld [vmem:[%s11907_s13 + $0x1a0] sm:$0xff]   ;;  %v12749_v36 = vadd.f32 %v1620_v40, %v1498_v25  ;;  %v12751_v34 = vadd.f32 %v1628_v18, %v1500_v0  ;;  %v1279_v48 = vsub.f32 %v14486_v3, %v14485_v26  ;;  %10299 = vmatpush3.bf16.msra.mxu0 %v11167_v13  ;;  %v11172_v7 = vld [vmem:[%s11907_s13 + $0x1a8] sm:$0xff]   ;;  %v11175_v58 = vld [vmem:[%s11907_s13 + $0x130] sm:$0xff]  }
 0x1f6   :  { %v1360_v50 = vrot.slane %v11707_v33, %v12192_v2  ;;  %v1368_v11 = vrot.slane %v11708_v5, %v12192_v2  ;;  %v1284_v55 = vsub.f32 %v14488_v51, %v14485_v26  ;;  %10321 = vmatpush3.bf16.msra.mxu1 %v11168_v31  ;;  %v1286_v42 = vsub.f32 %v14489_v19, %v14485_v26  ;;  %v11176_v23 = vld [vmem:[%s11907_s13 + $0x1b0] sm:$0xff]   ;;  %v11177_v18 = vld [vmem:[%s11907_s13 + $0x178] sm:$0xff]   ;;  %v11181_v3 = vld [vmem:[%s11907_s13 + $0x240] sm:$0xff]  }
 0x1f7   :  { %v1313_v53 = vmul.f32 %v14490_v29, %v1279_v48  ;;  %v1315_v54 = vmul.f32 %v14490_v29, %v1281_v16  ;;  %10300 = vmatprep.subr.bf16.mxu0 %v11169_v30  ;;  %10322 = vmatprep.subr.bf16.mxu1 %v11170_v41  ;;  %v1380_v61 = vrot.slane %v11709_v27, %v12192_v2  ;;  %v11179_v31 = vld [vmem:[%s11907_s13 + $0x138] sm:$0xff]   ;;  %v11182_v48 = vld [vmem:[%s11907_s13 + $0x2c0] sm:$0xff]   ;;  %v11185_v51 = vld [vmem:[%s11907_s13 + $0x248] sm:$0xff]  }
 0x1f8   :  { %v1318_v56 = vmul.f32 %v14490_v29, %v1284_v55  ;;  %v1320_v52 = vmul.f32 %v14490_v29, %v1286_v42  ;;  %v1388_v1 = vrot.slane %v11710_v20, %v12192_v2  ;;  %v1520_v45 = vrot.slane %v11707_v33, %v12227_v47  ;;  %v11180_v30 = vld [vmem:[%s11907_s13 + $0x1b8] sm:$0xff]   ;;  %v11183_v33 = vld [vmem:[%s11907_s13 + $0x200] sm:$0xff]   ;;  %v11186_v55 = vld [vmem:[%s11907_s13 + $0x2c8] sm:$0xff]  }
 0x1f9   :  { %10301 = vmatpush3.bf16.msra.mxu0 %v11171_v44  ;;  %v1473_v32 = vmul.f32 %v1360_v50, %v1313_v53  ;;  %v1475_v40 = vmul.f32 %v1368_v11, %v1315_v54  ;;  %v1528_v25 = vrot.slane %v11708_v5, %v12227_v47  ;;  %v1540_v2 = vrot.slane %v11709_v27, %v12227_v47  ;;  %v11184_v5 = vld [vmem:[%s11907_s13 + $0x280] sm:$0xff]   ;;  %v11188_v19 = vld [vmem:[%s11907_s13 + $0x288] sm:$0xff]   ;;  %v11189_v42 = vld [vmem:[%s11907_s13 + $0x250] sm:$0xff]  }
 0x1fa   :  { %10323 = vmatpush3.bf16.msra.mxu1 %v11172_v7  ;;  %10302 = vmatprep.subr.bf16.mxu0 %v11173_v43  ;;  %v1478_v49 = vmul.f32 %v1380_v61, %v1318_v56  ;;  %v1480_v0 = vmul.f32 %v1388_v1, %v1320_v52  ;;  %v1548_v13 = vrot.slane %v11710_v20, %v12227_v47  ;;  %v11187_v7 = vld [vmem:[%s11907_s13 + $0x208] sm:$0xff]   ;;  %v11190_v29 = vld [vmem:[%s11907_s13 + $0x2d0] sm:$0xff]   ;;  %v11193_v43 = vld [vmem:[%s11907_s13 + $0x258] sm:$0xff]  }
 0x1fb   :  { %10324 = vmatprep.subr.bf16.mxu1 %v11174_v12  ;;  %v1633_v41 = vadd.f32 %v1520_v45, %v1473_v32  ;;  %v1635_v26 = vadd.f32 %v1528_v25, %v1475_v40  ;;  %v11191_v53 = vld [vmem:[%s11907_s13 + $0x210] sm:$0xff]   ;;  %v11194_v12 = vld [vmem:[%s11907_s13 + $0x2d8] sm:$0xff]   ;;  %v11197_v61 = vld [vmem:[%s11907_s13 + $0x260] sm:$0xff]  }
 0x1fc   :  { %v1638_v21 = vadd.f32 %v1540_v2, %v1478_v49  ;;  %v1640_v16 = vadd.f32 %v1548_v13, %v1480_v0  ;;  %v11192_v54 = vld [vmem:[%s11907_s13 + $0x290] sm:$0xff]   ;;  %v11195_v56 = vld [vmem:[%s11907_s13 + $0x218] sm:$0xff]   ;;  %v11198_v52 = vld [vmem:[%s11907_s13 + $0x2e0] sm:$0xff]  }
 0x1fd   :  { %10303 = vmatpush3.bf16.msra.mxu0 %v11175_v58  ;;  %v1665_v47 = vpack.c.bf16 %v1633_v41, %v1633_v41  ;;  %v1667_v50 = vpack.c.bf16 %v1635_v26, %v1635_v26  ;;  %v11196_v27 = vld [vmem:[%s11907_s13 + $0x298] sm:$0xff]   ;;  %v11199_v20 = vld [vmem:[%s11907_s13 + $0x220] sm:$0xff]   ;;  %v11201_v58 = vld [vmem:[%s11907_s13 + $0x268] sm:$0xff]   ;;  %v1669_v26 = vpack.c.bf16 %v12553_v59, %v12553_v59  ;;  %v1676_v59 = vpack.c.bf16 %v12600_v15, %v12600_v15 }
 0x1fe   :  { %10325 = vmatpush3.bf16.msra.mxu1 %v11176_v23  ;;  %10304 = vmatprep.subr.bf16.mxu0 %v11177_v18  ;;  %v1670_v11 = vpack.c.bf16 %v1638_v21, %v1638_v21  ;;  %v1672_v44 = vpack.c.bf16 %v1640_v16, %v1640_v16  ;;  %v11200_v1 = vld [vmem:[%s11907_s13 + $0x2a0] sm:$0xff]   ;;  %v11202_v23 = vld [vmem:[%s11907_s13 + $0x2e8] sm:$0xff]   ;;  %v11205_v40 = vld [vmem:[%s11907_s13 + $0x270] sm:$0xff]   ;;  %v1674_v16 = vpack.c.bf16 %v12588_v57, %v12588_v57 }
 0x1ff   :  { %10326 = vmatprep.subr.bf16.mxu1 %v11178_v37  ;;  %v11203_v45 = vld [vmem:[%s11907_s13 + $0x228] sm:$0xff]   ;;  %v11206_v18 = vld [vmem:[%s11907_s13 + $0x2f0] sm:$0xff]   ;;  %v11209_v49 = vld [vmem:[%s11907_s13 + $0x278] sm:$0xff]  }
 0x200   :  { %v11204_v32 = vld [vmem:[%s11907_s13 + $0x2a8] sm:$0xff]   ;;  %v11207_v37 = vld [vmem:[%s11907_s13 + $0x230] sm:$0xff]   ;;  %v11210_v2 = vld [vmem:[%s11907_s13 + $0x2f8] sm:$0xff]  }
 0x201   :  { %10305 = vmatpush3.bf16.msra.mxu0 %v11179_v31  ;;  %v11208_v25 = vld [vmem:[%s11907_s13 + $0x2b0] sm:$0xff]   ;;  %v11211_v0 = vld [vmem:[%s11907_s13 + $0x238] sm:$0xff]   ;;  %v11213_v31 = vld [vmem:[%s11907_s13 + $0x340] sm:$0xff]  }
 0x202   :  { %10327 = vmatpush3.bf16.msra.mxu1 %v11180_v30  ;;  %10334 = vmatprep.subr.bf16.mxu0 %v11181_v3  ;;  %v11212_v13 = vld [vmem:[%s11907_s13 + $0x2b8] sm:$0xff]   ;;  %v11214_v30 = vld [vmem:[%s11907_s13 + $0x3c0] sm:$0xff]   ;;  %v11217_v21 = vld [vmem:[%s11907_s13 + $0x348] sm:$0xff]  }
 0x203   :  { %10356 = vmatprep.subr.bf16.mxu1 %v11182_v48  ;;  %v11215_v41 = vld [vmem:[%s11907_s13 + $0x300] sm:$0xff]   ;;  %v1671_v48 = vpack.c.bf16 %v12558_v38, %v12558_v38  ;;  %v11220_v38 = vld [vmem:[%s11907_s13 + $0x388] sm:$0xff]   ;;  %v11222_v57 = vld [vmem:[%s11907_s13 + $0x3d0] sm:$0xff]  }
 0x204   :  { %3854 = vmatmul.mubr.bf16.vlgmr.msra.gmra.mrb[32].mxu0 %v1665_v47  ;;  %v11216_v3 = vld [vmem:[%s11907_s13 + $0x380] sm:$0xff]   ;;  %v11219_v47 = vld [vmem:[%s11907_s13 + $0x308] sm:$0xff]   ;;  %v11224_v15 = vld [vmem:[%s11907_s13 + $0x390] sm:$0xff]  }
 0x205   :  { %3894 = vmatmul.mubr.bf16.vlgmr.msra.gmra.mrb[40].mxu1 %v1667_v50  ;;  %10335 = vmatpush3.bf16.msra.mxu0 %v11183_v33  ;;  %v11218_v33 = vld [vmem:[%s11907_s13 + $0x3c8] sm:$0xff]   ;;  %v11221_v50 = vld [vmem:[%s11907_s13 + $0x350] sm:$0xff]  }
 0x206   :  { %3933 = vmatprep.mubr.bf16.mxu0 %v1670_v11  ;;  %10357 = vmatpush3.bf16.msra.mxu1 %v11184_v5  ;;  %v11223_v5 = vld [vmem:[%s11907_s13 + $0x310] sm:$0xff]   ;;  %v11225_v11 = vld [vmem:[%s11907_s13 + $0x358] sm:$0xff]  }
 0x207   :  { %3973 = vmatprep.mubr.bf16.mxu1 %v1672_v44  ;;  %10336 = vmatprep.subr.bf16.mxu0 %v11185_v51  ;;  %v11226_v51 = vld [vmem:[%s11907_s13 + $0x3d8] sm:$0xff]  }
 0x208   :  { %10358 = vmatprep.subr.bf16.mxu1 %v11186_v55  ;;  %v11227_v55 = vld [vmem:[%s11907_s13 + $0x318] sm:$0xff]  }
 0x209   :  { %10337 = vmatpush3.bf16.msra.mxu0 %v11187_v7  ;;  %v11228_v44 = vld [vmem:[%s11907_s13 + $0x398] sm:$0xff]   ;;  %v11229_v7 = vld [vmem:[%s11907_s13 + $0x360] sm:$0xff]  }
 0x20a   :  { %10359 = vmatpush3.bf16.msra.mxu1 %v11188_v19  ;;  %10338 = vmatprep.subr.bf16.mxu0 %v11189_v42  ;;  %v11230_v19 = vld [vmem:[%s11907_s13 + $0x3e0] sm:$0xff]  }
 0x20b   :  { %10360 = vmatprep.subr.bf16.mxu1 %v11190_v29  ;;  %v11231_v42 = vld [vmem:[%s11907_s13 + $0x320] sm:$0xff]  }
 0x20c   :  { %v11232_v29 = vld [vmem:[%s11907_s13 + $0x3a0] sm:$0xff]  }
 0x20d   :  { %10339 = vmatpush3.bf16.msra.mxu0 %v11191_v53  ;;  %v11233_v53 = vld [vmem:[%s11907_s13 + $0x368] sm:$0xff]  }
 0x20e   :  { %10361 = vmatpush3.bf16.msra.mxu1 %v11192_v54  ;;  %10340 = vmatprep.subr.bf16.mxu0 %v11193_v43  ;;  %v11234_v54 = vld [vmem:[%s11907_s13 + $0x3e8] sm:$0xff]  }
 0x20f   :  { %10362 = vmatprep.subr.bf16.mxu1 %v11194_v12  ;;  %v11235_v43 = vld [vmem:[%s11907_s13 + $0x328] sm:$0xff]  }
 0x210   :  { %v11236_v12 = vld [vmem:[%s11907_s13 + $0x3a8] sm:$0xff]  }
 0x211   :  { %10341 = vmatpush3.bf16.msra.mxu0 %v11195_v56  ;;  %v11237_v56 = vld [vmem:[%s11907_s13 + $0x370] sm:$0xff]  }
 0x212   :  { %10363 = vmatpush3.bf16.msra.mxu1 %v11196_v27  ;;  %10342 = vmatprep.subr.bf16.mxu0 %v11197_v61  ;;  %v11238_v27 = vld [vmem:[%s11907_s13 + $0x3f0] sm:$0xff]  }
 0x213   :  { %10364 = vmatprep.subr.bf16.mxu1 %v11198_v52  ;;  %v11239_v61 = vld [vmem:[%s11907_s13 + $0x330] sm:$0xff]  }
 0x214   :  { %v11240_v52 = vld [vmem:[%s11907_s13 + $0x3b0] sm:$0xff]  }
 0x215   :  { %10343 = vmatpush3.bf16.msra.mxu0 %v11199_v20  ;;  %v11241_v20 = vld [vmem:[%s11907_s13 + $0x378] sm:$0xff]  }
 0x216   :  { %10365 = vmatpush3.bf16.msra.mxu1 %v11200_v1  ;;  %10344 = vmatprep.subr.bf16.mxu0 %v11201_v58  ;;  %v11242_v1 = vld [vmem:[%s11907_s13 + $0x3f8] sm:$0xff]  }
 0x217   :  { %10366 = vmatprep.subr.bf16.mxu1 %v11202_v23  ;;  %v11243_v58 = vld [vmem:[%s11907_s13 + $0x338] sm:$0xff]  }
 0x218   :  { %v11244_v23 = vld [vmem:[%s11907_s13 + $0x3b8] sm:$0xff]  }
 0x219   :  { %10345 = vmatpush3.bf16.msra.mxu0 %v11203_v45  ;;  %v11245_v45 = vld [vmem:[%s11907_s13 + $0x440] sm:$0xff]  }
 0x21a   :  { %10367 = vmatpush3.bf16.msra.mxu1 %v11204_v32  ;;  %10346 = vmatprep.subr.bf16.mxu0 %v11205_v40  ;;  %v11246_v32 = vld [vmem:[%s11907_s13 + $0x4c0] sm:$0xff]  }
 0x21b   :  { %10368 = vmatprep.subr.bf16.mxu1 %v11206_v18  ;;  %v11247_v40 = vld [vmem:[%s11907_s13 + $0x400] sm:$0xff]   ;;  %v1673_v18 = vpack.c.bf16 %v12605_v17, %v12605_v17  ;;  %v1680_v17 = vpack.c.bf16 %v12649_v9, %v12649_v9  ;;  %v11256_v9 = vld [vmem:[%s11907_s13 + $0x490] sm:$0xff]  }
 0x21d   :  { %10347 = vmatpush3.bf16.msra.mxu0 %v11207_v37  ;;  %v11248_v37 = vld [vmem:[%s11907_s13 + $0x480] sm:$0xff]  }
 0x21e   :  { %10369 = vmatpush3.bf16.msra.mxu1 %v11208_v25  ;;  %10348 = vmatprep.subr.bf16.mxu0 %v11209_v49  ;;  %v1675_v25 = vpack.c.bf16 %v12610_v4, %v12610_v4  ;;  %v11249_v49 = vld [vmem:[%s11907_s13 + $0x448] sm:$0xff]  }
 0x21f   :  { %10370 = vmatprep.subr.bf16.mxu1 %v11210_v2  ;;  %v1678_v2 = vpack.c.bf16 %v12644_v24, %v12644_v24  ;;  %v11252_v4 = vld [vmem:[%s11907_s13 + $0x488] sm:$0xff]   ;;  %v11254_v24 = vld [vmem:[%s11907_s13 + $0x4d0] sm:$0xff]  }
 0x221   :  { %10349 = vmatpush3.bf16.msra.mxu0 %v11211_v0  ;;  %v11250_v0 = vld [vmem:[%s11907_s13 + $0x4c8] sm:$0xff]  }
 0x222   :  { %10371 = vmatpush3.bf16.msra.mxu1 %v11212_v13  ;;  %10378 = vmatprep.subr.bf16.mxu0 %v11213_v31  ;;  %v11251_v13 = vld [vmem:[%s11907_s13 + $0x408] sm:$0xff]   ;;  %v11253_v31 = vld [vmem:[%s11907_s13 + $0x450] sm:$0xff]  }
 0x223   :  { %10400 = vmatprep.subr.bf16.mxu1 %v11214_v30  ;;  %v11255_v30 = vld [vmem:[%s11907_s13 + $0x410] sm:$0xff]  }
 0x224   :  { %3934 = vmatmul.mubr.bf16.vlgmr.msra.gmra.mrb[36].mxu0 %v1669_v26  ;;  %v11258_v26 = vld [vmem:[%s11907_s13 + $0x4d8] sm:$0xff]  }
 0x225   :  { %3974 = vmatmul.mubr.bf16.vlgmr.msra.gmra.mrb[44].mxu1 %v1671_v48  ;;  %10379 = vmatpush3.bf16.msra.mxu0 %v11215_v41  ;;  %v11257_v41 = vld [vmem:[%s11907_s13 + $0x458] sm:$0xff]  }
 0x226   :  { %4013 = vmatprep.mubr.bf16.mxu0 %v1674_v16  ;;  %10401 = vmatpush3.bf16.msra.mxu1 %v11216_v3  ;;  %v11259_v3 = vld [vmem:[%s11907_s13 + $0x418] sm:$0xff]   ;;  %v11262_v16 = vld [vmem:[%s11907_s13 + $0x4e0] sm:$0xff]  }
 0x227   :  { %4053 = vmatprep.mubr.bf16.mxu1 %v1676_v59  ;;  %10380 = vmatprep.subr.bf16.mxu0 %v11217_v21  ;;  %v11260_v48 = vld [vmem:[%s11907_s13 + $0x498] sm:$0xff]   ;;  %v11261_v21 = vld [vmem:[%s11907_s13 + $0x460] sm:$0xff]  }
 0x228   :  { %10402 = vmatprep.subr.bf16.mxu1 %v11218_v33  ;;  %v11263_v33 = vld [vmem:[%s11907_s13 + $0x420] sm:$0xff]  }
 0x229   :  { %10381 = vmatpush3.bf16.msra.mxu0 %v11219_v47  ;;  %v11264_v59 = vld [vmem:[%s11907_s13 + $0x4a0] sm:$0xff]   ;;  %v11265_v47 = vld [vmem:[%s11907_s13 + $0x468] sm:$0xff]  }
 0x22a   :  { %10403 = vmatpush3.bf16.msra.mxu1 %v11220_v38  ;;  %10382 = vmatprep.subr.bf16.mxu0 %v11221_v50  ;;  %v11266_v38 = vld [vmem:[%s11907_s13 + $0x4e8] sm:$0xff]  }
 0x22b   :  { %10404 = vmatprep.subr.bf16.mxu1 %v11222_v57  ;;  %v11267_v50 = vld [vmem:[%s11907_s13 + $0x428] sm:$0xff]  }
 0x22c   :  { %v11268_v57 = vld [vmem:[%s11907_s13 + $0x4a8] sm:$0xff]  }
 0x22d   :  { %10383 = vmatpush3.bf16.msra.mxu0 %v11223_v5  ;;  %v11269_v5 = vld [vmem:[%s11907_s13 + $0x470] sm:$0xff]  }
 0x22e   :  { %10405 = vmatpush3.bf16.msra.mxu1 %v11224_v15  ;;  %10384 = vmatprep.subr.bf16.mxu0 %v11225_v11  ;;  %v11270_v15 = vld [vmem:[%s11907_s13 + $0x4f0] sm:$0xff]  }
 0x22f   :  { %10406 = vmatprep.subr.bf16.mxu1 %v11226_v51  ;;  %v11271_v11 = vld [vmem:[%s11907_s13 + $0x430] sm:$0xff]  }
 0x230   :  { %v11272_v51 = vld [vmem:[%s11907_s13 + $0x4b0] sm:$0xff]  }
 0x231   :  { %10385 = vmatpush3.bf16.msra.mxu0 %v11227_v55  ;;  %v11273_v55 = vld [vmem:[%s11907_s13 + $0x478] sm:$0xff]  }
 0x232   :  { %10407 = vmatpush3.bf16.msra.mxu1 %v11228_v44  ;;  %10386 = vmatprep.subr.bf16.mxu0 %v11229_v7  ;;  %v11274_v44 = vld [vmem:[%s11907_s13 + $0x4f8] sm:$0xff]  }
 0x233   :  { %10408 = vmatprep.subr.bf16.mxu1 %v11230_v19  ;;  %v11275_v7 = vld [vmem:[%s11907_s13 + $0x438] sm:$0xff]  }
 0x234   :  { %v11276_v19 = vld [vmem:[%s11907_s13 + $0x4b8] sm:$0xff]  }
 0x235   :  { %10387 = vmatpush3.bf16.msra.mxu0 %v11231_v42  ;;  %v11277_v42 = vld [vmem:[%s11907_s13 + $0x540] sm:$0xff]  }
 0x236   :  { %10409 = vmatpush3.bf16.msra.mxu1 %v11232_v29  ;;  %10388 = vmatprep.subr.bf16.mxu0 %v11233_v53  ;;  %v11278_v29 = vld [vmem:[%s11907_s13 + $0x5c0] sm:$0xff]  }
 0x237   :  { %10410 = vmatprep.subr.bf16.mxu1 %v11234_v54  ;;  %v11279_v53 = vld [vmem:[%s11907_s13 + $0x500] sm:$0xff]   ;;  %v1677_v54 = vpack.c.bf16 %v12635_v46, %v12635_v46  ;;  %v1684_v46 = vpack.c.bf16 %v12693_v8, %v12693_v8  ;;  %v11288_v8 = vld [vmem:[%s11907_s13 + $0x590] sm:$0xff]  }
 0x239   :  { %10389 = vmatpush3.bf16.msra.mxu0 %v11235_v43  ;;  %v11280_v43 = vld [vmem:[%s11907_s13 + $0x580] sm:$0xff]  }
 0x23a   :  { %10411 = vmatpush3.bf16.msra.mxu1 %v11236_v12  ;;  %10390 = vmatprep.subr.bf16.mxu0 %v11237_v56  ;;  %v1679_v12 = vpack.c.bf16 %v12654_v10, %v12654_v10  ;;  %v11281_v56 = vld [vmem:[%s11907_s13 + $0x548] sm:$0xff]  }
 0x23b   :  { %10412 = vmatprep.subr.bf16.mxu1 %v11238_v27  ;;  %v1682_v27 = vpack.c.bf16 %v12688_v28, %v12688_v28  ;;  %v11284_v10 = vld [vmem:[%s11907_s13 + $0x588] sm:$0xff]   ;;  %v11286_v28 = vld [vmem:[%s11907_s13 + $0x5d0] sm:$0xff]  }
 0x23d   :  { %10391 = vmatpush3.bf16.msra.mxu0 %v11239_v61  ;;  %v11282_v61 = vld [vmem:[%s11907_s13 + $0x5c8] sm:$0xff]  }
 0x23e   :  { %10413 = vmatpush3.bf16.msra.mxu1 %v11240_v52  ;;  %10392 = vmatprep.subr.bf16.mxu0 %v11241_v20  ;;  %v11283_v52 = vld [vmem:[%s11907_s13 + $0x508] sm:$0xff]   ;;  %v11285_v20 = vld [vmem:[%s11907_s13 + $0x550] sm:$0xff]  }
 0x23f   :  { %10414 = vmatprep.subr.bf16.mxu1 %v11242_v1  ;;  %v11287_v1 = vld [vmem:[%s11907_s13 + $0x510] sm:$0xff]  }
 0x241   :  { %10393 = vmatpush3.bf16.msra.mxu0 %v11243_v58  ;;  %v11289_v58 = vld [vmem:[%s11907_s13 + $0x558] sm:$0xff]  }
 0x242   :  { %10415 = vmatpush3.bf16.msra.mxu1 %v11244_v23  ;;  %10422 = vmatprep.subr.bf16.mxu0 %v11245_v45  ;;  %v11290_v23 = vld [vmem:[%s11907_s13 + $0x5d8] sm:$0xff]  }
 0x243   :  { %10444 = vmatprep.subr.bf16.mxu1 %v11246_v32  ;;  %v11291_v45 = vld [vmem:[%s11907_s13 + $0x518] sm:$0xff]  }
 0x244   :  { %4014 = vmatmul.mubr.bf16.vlgmr.msra.gmra.mrb[40].mxu0 %v1673_v18  ;;  %v11292_v32 = vld [vmem:[%s11907_s13 + $0x598] sm:$0xff]   ;;  %v11294_v18 = vld [vmem:[%s11907_s13 + $0x5e0] sm:$0xff]  }
 0x245   :  { %4054 = vmatmul.mubr.bf16.vlgmr.msra.gmra.mrb[48].mxu1 %v1675_v25  ;;  %10423 = vmatpush3.bf16.msra.mxu0 %v11247_v40  ;;  %v11293_v40 = vld [vmem:[%s11907_s13 + $0x560] sm:$0xff]  }
 0x246   :  { %4093 = vmatprep.mubr.bf16.mxu0 %v1678_v2  ;;  %10445 = vmatpush3.bf16.msra.mxu1 %v11248_v37  ;;  %v11295_v37 = vld [vmem:[%s11907_s13 + $0x520] sm:$0xff]   ;;  %v11298_v2 = vld [vmem:[%s11907_s13 + $0x5e8] sm:$0xff]  }
 0x247   :  { %4133 = vmatprep.mubr.bf16.mxu1 %v1680_v17  ;;  %10424 = vmatprep.subr.bf16.mxu0 %v11249_v49  ;;  %v11296_v25 = vld [vmem:[%s11907_s13 + $0x5a0] sm:$0xff]   ;;  %v11297_v49 = vld [vmem:[%s11907_s13 + $0x568] sm:$0xff]  }
 0x248   :  { %10446 = vmatprep.subr.bf16.mxu1 %v11250_v0  ;;  %v11299_v0 = vld [vmem:[%s11907_s13 + $0x528] sm:$0xff]  }
 0x249   :  { %10425 = vmatpush3.bf16.msra.mxu0 %v11251_v13  ;;  %v11300_v17 = vld [vmem:[%s11907_s13 + $0x5a8] sm:$0xff]   ;;  %v11301_v13 = vld [vmem:[%s11907_s13 + $0x570] sm:$0xff]  }
 0x24a   :  { %10447 = vmatpush3.bf16.msra.mxu1 %v11252_v4  ;;  %10426 = vmatprep.subr.bf16.mxu0 %v11253_v31  ;;  %v11302_v4 = vld [vmem:[%s11907_s13 + $0x5f0] sm:$0xff]  }
 0x24b   :  { %10448 = vmatprep.subr.bf16.mxu1 %v11254_v24  ;;  %v11303_v31 = vld [vmem:[%s11907_s13 + $0x530] sm:$0xff]  }
 0x24c   :  { %v11304_v24 = vld [vmem:[%s11907_s13 + $0x5b0] sm:$0xff]  }
 0x24d   :  { %10427 = vmatpush3.bf16.msra.mxu0 %v11255_v30  ;;  %v11305_v30 = vld [vmem:[%s11907_s13 + $0x578] sm:$0xff]  }
 0x24e   :  { %10449 = vmatpush3.bf16.msra.mxu1 %v11256_v9  ;;  %10428 = vmatprep.subr.bf16.mxu0 %v11257_v41  ;;  %v11306_v9 = vld [vmem:[%s11907_s13 + $0x5f8] sm:$0xff]  }
 0x24f   :  { %10450 = vmatprep.subr.bf16.mxu1 %v11258_v26  ;;  %v11307_v41 = vld [vmem:[%s11907_s13 + $0x538] sm:$0xff]  }
 0x250   :  { %v11308_v26 = vld [vmem:[%s11907_s13 + $0x5b8] sm:$0xff]  }
 0x251   :  { %10429 = vmatpush3.bf16.msra.mxu0 %v11259_v3  ;;  %v11309_v3 = vld [vmem:[%s11907_s13 + $0x640] sm:$0xff]  }
 0x252   :  { %10451 = vmatpush3.bf16.msra.mxu1 %v11260_v48  ;;  %10430 = vmatprep.subr.bf16.mxu0 %v11261_v21  ;;  %v11310_v48 = vld [vmem:[%s11907_s13 + $0x6c0] sm:$0xff]  }
 0x253   :  { %10452 = vmatprep.subr.bf16.mxu1 %v11262_v16  ;;  %v11311_v21 = vld [vmem:[%s11907_s13 + $0x600] sm:$0xff]   ;;  %v1681_v16 = vpack.c.bf16 %v12683_v39, %v12683_v39  ;;  %v1688_v39 = vpack.c.bf16 %v12729_v6, %v12729_v6  ;;  %v11320_v6 = vld [vmem:[%s11907_s13 + $0x690] sm:$0xff]  }
 0x255   :  { %10431 = vmatpush3.bf16.msra.mxu0 %v11263_v33  ;;  %v11312_v33 = vld [vmem:[%s11907_s13 + $0x680] sm:$0xff]  }
 0x256   :  { %10453 = vmatpush3.bf16.msra.mxu1 %v11264_v59  ;;  %10432 = vmatprep.subr.bf16.mxu0 %v11265_v47  ;;  %v1683_v59 = vpack.c.bf16 %v12698_v22, %v12698_v22  ;;  %v11313_v47 = vld [vmem:[%s11907_s13 + $0x648] sm:$0xff]  }
 0x257   :  { %10454 = vmatprep.subr.bf16.mxu1 %v11266_v38  ;;  %v1686_v38 = vpack.c.bf16 %v12724_v14, %v12724_v14  ;;  %v11316_v22 = vld [vmem:[%s11907_s13 + $0x688] sm:$0xff]   ;;  %v11318_v14 = vld [vmem:[%s11907_s13 + $0x6d0] sm:$0xff]  }
 0x259   :  { %10433 = vmatpush3.bf16.msra.mxu0 %v11267_v50  ;;  %v11314_v50 = vld [vmem:[%s11907_s13 + $0x6c8] sm:$0xff]  }
 0x25a   :  { %10455 = vmatpush3.bf16.msra.mxu1 %v11268_v57  ;;  %10434 = vmatprep.subr.bf16.mxu0 %v11269_v5  ;;  %v11315_v57 = vld [vmem:[%s11907_s13 + $0x608] sm:$0xff]   ;;  %v11317_v5 = vld [vmem:[%s11907_s13 + $0x650] sm:$0xff]  }
 0x25b   :  { %10456 = vmatprep.subr.bf16.mxu1 %v11270_v15  ;;  %v11319_v15 = vld [vmem:[%s11907_s13 + $0x610] sm:$0xff]  }
 0x25d   :  { %10435 = vmatpush3.bf16.msra.mxu0 %v11271_v11  ;;  %v11321_v11 = vld [vmem:[%s11907_s13 + $0x658] sm:$0xff]  }
 0x25e   :  { %10457 = vmatpush3.bf16.msra.mxu1 %v11272_v51  ;;  %10436 = vmatprep.subr.bf16.mxu0 %v11273_v55  ;;  %v11322_v51 = vld [vmem:[%s11907_s13 + $0x6d8] sm:$0xff]  }
 0x25f   :  { %10458 = vmatprep.subr.bf16.mxu1 %v11274_v44  ;;  %v11323_v55 = vld [vmem:[%s11907_s13 + $0x618] sm:$0xff]  }
 0x260   :  { %v11324_v44 = vld [vmem:[%s11907_s13 + $0x698] sm:$0xff]  }
 0x261   :  { %10437 = vmatpush3.bf16.msra.mxu0 %v11275_v7  ;;  %v11325_v7 = vld [vmem:[%s11907_s13 + $0x660] sm:$0xff]  }
 0x262   :  { %10459 = vmatpush3.bf16.msra.mxu1 %v11276_v19  ;;  %10466 = vmatprep.subr.bf16.mxu0 %v11277_v42  ;;  %v11326_v19 = vld [vmem:[%s11907_s13 + $0x6e0] sm:$0xff]  }
 0x263   :  { %10488 = vmatprep.subr.bf16.mxu1 %v11278_v29  ;;  %v11327_v42 = vld [vmem:[%s11907_s13 + $0x620] sm:$0xff]  }
 0x264   :  { %4094 = vmatmul.mubr.bf16.vlgmr.msra.gmra.mrb[44].mxu0 %v1677_v54  ;;  %v11328_v29 = vld [vmem:[%s11907_s13 + $0x6a0] sm:$0xff]   ;;  %v11330_v54 = vld [vmem:[%s11907_s13 + $0x6e8] sm:$0xff]  }
 0x265   :  { %4134 = vmatmul.mubr.bf16.vlgmr.msra.gmra.mrb[52].mxu1 %v1679_v12  ;;  %10467 = vmatpush3.bf16.msra.mxu0 %v11279_v53  ;;  %v11329_v53 = vld [vmem:[%s11907_s13 + $0x668] sm:$0xff]  }
 0x266   :  { %4173 = vmatprep.mubr.bf16.mxu0 %v1682_v27  ;;  %10489 = vmatpush3.bf16.msra.mxu1 %v11280_v43  ;;  %v11331_v43 = vld [vmem:[%s11907_s13 + $0x628] sm:$0xff]   ;;  %v11334_v27 = vld [vmem:[%s11907_s13 + $0x6f0] sm:$0xff]  }
 0x267   :  { %4213 = vmatprep.mubr.bf16.mxu1 %v1684_v46  ;;  %10468 = vmatprep.subr.bf16.mxu0 %v11281_v56  ;;  %v11332_v12 = vld [vmem:[%s11907_s13 + $0x6a8] sm:$0xff]   ;;  %v11333_v56 = vld [vmem:[%s11907_s13 + $0x670] sm:$0xff]  }
 0x268   :  { %10490 = vmatprep.subr.bf16.mxu1 %v11282_v61  ;;  %v11335_v61 = vld [vmem:[%s11907_s13 + $0x630] sm:$0xff]  }
 0x269   :  { %10469 = vmatpush3.bf16.msra.mxu0 %v11283_v52  ;;  %v11336_v46 = vld [vmem:[%s11907_s13 + $0x6b0] sm:$0xff]   ;;  %v11337_v52 = vld [vmem:[%s11907_s13 + $0x678] sm:$0xff]  }
 0x26a   :  { %10491 = vmatpush3.bf16.msra.mxu1 %v11284_v10  ;;  %10470 = vmatprep.subr.bf16.mxu0 %v11285_v20  ;;  %v11338_v10 = vld [vmem:[%s11907_s13 + $0x6f8] sm:$0xff]  }
 0x26b   :  { %10492 = vmatprep.subr.bf16.mxu1 %v11286_v28  ;;  %v11339_v20 = vld [vmem:[%s11907_s13 + $0x638] sm:$0xff]  }
 0x26c   :  { %v11340_v28 = vld [vmem:[%s11907_s13 + $0x6b8] sm:$0xff]  }
 0x26d   :  { %10471 = vmatpush3.bf16.msra.mxu0 %v11287_v1  ;;  %v11341_v1 = vld [vmem:[%s11907_s13 + $0x740] sm:$0xff]  }
 0x26e   :  { %10493 = vmatpush3.bf16.msra.mxu1 %v11288_v8  ;;  %10472 = vmatprep.subr.bf16.mxu0 %v11289_v58  ;;  %v11342_v8 = vld [vmem:[%s11907_s13 + $0x7c0] sm:$0xff]  }
 0x26f   :  { %10494 = vmatprep.subr.bf16.mxu1 %v11290_v23  ;;  %v11343_v58 = vld [vmem:[%s11907_s13 + $0x700] sm:$0xff]   ;;  %v1685_v23 = vpack.c.bf16 %v12713_v60, %v12713_v60  ;;  %v1692_v60 = vpack.c.bf16 %v12751_v34, %v12751_v34  ;;  %v11352_v34 = vld [vmem:[%s11907_s13 + $0x790] sm:$0xff]  }
 0x271   :  { %10473 = vmatpush3.bf16.msra.mxu0 %v11291_v45  ;;  %v11344_v45 = vld [vmem:[%s11907_s13 + $0x780] sm:$0xff]  }
 0x272   :  { %10495 = vmatpush3.bf16.msra.mxu1 %v11292_v32  ;;  %10474 = vmatprep.subr.bf16.mxu0 %v11293_v40  ;;  %v1687_v32 = vpack.c.bf16 %v12734_v62, %v12734_v62  ;;  %v11345_v40 = vld [vmem:[%s11907_s13 + $0x748] sm:$0xff]  }
 0x273   :  { %10496 = vmatprep.subr.bf16.mxu1 %v11294_v18  ;;  %v1690_v18 = vpack.c.bf16 %v12749_v36, %v12749_v36  ;;  %v11348_v62 = vld [vmem:[%s11907_s13 + $0x788] sm:$0xff]   ;;  %v11350_v36 = vld [vmem:[%s11907_s13 + $0x7d0] sm:$0xff]  }
 0x275   :  { %10475 = vmatpush3.bf16.msra.mxu0 %v11295_v37  ;;  %v11346_v37 = vld [vmem:[%s11907_s13 + $0x7c8] sm:$0xff]  }
 0x276   :  { %10497 = vmatpush3.bf16.msra.mxu1 %v11296_v25  ;;  %10476 = vmatprep.subr.bf16.mxu0 %v11297_v49  ;;  %v11347_v25 = vld [vmem:[%s11907_s13 + $0x708] sm:$0xff]   ;;  %v11349_v49 = vld [vmem:[%s11907_s13 + $0x750] sm:$0xff]  }
 0x277   :  { %10498 = vmatprep.subr.bf16.mxu1 %v11298_v2  ;;  %v11351_v2 = vld [vmem:[%s11907_s13 + $0x710] sm:$0xff]  }
 0x279   :  { %10477 = vmatpush3.bf16.msra.mxu0 %v11299_v0  ;;  %v11353_v0 = vld [vmem:[%s11907_s13 + $0x758] sm:$0xff]  }
 0x27a   :  { %10499 = vmatpush3.bf16.msra.mxu1 %v11300_v17  ;;  %10478 = vmatprep.subr.bf16.mxu0 %v11301_v13  ;;  %v11354_v17 = vld [vmem:[%s11907_s13 + $0x7d8] sm:$0xff]  }
 0x27b   :  { %10500 = vmatprep.subr.bf16.mxu1 %v11302_v4  ;;  %v11355_v13 = vld [vmem:[%s11907_s13 + $0x718] sm:$0xff]  }
 0x27c   :  { %v11356_v4 = vld [vmem:[%s11907_s13 + $0x798] sm:$0xff]  }
 0x27d   :  { %10479 = vmatpush3.bf16.msra.mxu0 %v11303_v31  ;;  %v11357_v31 = vld [vmem:[%s11907_s13 + $0x760] sm:$0xff]  }
 0x27e   :  { %10501 = vmatpush3.bf16.msra.mxu1 %v11304_v24  ;;  %10480 = vmatprep.subr.bf16.mxu0 %v11305_v30  ;;  %v11358_v24 = vld [vmem:[%s11907_s13 + $0x7e0] sm:$0xff]  }
 0x27f   :  { %10502 = vmatprep.subr.bf16.mxu1 %v11306_v9  ;;  %v11359_v30 = vld [vmem:[%s11907_s13 + $0x720] sm:$0xff]  }
 0x280   :  { %v11360_v9 = vld [vmem:[%s11907_s13 + $0x7a0] sm:$0xff]  }
 0x281   :  { %10481 = vmatpush3.bf16.msra.mxu0 %v11307_v41  ;;  %v11361_v41 = vld [vmem:[%s11907_s13 + $0x768] sm:$0xff]  }
 0x282   :  { %10503 = vmatpush3.bf16.msra.mxu1 %v11308_v26  ;;  %10510 = vmatprep.subr.bf16.mxu0 %v11309_v3  ;;  %v11362_v26 = vld [vmem:[%s11907_s13 + $0x7e8] sm:$0xff]  }
 0x283   :  { %10532 = vmatprep.subr.bf16.mxu1 %v11310_v48  ;;  %v11363_v3 = vld [vmem:[%s11907_s13 + $0x728] sm:$0xff]  }
 0x284   :  { %4174 = vmatmul.mubr.bf16.vlgmr.msra.gmra.mrb[48].mxu0 %v1681_v16  ;;  %v11364_v48 = vld [vmem:[%s11907_s13 + $0x7a8] sm:$0xff]  }
 0x285   :  { %4214 = vmatmul.mubr.bf16.vlgmr.msra.gmra.mrb[56].mxu1 %v1683_v59  ;;  %10511 = vmatpush3.bf16.msra.mxu0 %v11311_v21  ;;  %v11365_v21 = vld [vmem:[%s11907_s13 + $0x770] sm:$0xff]  }
 0x286   :  { %4253 = vmatprep.mubr.bf16.mxu0 %v1686_v38  ;;  %10533 = vmatpush3.bf16.msra.mxu1 %v11312_v33  ;;  %v11366_v59 = vld [vmem:[%s11907_s13 + $0x7f0] sm:$0xff]  }
 0x287   :  { %4293 = vmatprep.mubr.bf16.mxu1 %v1688_v39  ;;  %10512 = vmatprep.subr.bf16.mxu0 %v11313_v47 }
 0x288   :  { %10534 = vmatprep.subr.bf16.mxu1 %v11314_v50 }
 0x289   :  { %10513 = vmatpush3.bf16.msra.mxu0 %v11315_v57 }
 0x28a   :  { %10535 = vmatpush3.bf16.msra.mxu1 %v11316_v22  ;;  %10514 = vmatprep.subr.bf16.mxu0 %v11317_v5  ;;  %v11367_v5 = vld [vmem:[%s11907_s13 + $0x730] sm:$0xff]  }
 0x28b   :  { %10536 = vmatprep.subr.bf16.mxu1 %v11318_v14 }
 0x28d   :  { %10515 = vmatpush3.bf16.msra.mxu0 %v11319_v15 }
 0x28e   :  { %10537 = vmatpush3.bf16.msra.mxu1 %v11320_v6  ;;  %10516 = vmatprep.subr.bf16.mxu0 %v11321_v11  ;;  %v11368_v6 = vld [vmem:[%s11907_s13 + $0x7b0] sm:$0xff]   ;;  %v11369_v11 = vld [vmem:[%s11907_s13 + $0x778] sm:$0xff]  }
 0x28f   :  { %10538 = vmatprep.subr.bf16.mxu1 %v11322_v51 }
 0x291   :  { %10517 = vmatpush3.bf16.msra.mxu0 %v11323_v55  ;;  %v11370_v55 = vld [vmem:[%s11907_s13 + $0x7f8] sm:$0xff]  }
 0x292   :  { %10539 = vmatpush3.bf16.msra.mxu1 %v11324_v44  ;;  %10518 = vmatprep.subr.bf16.mxu0 %v11325_v7  ;;  %v4381_v44 = vld [vmem:[%s13012_s22] sm:$0xff] }
 0x293   :  { %10540 = vmatprep.subr.bf16.mxu1 %v11326_v19  ;;  %v4397_v7 = vld [vmem:[%s13012_s22 + $0x80] sm:$0xff]  ;;  %v4382_v19 = vld [vmem:[%s13012_s22 + $0x8] sm:$0xff] }
 0x295   :  { %10519 = vmatpush3.bf16.msra.mxu0 %v11327_v42  ;;  %v4398_v42 = vld [vmem:[%s13012_s22 + $0x88] sm:$0xff] }
 0x296   :  { %10541 = vmatpush3.bf16.msra.mxu1 %v11328_v29  ;;  %10520 = vmatprep.subr.bf16.mxu0 %v11329_v53  ;;  %v11371_v29 = vld [vmem:[%s11907_s13 + $0x738] sm:$0xff]  }
 0x297   :  { %10542 = vmatprep.subr.bf16.mxu1 %v11330_v54  ;;  %v11372_v53 = vld [vmem:[%s11907_s13 + $0x7b8] sm:$0xff]   ;;  %v9856_v54 = vcombine.high %v4381_v44, %v4397_v7  ;;  %s9529_s13 = sld [smem:[%s14403_s0 + %s11788_s10]]   ;;  %s11803_s10 = smov 24  }
 0x299   :  { %10521 = vmatpush3.bf16.msra.mxu0 %v11331_v43  ;;  %v9858_v43 = vcombine.high %v4382_v19, %v4398_v42 }
 0x29a   :  { %10543 = vmatpush3.bf16.msra.mxu1 %v11332_v12  ;;  %10522 = vmatprep.subr.bf16.mxu0 %v11333_v56  ;;  %v4413_v12 = vld [vmem:[%s13012_s22 + $0x100] sm:$0xff] }
 0x29b   :  { %10544 = vmatprep.subr.bf16.mxu1 %v11334_v27  ;;  %v4429_v56 = vld [vmem:[%s13012_s22 + $0x180] sm:$0xff]  ;;  %v4414_v27 = vld [vmem:[%s13012_s22 + $0x108] sm:$0xff] }
 0x29d   :  { %10523 = vmatpush3.bf16.msra.mxu0 %v11335_v61  ;;  %v4430_v61 = vld [vmem:[%s13012_s22 + $0x188] sm:$0xff] }
 0x29e   :  { %10545 = vmatpush3.bf16.msra.mxu1 %v11336_v46  ;;  %10524 = vmatprep.subr.bf16.mxu0 %v11337_v52  ;;  %v9855_v46 = vcombine.low %v4381_v44, %v4397_v7  ;;  %v1689_v52 = vpack.c.bf16 %v12741_v35, %v12741_v35  ;;  %v9887_v35 = vcombine.low %v4413_v12, %v4429_v56  ;;  %v4435_v44 = vld [vmem:[%s13012_s22 + $0x1b0] sm:$0xff] }
 0x29f   :  { %10546 = vmatprep.subr.bf16.mxu1 %v11338_v10  ;;  %v9857_v10 = vcombine.low %v4382_v19, %v4398_v42  ;;  %v4420_v42 = vld [vmem:[%s13012_s22 + $0x138] sm:$0xff] }
 0x2a1   :  { %10525 = vmatpush3.bf16.msra.mxu0 %v11339_v20  ;;  %v9888_v20 = vcombine.high %v4413_v12, %v4429_v56 }
 0x2a2   :  { %10547 = vmatpush3.bf16.msra.mxu1 %v11340_v28  ;;  %10554 = vmatprep.subr.bf16.mxu0 %v11341_v1  ;;  %v1691_v28 = vpack.c.bf16 %v12743_v63, %v12743_v63  ;;  %v9890_v1 = vcombine.high %v4414_v27, %v4430_v61  ;;  %v14491_v63 = vmov 0  }
 0x2a3   :  { %10576 = vmatprep.subr.bf16.mxu1 %v11342_v8  ;;  %v4383_v8 = vld [vmem:[%s13012_s22 + $0x10] sm:$0xff] }
 0x2a4   :  { %4254 = vmatmul.mubr.bf16.vlgmr.msra.gmra.mrb[52].mxu0 %v1685_v23  ;;  %v4384_v23 = vld [vmem:[%s13012_s22 + $0x18] sm:$0xff] }
 0x2a5   :  { %4294 = vmatmul.mubr.bf16.vlgmr.msra.gmra.mrb[60].mxu1 %v1687_v32  ;;  %10555 = vmatpush3.bf16.msra.mxu0 %v11343_v58  ;;  %v4399_v58 = vld [vmem:[%s13012_s22 + $0x90] sm:$0xff]  ;;  %v9889_v32 = vcombine.low %v4414_v27, %v4430_v61 }
 0x2a6   :  { %4333 = vmatprep.mubr.bf16.mxu0 %v1690_v18  ;;  %10577 = vmatpush3.bf16.msra.mxu1 %v11344_v45  ;;  %v4400_v45 = vld [vmem:[%s13012_s22 + $0x98] sm:$0xff] }
 0x2a7   :  { %4373 = vmatprep.mubr.bf16.mxu1 %v1692_v60  ;;  %10556 = vmatprep.subr.bf16.mxu0 %v11345_v40  ;;  %v9860_v40 = vcombine.high %v4383_v8, %v4399_v58  ;;  %v9862_v18 = vcombine.high %v4384_v23, %v4400_v45  ;;  %v4431_v60 = vld [vmem:[%s13012_s22 + $0x190] sm:$0xff] }
 0x2a8   :  { %10578 = vmatprep.subr.bf16.mxu1 %v11346_v37  ;;  %v4415_v37 = vld [vmem:[%s13012_s22 + $0x110] sm:$0xff] }
 0x2a9   :  { %10557 = vmatpush3.bf16.msra.mxu0 %v11347_v25  ;;  %v4416_v25 = vld [vmem:[%s13012_s22 + $0x118] sm:$0xff] }
 0x2aa   :  { %10579 = vmatpush3.bf16.msra.mxu1 %v11348_v62  ;;  %10558 = vmatprep.subr.bf16.mxu0 %v11349_v49  ;;  %v4432_v62 = vld [vmem:[%s13012_s22 + $0x198] sm:$0xff]  ;;  %v13048_v49 = vpop.permute.xlu1 %4574 }
 0x2ab   :  { %10580 = vmatprep.subr.bf16.mxu1 %v11350_v36  ;;  %v9859_v36 = vcombine.low %v4383_v8, %v4399_v58  ;;  %v4390_v8 = vld [vmem:[%s13012_s22 + $0x48] sm:$0xff] }
 0x2ac   :  { %v4406_v58 = vld [vmem:[%s13012_s22 + $0xc8] sm:$0xff] }
 0x2ad   :  { %10559 = vmatpush3.bf16.msra.mxu0 %v11351_v2  ;;  %v9861_v2 = vcombine.low %v4384_v23, %v4400_v45 }
 0x2ae   :  { %10581 = vmatpush3.bf16.msra.mxu1 %v11352_v34  ;;  %10560 = vmatprep.subr.bf16.mxu0 %v11353_v0  ;;  %v9892_v34 = vcombine.high %v4415_v37, %v4431_v60  ;;  %v9894_v0 = vcombine.high %v4416_v25, %v4432_v62 }
 0x2af   :  { %10582 = vmatprep.subr.bf16.mxu1 %v11354_v17  ;;  %v4385_v17 = vld [vmem:[%s13012_s22 + $0x20] sm:$0xff] }
 0x2b1   :  { %10561 = vmatpush3.bf16.msra.mxu0 %v11355_v13  ;;  %v4401_v13 = vld [vmem:[%s13012_s22 + $0xa0] sm:$0xff] }
 0x2b2   :  { %10583 = vmatpush3.bf16.msra.mxu1 %v11356_v4  ;;  %10562 = vmatprep.subr.bf16.mxu0 %v11357_v31  ;;  %v4386_v4 = vld [vmem:[%s13012_s22 + $0x28] sm:$0xff] }
 0x2b3   :  { %10584 = vmatprep.subr.bf16.mxu1 %v11358_v24  ;;  %v4402_v31 = vld [vmem:[%s13012_s22 + $0xa8] sm:$0xff]  ;;  %v9891_v24 = vcombine.low %v4415_v37, %v4431_v60 }
 0x2b4   :  { %v4422_v37 = vld [vmem:[%s13012_s22 + $0x148] sm:$0xff] }
 0x2b5   :  { %10563 = vmatpush3.bf16.msra.mxu0 %v11359_v30  ;;  %v10262_v16 = vpop.f32.mrb[28].mxu0  ;;  %v9893_v30 = vcombine.low %v4416_v25, %v4432_v62  ;;  %v4438_v60 = vld [vmem:[%s13012_s22 + $0x1c8] sm:$0xff]  ;;  %v9873_v62 = vcombine.low %v4390_v8, %v4406_v58 }
 0x2b6   :  { %10585 = vmatpush3.bf16.msra.mxu1 %v11360_v9  ;;  %10564 = vmatprep.subr.bf16.mxu0 %v11361_v41  ;;  %v10284_v33 = vpop.f32.mrb[36].mxu1  ;;  %v10263_v47 = vpop.f32.mrb[29].mxu0  ;;  %v9864_v9 = vcombine.high %v4385_v17, %v4401_v13  ;;  %v9866_v41 = vcombine.high %v4386_v4, %v4402_v31 }
 0x2b7   :  { %10586 = vmatprep.subr.bf16.mxu1 %v11362_v26  ;;  %v10285_v38 = vpop.f32.mrb[37].mxu1  ;;  %v10264_v50 = vadd.f32 %v10263_v47, %v10262_v16  ;;  %v10265_v57 = vpop.f32.mrb[30].mxu0  ;;  %v4417_v26 = vld [vmem:[%s13012_s22 + $0x120] sm:$0xff]  ;;  %v9863_v16 = vcombine.low %v4385_v17, %v4401_v13  ;;  %v4392_v17 = vld [vmem:[%s13012_s22 + $0x58] sm:$0xff] }
 0x2b8   :  { %v10286_v39 = vadd.f32 %v10285_v38, %v10284_v33  ;;  %v10287_v22 = vpop.f32.mrb[38].mxu1  ;;  %v10266_v14 = vpop.f32.mrb[31].mxu0  ;;  %v9865_v33 = vcombine.low %v4386_v4, %v4402_v31  ;;  %v4387_v38 = vld [vmem:[%s13012_s22 + $0x30] sm:$0xff]  ;;  %v4404_v57 = vld [vmem:[%s13012_s22 + $0xb8] sm:$0xff]  ;;  %v9905_v31 = vcombine.low %v4422_v37, %v4438_v60 }
 0x2b9   :  { %10565 = vmatpush3.bf16.msra.mxu0 %v11363_v3  ;;  %v10288_v15 = vpop.f32.mrb[39].mxu1  ;;  %v4433_v3 = vld [vmem:[%s13012_s22 + $0x1a0] sm:$0xff]  ;;  %v4408_v13 = vld [vmem:[%s13012_s22 + $0xd8] sm:$0xff] }
 0x2ba   :  { %10587 = vmatpush3.bf16.msra.mxu1 %v11364_v48  ;;  %10566 = vmatprep.subr.bf16.mxu0 %v11365_v21  ;;  %v13021_v51 = vadd.f32 %v10286_v39, %v10264_v50  ;;  %v4418_v48 = vld [vmem:[%s13012_s22 + $0x128] sm:$0xff]  ;;  %v4403_v50 = vld [vmem:[%s13012_s22 + $0xb0] sm:$0xff]  ;;  %v4388_v39 = vld [vmem:[%s13012_s22 + $0x38] sm:$0xff]  ;;  %v9895_v22 = vcombine.low %v4417_v26, %v4433_v3 }
 0x2bb   :  { %10588 = vmatprep.subr.bf16.mxu1 %v11366_v59  ;;  %v4434_v21 = vld [vmem:[%s13012_s22 + $0x1a8] sm:$0xff]  ;;  %v9896_v59 = vcombine.high %v4417_v26, %v4433_v3  ;;  %v9868_v14 = vcombine.high %v4387_v38, %v4403_v50  ;;  %v9867_v56 = vcombine.low %v4387_v38, %v4403_v50  ;;  %v4424_v26 = vld [vmem:[%s13012_s22 + $0x158] sm:$0xff] }
 0x2bc   :  { %v9898_v47 = vcombine.high %v4418_v48, %v4434_v21  ;;  %v4440_v3 = vld [vmem:[%s13012_s22 + $0x1d8] sm:$0xff]  ;;  %v4394_v38 = vld [vmem:[%s13012_s22 + $0x68] sm:$0xff] }
 0x2bd   :  { %10567 = vmatpush3.bf16.msra.mxu0 %v11367_v5  ;;  %v9897_v5 = vcombine.low %v4418_v48, %v4434_v21  ;;  %v9877_v21 = vcombine.low %v4392_v17, %v4408_v13  ;;  %v4410_v50 = vld [vmem:[%s13012_s22 + $0xe8] sm:$0xff] }
 0x2be   :  { %10589 = vmatpush3.bf16.msra.mxu1 %v11368_v6  ;;  %10568 = vmatprep.subr.bf16.mxu0 %v11369_v11  ;;  %v9870_v11 = vcombine.high %v4388_v39, %v4404_v57 }
 0x2bf   :  { %10590 = vmatprep.subr.bf16.mxu1 %v11370_v55  ;;  %v4419_v55 = vld [vmem:[%s13012_s22 + $0x130] sm:$0xff] }
 0x2c1   :  { %10569 = vmatpush3.bf16.msra.mxu0 %v11371_v29  ;;  %v4436_v29 = vld [vmem:[%s13012_s22 + $0x1b8] sm:$0xff] }
 0x2c2   :  { %10591 = vmatpush3.bf16.msra.mxu1 %v11372_v53  ;;  %4900 = vmatprep.subr.bf16.mxu0 %v9856_v54  ;;  %v9901_v45 = vcombine.low %v4420_v42, %v4436_v29 }
 0x2c3   :  { %4941 = vmatprep.subr.bf16.mxu1 %v9858_v43 }
 0x2c4   :  { %4334 = vmatmul.mubr.bf16.vlgmr.msra.gmra.mrb[56].mxu0 %v1689_v52  ;;  %v9900_v52 = vcombine.high %v4419_v55, %v4435_v44 }
 0x2c5   :  { %4374 = vmatmul.mubr.bf16.vlgmr.msra.gmra.mrb[64].mxu1 %v1691_v28  ;;  %4901 = vmatpush1.bf16.msra.mxu0 %v9855_v46  ;;  %v9869_v46 = vcombine.low %v4388_v39, %v4404_v57  ;;  %v4389_v28 = vld [vmem:[%s13012_s22 + $0x40] sm:$0xff]  ;;  %v9909_v57 = vcombine.low %v4424_v26, %v4440_v3 }
 0x2c6   :  { %4942 = vmatpush1.bf16.msra.mxu1 %v9857_v10  ;;  %4902 = vmatprep.subr.bf16.mxu0 %v9888_v20  ;;  %v9902_v20 = vcombine.high %v4420_v42, %v4436_v29  ;;  %v4395_v42 = vld [vmem:[%s13012_s22 + $0x70] sm:$0xff] }
 0x2c7   :  { %4943 = vmatprep.subr.bf16.mxu1 %v9890_v1  ;;  %4932 = vmatprep.mubr.bf16.mxu0 %v14491_v63  ;;  %v4405_v1 = vld [vmem:[%s13012_s22 + $0xc0] sm:$0xff]  ;;  %v4411_v29 = vld [vmem:[%s13012_s22 + $0xf0] sm:$0xff] }
 0x2c8   :  { %4973 = vmatprep.mubr.bf16.mxu1 %v14491_v63  ;;  %v9871_v25 = vcombine.low %v4389_v28, %v4405_v1 }
 0x2c9   :  { %4903 = vmatpush1.bf16.msra.mxu0 %v9887_v35  ;;  %v9872_v35 = vcombine.high %v4389_v28, %v4405_v1  ;;  %v4428_v28 = vld [vmem:[%s13012_s22 + $0x178] sm:$0xff] }
 0x2ca   :  { %4944 = vmatpush1.bf16.msra.mxu1 %v9889_v32  ;;  %4982 = vmatprep.subr.bf16.mxu0 %v9860_v40  ;;  %v9874_v32 = vcombine.high %v4390_v8, %v4406_v58  ;;  %v4421_v40 = vld [vmem:[%s13012_s22 + $0x140] sm:$0xff]  ;;  %v4444_v1 = vld [vmem:[%s13012_s22 + $0x1f8] sm:$0xff] }
 0x2cb   :  { %5023 = vmatprep.subr.bf16.mxu1 %v9862_v18  ;;  %v4437_v18 = vld [vmem:[%s13012_s22 + $0x1c0] sm:$0xff] }
 0x2cc   :  { %9919 = vmatmul.mubr.msk.bf16.vlgmr.msra.gmra.mrb[60].mxu0 %vm4896_vm1, %v13048_v49  ;;  %v9903_v4 = vcombine.low %v4421_v40, %v4437_v18 }
 0x2cd   :  { %9920 = vmatmul.mubr.msk.bf16.vlgmr.msra.gmra.mrb[68].mxu1 %vm4896_vm1, %v13048_v49  ;;  %4983 = vmatpush1.bf16.msra.mxu0 %v9859_v36  ;;  %v9904_v36 = vcombine.high %v4421_v40, %v4437_v18 }
 0x2ce   :  { %5024 = vmatpush1.bf16.msra.mxu1 %v9861_v2  ;;  %4984 = vmatprep.subr.bf16.mxu0 %v9892_v34  ;;  %v9906_v2 = vcombine.high %v4422_v37, %v4438_v60  ;;  %v4391_v34 = vld [vmem:[%s13012_s22 + $0x50] sm:$0xff] }
 0x2cf   :  { %5025 = vmatprep.subr.bf16.mxu1 %v9894_v0  ;;  %5014 = vmatprep.mubr.bf16.mxu0 %v14491_v63  ;;  %v4407_v0 = vld [vmem:[%s13012_s22 + $0xd0] sm:$0xff] }
 0x2d0   :  { %5055 = vmatprep.mubr.bf16.mxu1 %v14491_v63  ;;  %v9875_v48 = vcombine.low %v4391_v34, %v4407_v0 }
 0x2d1   :  { %4985 = vmatpush1.bf16.msra.mxu0 %v9891_v24  ;;  %v9876_v24 = vcombine.high %v4391_v34, %v4407_v0  ;;  %v9917_v34 = vcombine.low %v4428_v28, %v4444_v1 }
 0x2d2   :  { %5026 = vmatpush1.bf16.msra.mxu1 %v9893_v30  ;;  %5064 = vmatprep.subr.bf16.mxu0 %v9864_v9  ;;  %v9878_v30 = vcombine.high %v4392_v17, %v4408_v13  ;;  %v4423_v9 = vld [vmem:[%s13012_s22 + $0x150] sm:$0xff] }
 0x2d3   :  { %5105 = vmatprep.subr.bf16.mxu1 %v9866_v41  ;;  %v4439_v41 = vld [vmem:[%s13012_s22 + $0x1d0] sm:$0xff] }
 0x2d4   :  { %9921 = vmatmul.mubr.msk.bf16.vlgmr.msra.gmra.mrb[64].mxu0 %vm4896_vm1, %v13048_v49  ;;  %v9907_v39 = vcombine.low %v4423_v9, %v4439_v41 }
 0x2d5   :  { %9922 = vmatmul.mubr.msk.bf16.vlgmr.msra.gmra.mrb[72].mxu1 %vm4896_vm1, %v13048_v49  ;;  %5065 = vmatpush1.bf16.msra.mxu0 %v9863_v16  ;;  %v9908_v16 = vcombine.high %v4423_v9, %v4439_v41 }
 0x2d6   :  { %5106 = vmatpush1.bf16.msra.mxu1 %v9865_v33  ;;  %5066 = vmatprep.subr.bf16.mxu0 %v9896_v59  ;;  %v9910_v33 = vcombine.high %v4424_v26, %v4440_v3  ;;  %v4393_v59 = vld [vmem:[%s13012_s22 + $0x60] sm:$0xff] }
 0x2d7   :  { %v10306_v15 = vpop.f32.mrb[32].mxu0  ;;  %5107 = vmatprep.subr.bf16.mxu1 %v9898_v47  ;;  %5096 = vmatprep.mubr.bf16.mxu0 %v14491_v63  ;;  %v4409_v47 = vld [vmem:[%s13012_s22 + $0xe0] sm:$0xff] }
 0x2d8   :  { %v10328_v6 = vpop.f32.mrb[40].mxu1  ;;  %v10307_v7 = vpop.f32.mrb[33].mxu0  ;;  %5137 = vmatprep.mubr.bf16.mxu1 %v14491_v63 }
 0x2d9   :  { %v10329_v19 = vpop.f32.mrb[41].mxu1  ;;  %v10308_v53 = vadd.f32 %v10307_v7, %v10306_v15  ;;  %v10309_v43 = vpop.f32.mrb[34].mxu0  ;;  %5067 = vmatpush1.bf16.msra.mxu0 %v9895_v22  ;;  %v9880_v22 = vcombine.high %v4393_v59, %v4409_v47  ;;  %v4441_v15 = vld [vmem:[%s13012_s22 + $0x1e0] sm:$0xff] }
 0x2da   :  { %v10330_v54 = vadd.f32 %v10329_v19, %v10328_v6  ;;  %v10331_v12 = vpop.f32.mrb[42].mxu1  ;;  %5108 = vmatpush1.bf16.msra.mxu1 %v9897_v5  ;;  %v10310_v27 = vpop.f32.mrb[35].mxu0  ;;  %5146 = vmatprep.subr.bf16.mxu0 %v9868_v14  ;;  %v9882_v5 = vcombine.high %v4394_v38, %v4410_v50  ;;  %v4425_v14 = vld [vmem:[%s13012_s22 + $0x160] sm:$0xff]  ;;  %v4426_v6 = vld [vmem:[%s13012_s22 + $0x168] sm:$0xff] }
 0x2db   :  { %v10332_v61 = vpop.f32.mrb[43].mxu1  ;;  %v3856_v10 = vadd.f32 %v10308_v53, %v13021_v51  ;;  %5187 = vmatprep.subr.bf16.mxu1 %v9870_v11  ;;  %v9899_v51 = vcombine.low %v4419_v55, %v4435_v44  ;;  %v4442_v11 = vld [vmem:[%s13012_s22 + $0x1e8] sm:$0xff]  ;;  %v9879_v55 = vcombine.low %v4393_v59, %v4409_v47  ;;  %v9881_v44 = vcombine.low %v4394_v38, %v4410_v50  ;;  %v4396_v53 = vld [vmem:[%s13012_s22 + $0x78] sm:$0xff] }
 0x2dc   :  { %9923 = vmatmul.mubr.msk.bf16.vlgmr.msra.gmra.mrb[68].mxu0 %vm4896_vm1, %v13048_v49  ;;  %v9912_v7 = vcombine.high %v4425_v14, %v4441_v15  ;;  %v9914_v19 = vcombine.high %v4426_v6, %v4442_v11  ;;  %v9911_v43 = vcombine.low %v4425_v14, %v4441_v15  ;;  %v9913_v12 = vcombine.low %v4426_v6, %v4442_v11 }
 0x2dd   :  { %v13085_v23 = vadd.f32 %v10330_v54, %v3856_v10  ;;  %9924 = vmatmul.mubr.msk.bf16.vlgmr.msra.gmra.mrb[76].mxu1 %vm4896_vm1, %v13048_v49  ;;  %5147 = vmatpush1.bf16.msra.mxu0 %v9867_v56  ;;  %v4412_v54 = vld [vmem:[%s13012_s22 + $0xf8] sm:$0xff]  ;;  %v9884_v56 = vcombine.high %v4395_v42, %v4411_v29 }
 0x2de   :  { %5188 = vmatpush1.bf16.msra.mxu1 %v9869_v46  ;;  %5148 = vmatprep.subr.bf16.mxu0 %v9900_v52  ;;  %v9886_v61 = vcombine.high %v4396_v53, %v4412_v54  ;;  %v4427_v46 = vld [vmem:[%s13012_s22 + $0x170] sm:$0xff]  ;;  %v9885_v18 = vcombine.low %v4396_v53, %v4412_v54  ;;  %v11373_v53 = vld [vmem:[%s13151_s26 + $0x40] sm:$0xff]  }
 0x2df   :  { %5189 = vmatprep.subr.bf16.mxu1 %v9902_v20  ;;  %5178 = vmatprep.mubr.bf16.mxu0 %v14491_v63  ;;  %v4443_v52 = vld [vmem:[%s13012_s22 + $0x1f0] sm:$0xff]  ;;  %v11374_v54 = vld [vmem:[%s13151_s26 + $0xc0] sm:$0xff]   ;;  %s11791_s22 = smov 12  }
 0x2e0   :  { %5219 = vmatprep.mubr.bf16.mxu1 %v14491_v63  ;;  %v9916_v37 = vcombine.high %v4427_v46, %v4443_v52  ;;  %s9533_s25 = sld [smem:[%s14403_s0 + %s11791_s22]]   ;;  %s11806_s22 = smov 26  }
 0x2e1   :  { %5149 = vmatpush1.bf16.msra.mxu0 %v9899_v51 }
 0x2e2   :  { %5190 = vmatpush1.bf16.msra.mxu1 %v9901_v45  ;;  %5228 = vmatprep.subr.bf16.mxu0 %v9872_v35  ;;  %v9883_v45 = vcombine.low %v4395_v42, %v4411_v29 }
 0x2e3   :  { %5269 = vmatprep.subr.bf16.mxu1 %v9874_v32 }
 0x2e4   :  { %9925 = vmatmul.mubr.msk.bf16.vlgmr.msra.gmra.mrb[72].mxu0 %vm4896_vm1, %v13048_v49 }
 0x2e5   :  { %9926 = vmatmul.mubr.msk.bf16.vlgmr.msra.gmra.mrb[80].mxu1 %vm4896_vm1, %v13048_v49  ;;  %5229 = vmatpush1.bf16.msra.mxu0 %v9871_v25 }
 0x2e6   :  { %5270 = vmatpush1.bf16.msra.mxu1 %v9873_v62  ;;  %5230 = vmatprep.subr.bf16.mxu0 %v9904_v36  ;;  %v9918_v62 = vcombine.high %v4428_v28, %v4444_v1 }
 0x2e7   :  { %5271 = vmatprep.subr.bf16.mxu1 %v9906_v2  ;;  %5260 = vmatprep.mubr.bf16.mxu0 %v14491_v63  ;;  %v9915_v2 = vcombine.low %v4427_v46, %v4443_v52 }
 0x2e8   :  { %5301 = vmatprep.mubr.bf16.mxu1 %v14491_v63 }
 0x2e9   :  { %5231 = vmatpush1.bf16.msra.mxu0 %v9903_v4 }
 0x2ea   :  { %5272 = vmatpush1.bf16.msra.mxu1 %v9905_v31  ;;  %5310 = vmatprep.subr.bf16.mxu0 %v9876_v24 }
 0x2eb   :  { %5351 = vmatprep.subr.bf16.mxu1 %v9878_v30 }
 0x2ec   :  { %9927 = vmatmul.mubr.msk.bf16.vlgmr.msra.gmra.mrb[76].mxu0 %vm4896_vm1, %v13048_v49 }
 0x2ed   :  { %9928 = vmatmul.mubr.msk.bf16.vlgmr.msra.gmra.mrb[84].mxu1 %vm4896_vm1, %v13048_v49  ;;  %5311 = vmatpush1.bf16.msra.mxu0 %v9875_v48 }
 0x2ee   :  { %5352 = vmatpush1.bf16.msra.mxu1 %v9877_v21  ;;  %5312 = vmatprep.subr.bf16.mxu0 %v9908_v16 }
 0x2ef   :  { %5353 = vmatprep.subr.bf16.mxu1 %v9910_v33  ;;  %5342 = vmatprep.mubr.bf16.mxu0 %v14491_v63 }
 0x2f0   :  { %5383 = vmatprep.mubr.bf16.mxu1 %v14491_v63 }
 0x2f1   :  { %5313 = vmatpush1.bf16.msra.mxu0 %v9907_v39 }
 0x2f2   :  { %5354 = vmatpush1.bf16.msra.mxu1 %v9909_v57  ;;  %5392 = vmatprep.subr.bf16.mxu0 %v9880_v22 }
 0x2f3   :  { %5433 = vmatprep.subr.bf16.mxu1 %v9882_v5 }
 0x2f4   :  { %9929 = vmatmul.mubr.msk.bf16.vlgmr.msra.gmra.mrb[80].mxu0 %vm4896_vm1, %v13048_v49 }
 0x2f5   :  { %9930 = vmatmul.mubr.msk.bf16.vlgmr.msra.gmra.mrb[88].mxu1 %vm4896_vm1, %v13048_v49  ;;  %5393 = vmatpush1.bf16.msra.mxu0 %v9879_v55 }
 0x2f6   :  { %5434 = vmatpush1.bf16.msra.mxu1 %v9881_v44  ;;  %5394 = vmatprep.subr.bf16.mxu0 %v9912_v7 }
 0x2f7   :  { %v10350_v27 = vpop.f32.mrb[36].mxu0  ;;  %5435 = vmatprep.subr.bf16.mxu1 %v9914_v19  ;;  %5424 = vmatprep.mubr.bf16.mxu0 %v14491_v63 }
 0x2f8   :  { %v10372_v10 = vpop.f32.mrb[44].mxu1  ;;  %v10351_v20 = vpop.f32.mrb[37].mxu0  ;;  %5465 = vmatprep.mubr.bf16.mxu1 %v14491_v63 }
 0x2f9   :  { %v10352_v8 = vadd.f32 %v10351_v20, %v10350_v27  ;;  %v10373_v58 = vpop.f32.mrb[45].mxu1  ;;  %v10353_v51 = vpop.f32.mrb[38].mxu0  ;;  %5395 = vmatpush1.bf16.msra.mxu0 %v9911_v43  ;;  %v11375_v43 = vld [vmem:[%s13151_s26] sm:$0xff]  }
 0x2fa   :  { %v10374_v35 = vadd.f32 %v10373_v58, %v10372_v10  ;;  %v10375_v32 = vpop.f32.mrb[46].mxu1  ;;  %5436 = vmatpush1.bf16.msra.mxu1 %v9913_v12  ;;  %v10354_v40 = vpop.f32.mrb[39].mxu0  ;;  %5474 = vmatprep.subr.bf16.mxu0 %v9884_v56  ;;  %v11376_v12 = vld [vmem:[%s13151_s26 + $0x80] sm:$0xff]  }
 0x2fb   :  { %v3936_v60 = vadd.f32 %v10352_v8, %v13085_v23  ;;  %v10376_v25 = vpop.f32.mrb[47].mxu1  ;;  %5515 = vmatprep.subr.bf16.mxu1 %v9886_v61 }
 0x2fc   :  { %9931 = vmatmul.mubr.msk.bf16.vlgmr.msra.gmra.mrb[84].mxu0 %vm4896_vm1, %v13048_v49 }
 0x2fd   :  { %v3976_v36 = vadd.f32 %v10374_v35, %v3936_v60  ;;  %9932 = vmatmul.mubr.msk.bf16.vlgmr.msra.gmra.mrb[92].mxu1 %vm4896_vm1, %v13048_v49  ;;  %5475 = vmatpush1.bf16.msra.mxu0 %v9883_v45  ;;  %v14492_v35 = vld [vmem:[#allocation3_spill] sm:$0xff] }
 0x2fe   :  { %5516 = vmatpush1.bf16.msra.mxu1 %v9885_v18  ;;  %5476 = vmatprep.subr.bf16.mxu0 %v9916_v37  ;;  %v13158_v32 = vsub.s32 3, %v14492_v35 }
 0x2ff   :  { %5517 = vmatprep.subr.bf16.mxu1 %v9918_v62  ;;  %5506 = vmatprep.mubr.bf16.mxu0 %v14491_v63 }
 0x300   :  { %5547 = vmatprep.mubr.bf16.mxu1 %v14491_v63 }
 0x301   :  { %5477 = vmatpush1.bf16.msra.mxu0 %v9915_v2 }
 0x302   :  { %5518 = vmatpush1.bf16.msra.mxu1 %v9917_v34  ;;  %10598 = vmatprep.subr.bf16.mxu0 %v11373_v53 }
 0x303   :  { %10620 = vmatprep.subr.bf16.mxu1 %v11374_v54 }
 0x304   :  { %9933 = vmatmul.mubr.msk.bf16.vlgmr.msra.gmra.mrb[88].mxu0 %vm4896_vm1, %v13048_v49 }
 0x305   :  { %9934 = vmatmul.mubr.msk.bf16.vlgmr.msra.gmra.mrb[96].mxu1 %vm4896_vm1, %v13048_v49  ;;  %10599 = vmatpush3.bf16.msra.mxu0 %v11375_v43 }
 0x306   :  { %10621 = vmatpush3.bf16.msra.mxu1 %v11376_v12 }
 0x317   :  { %v10394_v23 = vpop.f32.mrb[40].mxu0 }
 0x318   :  { %v10416_v0 = vpop.f32.mrb[48].mxu1  ;;  %v10395_v17 = vpop.f32.mrb[41].mxu0 }
 0x319   :  { %v10396_v13 = vadd.f32 %v10395_v17, %v10394_v23  ;;  %v10417_v4 = vpop.f32.mrb[49].mxu1  ;;  %v10397_v31 = vpop.f32.mrb[42].mxu0 }
 0x31a   :  { %v10418_v24 = vadd.f32 %v10417_v4, %v10416_v0  ;;  %v10419_v30 = vpop.f32.mrb[50].mxu1  ;;  %v10398_v9 = vpop.f32.mrb[43].mxu0  ;;  %v11711_v0 = vld [vmem:[%s11919_s17] sm:$0x3f]  ;;  %v11712_v4 = vld [vmem:[%s11919_s17 + $0x10] sm:$0x3f] }
 0x31b   :  { %v4016_v41 = vadd.f32 %v10396_v13, %v3976_v36  ;;  %v10420_v26 = vpop.f32.mrb[51].mxu1  ;;  %v4448_v17 = vrot.slane %v11711_v0, %v13158_v32  ;;  %v4456_v31 = vrot.slane %v11712_v4, %v13158_v32  ;;  %v11714_v9 = vld [vmem:[%s11919_s17 + $0x18] sm:$0x3f]  ;;  %v11720_v4 = vld [vmem:[%s11919_s17 + $0x50] sm:$0x3f] }
 0x31d   :  { %v4056_v63 = vadd.f32 %v10418_v24, %v4016_v41  ;;  %v11713_v24 = vld [vmem:[%s11919_s17 + $0x8] sm:$0x3f]  ;;  %v4460_v41 = vrot.slane %v11714_v9, %v13158_v32 }
 0x31e   :  { %v4452_v30 = vrot.slane %v11713_v24, %v13158_v32  ;;  %v11721_v24 = vld [vmem:[%s11919_s17 + $0x48] sm:$0x3f] }
 0x337   :  { %v10438_v3 = vpop.f32.mrb[44].mxu0 }
 0x338   :  { %v10460_v48 = vpop.f32.mrb[52].mxu1  ;;  %v10439_v21 = vpop.f32.mrb[45].mxu0 }
 0x339   :  { %v10440_v16 = vadd.f32 %v10439_v21, %v10438_v3  ;;  %v10461_v33 = vpop.f32.mrb[53].mxu1  ;;  %v10441_v59 = vpop.f32.mrb[46].mxu0 }
 0x33a   :  { %v10462_v47 = vadd.f32 %v10461_v33, %v10460_v48  ;;  %v10463_v49 = vpop.f32.mrb[54].mxu1  ;;  %v10442_v38 = vpop.f32.mrb[47].mxu0 }
 0x33b   :  { %v4096_v50 = vadd.f32 %v10440_v16, %v4056_v63  ;;  %v10464_v39 = vpop.f32.mrb[55].mxu1 }
 0x33d   :  { %v4136_v57 = vadd.f32 %v10462_v47, %v4096_v50 }
 0x357   :  { %v10482_v22 = vpop.f32.mrb[48].mxu0 }
 0x358   :  { %v10504_v5 = vpop.f32.mrb[56].mxu1  ;;  %v10483_v14 = vpop.f32.mrb[49].mxu0 }
 0x359   :  { %v10484_v15 = vadd.f32 %v10483_v14, %v10482_v22  ;;  %v10505_v6 = vpop.f32.mrb[57].mxu1  ;;  %v10485_v11 = vpop.f32.mrb[50].mxu0 }
 0x35a   :  { %v10506_v55 = vadd.f32 %v10505_v6, %v10504_v5  ;;  %v10507_v44 = vpop.f32.mrb[58].mxu1  ;;  %v10486_v7 = vpop.f32.mrb[51].mxu0 }
 0x35b   :  { %v4176_v19 = vadd.f32 %v10484_v15, %v4136_v57  ;;  %v10508_v42 = vpop.f32.mrb[59].mxu1  ;;  %v11715_v15 = vld [vmem:[%s11919_s17 + $0x20] sm:$0x3f]  ;;  %v11716_v44 = vld [vmem:[%s11919_s17 + $0x30] sm:$0x3f] }
 0x35c   :  { %v4464_v6 = vrot.slane %v11715_v15, %v13158_v32  ;;  %v4472_v7 = vrot.slane %v11716_v44, %v13158_v32 }
 0x35d   :  { %v4216_v29 = vadd.f32 %v10506_v55, %v4176_v19  ;;  %v11717_v19 = vld [vmem:[%s11919_s17 + $0x28] sm:$0x3f] }
 0x35e   :  { %v4468_v42 = vrot.slane %v11717_v19, %v13158_v32 }
 0x377   :  { %v10526_v56 = vpop.f32.mrb[52].mxu0 }
 0x378   :  { %v10548_v27 = vpop.f32.mrb[60].mxu1  ;;  %v10527_v61 = vpop.f32.mrb[53].mxu0 }
 0x379   :  { %v10528_v46 = vadd.f32 %v10527_v61, %v10526_v56  ;;  %v10549_v52 = vpop.f32.mrb[61].mxu1  ;;  %v10529_v10 = vpop.f32.mrb[54].mxu0 }
 0x37a   :  { %v10550_v20 = vadd.f32 %v10549_v52, %v10548_v27  ;;  %v10551_v28 = vpop.f32.mrb[62].mxu1  ;;  %v10530_v1 = vpop.f32.mrb[55].mxu0 }
 0x37b   :  { %v4256_v8 = vadd.f32 %v10528_v46, %v4216_v29  ;;  %v10552_v58 = vpop.f32.mrb[63].mxu1  ;;  %v11718_v29 = vld [vmem:[%s11919_s17 + $0x38] sm:$0x3f] }
 0x37c   :  { %v4476_v53 = vrot.slane %v11718_v29, %v13158_v32 }
 0x37d   :  { %v4296_v51 = vadd.f32 %v10550_v20, %v4256_v8 }
 0x397   :  { %v10570_v45 = vpop.f32.mrb[56].mxu0 }
 0x398   :  { %v10592_v40 = vpop.f32.mrb[64].mxu1  ;;  %v10571_v18 = vpop.f32.mrb[57].mxu0 }
 0x399   :  { %v10572_v37 = vadd.f32 %v10571_v18, %v10570_v45  ;;  %v10593_v60 = vpop.f32.mrb[65].mxu1  ;;  %v10573_v25 = vpop.f32.mrb[58].mxu0 }
 0x39a   :  { %v10594_v62 = vadd.f32 %v10593_v60, %v10592_v40  ;;  %v10595_v36 = vpop.f32.mrb[66].mxu1  ;;  %v10574_v2 = vpop.f32.mrb[59].mxu0 }
 0x39b   :  { %v4336_v34 = vadd.f32 %v10572_v37, %v4296_v51  ;;  %v10596_v23 = vpop.f32.mrb[67].mxu1 }
 0x39d   :  { %v13162_v13 = vadd.f32 %v10594_v62, %v4336_v34  ;;  %v11719_v62 = vld [vmem:[%s11919_s17 + $0x40] sm:$0x3f] }
 0x39e   :  { %v4480_v36 = vrot.slane %v11719_v62, %v13158_v32 }
 0x39f   :  { %14493 = vst [vmem:[#allocation8_spill] sm:$0xff] %v13162_v13  ;;  %v4934_v26 = vpop.f32.mrb[60].mxu0  ;;  %v13561_v13 = vld [vmem:[%s11919_s17 + $0x98] sm:$0x3f] }
 0x3a0   :  { %v4935_v63 = vadd.f32 %v4934_v26, %v4448_v17  ;;  %v4975_v3 = vpop.f32.mrb[68].mxu1  ;;  %v4936_v48 = vpop.f32.mrb[61].mxu0  ;;  %v11722_v26 = vld [vmem:[%s11919_s17 + $0x58] sm:$0x3f] }
 0x3a1   :  { %v4976_v21 = vadd.f32 %v4975_v3, %v4456_v31  ;;  %v4937_v16 = vadd.f32 %v4936_v48, %v4452_v30  ;;  %v4977_v33 = vpop.f32.mrb[69].mxu1  ;;  %v4938_v59 = vpop.f32.mrb[62].mxu0  ;;  %v4488_v31 = vrot.slane %v11720_v4, %v13158_v32  ;;  %v4484_v30 = vrot.slane %v11721_v24, %v13158_v32 }
 0x3a2   :  { %v13170_v47 = vmax.f32 %v4935_v63, 0.0  ;;  %v4978_v49 = vadd.f32 %v4977_v33, %v4460_v41  ;;  %v4979_v38 = vpop.f32.mrb[70].mxu1  ;;  %v4939_v50 = vpop.f32.mrb[63].mxu0  ;;  %v4492_v63 = vrot.slane %v11722_v26, %v13158_v32 }
 0x3a3   :  { %v13172_v39 = vmax.f32 %v4976_v21, 0.0  ;;  %v13174_v57 = vmax.f32 %v4937_v16, 0.0  ;;  %v4980_v22 = vpop.f32.mrb[71].mxu1 }
 0x3a4   :  { %v5622_v5 = vmul.f32 %v13170_v47, %v13170_v47  ;;  %v13178_v14 = vmax.f32 %v4978_v49, 0.0 }
 0x3a5   :  { %v5588_v11 = vadd.f32 %v13174_v57, %v13170_v47  ;;  %v5623_v55 = vmul.f32 %v13174_v57, %v13174_v57  ;;  %v5624_v54 = vmul.f32 %v13172_v39, %v13172_v39 }
 0x3a6   :  { %v5625_v27 = vmul.f32 %v13178_v14, %v13178_v14 }
 0x3a7   :  { %v5654_v43 = vadd.f32 %v5623_v55, %v5622_v5  ;;  %v5589_v12 = vadd.f32 %v5588_v11, %v13172_v39  ;;  %v5016_v56 = vpop.f32.mrb[64].mxu0 }
 0x3a8   :  { %v5017_v61 = vadd.f32 %v5016_v56, %v4464_v6  ;;  %v5057_v46 = vpop.f32.mrb[72].mxu1  ;;  %v5018_v52 = vpop.f32.mrb[65].mxu0 }
 0x3a9   :  { %v5590_v10 = vadd.f32 %v5589_v12, %v13178_v14  ;;  %v5655_v20 = vadd.f32 %v5654_v43, %v5624_v54  ;;  %v5058_v28 = vadd.f32 %v5057_v46, %v4472_v7  ;;  %v5019_v1 = vadd.f32 %v5018_v52, %v4468_v42  ;;  %v5059_v8 = vpop.f32.mrb[73].mxu1  ;;  %v5020_v58 = vpop.f32.mrb[66].mxu0  ;;  %v11723_v54 = vld [vmem:[%s11919_s17 + $0x60] sm:$0x3f]  ;;  %v11724_v52 = vld [vmem:[%s11919_s17 + $0x70] sm:$0x3f] }
 0x3aa   :  { %v13198_v51 = vmax.f32 %v5017_v61, 0.0  ;;  %v5060_v45 = vadd.f32 %v5059_v8, %v4476_v53  ;;  %v5061_v40 = vpop.f32.mrb[74].mxu1  ;;  %v5021_v18 = vpop.f32.mrb[67].mxu0  ;;  %v4496_v43 = vrot.slane %v11723_v54, %v13158_v32  ;;  %v11726_v58 = vld [vmem:[%s11919_s17 + $0x78] sm:$0x3f] }
 0x3ab   :  { %v5656_v37 = vadd.f32 %v5655_v20, %v5625_v27  ;;  %v13200_v60 = vmax.f32 %v5019_v1, 0.0  ;;  %v5062_v25 = vpop.f32.mrb[75].mxu1  ;;  %v13207_v23 = vmax.f32 %v5058_v28, 0.0  ;;  %v11725_v20 = vld [vmem:[%s11919_s17 + $0x68] sm:$0x3f] }
 0x3ac   :  { %14494 = vst [vmem:[#allocation11_spill] sm:$0xff] %v13198_v51  ;;  %v5591_v2 = vadd.f32 %v5590_v10, %v13198_v51  ;;  %v5626_v34 = vmul.f32 %v13198_v51, %v13198_v51  ;;  %v13209_v0 = vmax.f32 %v5060_v45, 0.0  ;;  %v4504_v10 = vrot.slane %v11724_v52, %v13158_v32 }
 0x3ad   :  { %14495 = vst [vmem:[#allocation12_spill] sm:$0xff] %v13207_v23  ;;  %v5627_v17 = vmul.f32 %v13200_v60, %v13200_v60  ;;  %v5628_v48 = vmul.f32 %v13207_v23, %v13207_v23  ;;  %v4500_v28 = vrot.slane %v11725_v20, %v13158_v32  ;;  %v4508_v45 = vrot.slane %v11726_v58, %v13158_v32 }
 0x3ae   :  { %v5657_v9 = vadd.f32 %v5656_v37, %v5626_v34  ;;  %v5592_v41 = vadd.f32 %v5591_v2, %v13200_v60  ;;  %v5629_v38 = vmul.f32 %v13209_v0, %v13209_v0 }
 0x3af   :  { %v5098_v3 = vpop.f32.mrb[68].mxu0 }
 0x3b0   :  { %v5658_v21 = vadd.f32 %v5657_v9, %v5627_v17  ;;  %v5593_v16 = vadd.f32 %v5592_v41, %v13207_v23  ;;  %v5099_v33 = vadd.f32 %v5098_v3, %v4480_v36  ;;  %v5139_v59 = vpop.f32.mrb[76].mxu1  ;;  %v5100_v49 = vpop.f32.mrb[69].mxu0 }
 0x3b1   :  { %v5140_v50 = vadd.f32 %v5139_v59, %v4488_v31  ;;  %v5101_v22 = vadd.f32 %v5100_v49, %v4484_v30  ;;  %v5141_v5 = vpop.f32.mrb[77].mxu1  ;;  %v5102_v15 = vpop.f32.mrb[70].mxu0 }
 0x3b2   :  { %v5594_v6 = vadd.f32 %v5593_v16, %v13209_v0  ;;  %v5659_v11 = vadd.f32 %v5658_v21, %v5628_v48  ;;  %v13226_v55 = vmax.f32 %v5099_v33, 0.0  ;;  %v5142_v44 = vadd.f32 %v5141_v5, %v4492_v63  ;;  %v5143_v7 = vpop.f32.mrb[78].mxu1  ;;  %v5103_v19 = vpop.f32.mrb[71].mxu0  ;;  %v11727_v33 = vld [vmem:[%s11919_s17 + $0x80] sm:$0x3f] }
 0x3b3   :  { %v13228_v42 = vmax.f32 %v5140_v50, 0.0  ;;  %v13230_v29 = vmax.f32 %v5101_v22, 0.0  ;;  %v5144_v53 = vpop.f32.mrb[79].mxu1  ;;  %v4512_v59 = vrot.slane %v11727_v33, %v13158_v32  ;;  %v11728_v15 = vld [vmem:[%s11919_s17 + $0x90] sm:$0x3f] }
 0x3b4   :  { %v5660_v12 = vadd.f32 %v5659_v11, %v5629_v38  ;;  %v5595_v56 = vadd.f32 %v5594_v6, %v13226_v55  ;;  %v5630_v27 = vmul.f32 %v13226_v55, %v13226_v55  ;;  %v13237_v61 = vmax.f32 %v5142_v44, 0.0  ;;  %v11729_v11 = vld [vmem:[%s11919_s17 + $0x88] sm:$0x3f]  ;;  %v11730_v53 = vld [vmem:[%s11919_s17 + $0x98] sm:$0x3f] }
 0x3b5   :  { %14496 = vst [vmem:[#allocation9_spill] sm:$0xff] %v13230_v29  ;;  %v5631_v46 = vmul.f32 %v13230_v29, %v13230_v29  ;;  %v5632_v18 = vmul.f32 %v13228_v42, %v13228_v42  ;;  %v4520_v6 = vrot.slane %v11728_v15, %v13158_v32  ;;  %v4516_v44 = vrot.slane %v11729_v11, %v13158_v32 }
 0x3b6   :  { %14497 = vst [vmem:[#allocation4_spill] sm:$0xff] %v13237_v61  ;;  %v5661_v1 = vadd.f32 %v5660_v12, %v5630_v27  ;;  %v5596_v8 = vadd.f32 %v5595_v56, %v13230_v29  ;;  %v5633_v34 = vmul.f32 %v13237_v61, %v13237_v61  ;;  %v4524_v54 = vrot.slane %v11730_v53, %v13158_v32 }
 0x3b7   :  { %v5180_v40 = vpop.f32.mrb[72].mxu0 }
 0x3b8   :  { %v5662_v37 = vadd.f32 %v5661_v1, %v5631_v46  ;;  %v5597_v25 = vadd.f32 %v5596_v8, %v13228_v42  ;;  %v5181_v62 = vadd.f32 %v5180_v40, %v4496_v43  ;;  %v5221_v36 = vpop.f32.mrb[80].mxu1  ;;  %v5182_v2 = vpop.f32.mrb[73].mxu0 }
 0x3b9   :  { %v5222_v17 = vadd.f32 %v5221_v36, %v4504_v10  ;;  %v5183_v4 = vadd.f32 %v5182_v2, %v4500_v28  ;;  %v5223_v31 = vpop.f32.mrb[81].mxu1  ;;  %v5184_v24 = vpop.f32.mrb[74].mxu0 }
 0x3ba   :  { %v5598_v30 = vadd.f32 %v5597_v25, %v13237_v61  ;;  %v5663_v9 = vadd.f32 %v5662_v37, %v5632_v18  ;;  %v13254_v41 = vmax.f32 %v5181_v62, 0.0  ;;  %v5224_v26 = vadd.f32 %v5223_v31, %v4508_v45  ;;  %v5225_v63 = vpop.f32.mrb[82].mxu1  ;;  %v5185_v3 = vpop.f32.mrb[75].mxu0 }
 0x3bb   :  { %v13256_v48 = vmax.f32 %v5222_v17, 0.0  ;;  %v13258_v21 = vmax.f32 %v5183_v4, 0.0  ;;  %v5226_v16 = vpop.f32.mrb[83].mxu1  ;;  %v13289_v17 = vld [vmem:[%s11919_s17 + $0xa0] sm:$0x3f] }
 0x3bc   :  { %v5664_v49 = vadd.f32 %v5663_v9, %v5633_v34  ;;  %v5599_v38 = vadd.f32 %v5598_v30, %v13254_v41  ;;  %v5634_v50 = vmul.f32 %v13254_v41, %v13254_v41  ;;  %v13265_v22 = vmax.f32 %v5224_v26, 0.0  ;;  %v13301_v63 = vld [vmem:[%s11919_s17 + $0xb0] sm:$0x3f]  ;;  %v11733_v16 = vld [vmem:[%s11919_s17 + $0xa8] sm:$0x3f] }
 0x3bd   :  { %v5635_v5 = vmul.f32 %v13258_v21, %v13258_v21  ;;  %v5636_v12 = vmul.f32 %v13256_v48, %v13256_v48  ;;  %v4528_v4 = vrot.slane %v13289_v17, %v13158_v32  ;;  %v4536_v3 = vrot.slane %v13301_v63, %v13158_v32 }
 0x3be   :  { %v5665_v7 = vadd.f32 %v5664_v49, %v5634_v50  ;;  %v5600_v19 = vadd.f32 %v5599_v38, %v13258_v21  ;;  %v5637_v20 = vmul.f32 %v13265_v22, %v13265_v22  ;;  %v4532_v33 = vrot.slane %v11733_v16, %v13158_v32  ;;  %v11734_v38 = vld [vmem:[%s11919_s17 + $0xb8] sm:$0x3f] }
 0x3bf   :  { %v5262_v43 = vpop.f32.mrb[76].mxu0  ;;  %v4540_v50 = vrot.slane %v11734_v38, %v13158_v32 }
 0x3c0   :  { %v5666_v56 = vadd.f32 %v5665_v7, %v5635_v5  ;;  %v5601_v27 = vadd.f32 %v5600_v19, %v13256_v48  ;;  %v5263_v46 = vadd.f32 %v5262_v43, %v4512_v59  ;;  %v5303_v52 = vpop.f32.mrb[84].mxu1  ;;  %v5264_v10 = vpop.f32.mrb[77].mxu0 }
 0x3c1   :  { %v5304_v28 = vadd.f32 %v5303_v52, %v4520_v6  ;;  %v5265_v1 = vadd.f32 %v5264_v10, %v4516_v44  ;;  %v5305_v8 = vpop.f32.mrb[85].mxu1  ;;  %v5266_v58 = vpop.f32.mrb[78].mxu0 }
 0x3c2   :  { %v5602_v45 = vadd.f32 %v5601_v27, %v13265_v22  ;;  %v5667_v40 = vadd.f32 %v5666_v56, %v5636_v12  ;;  %v13282_v18 = vmax.f32 %v5263_v46, 0.0  ;;  %v5306_v37 = vadd.f32 %v5305_v8, %v4524_v54  ;;  %v5307_v25 = vpop.f32.mrb[86].mxu1  ;;  %v5267_v62 = vpop.f32.mrb[79].mxu0 }
 0x3c3   :  { %v13284_v36 = vmax.f32 %v5304_v28, 0.0  ;;  %v13286_v2 = vmax.f32 %v5265_v1, 0.0  ;;  %v5308_v34 = vpop.f32.mrb[87].mxu1 }
 0x3c4   :  { %v5668_v31 = vadd.f32 %v5667_v40, %v5637_v20  ;;  %v5603_v24 = vadd.f32 %v5602_v45, %v13282_v18  ;;  %v5638_v30 = vmul.f32 %v13282_v18, %v13282_v18  ;;  %v13296_v9 = vmax.f32 %v5306_v37, 0.0  ;;  %v13323_v45 = vld [vmem:[%s11919_s17 + $0xc0] sm:$0x3f] }
 0x3c5   :  { %v5639_v26 = vmul.f32 %v13286_v2, %v13286_v2  ;;  %v5640_v15 = vmul.f32 %v13284_v36, %v13284_v36  ;;  %v4544_v40 = vrot.slane %v13323_v45, %v13158_v32 }
 0x3c6   :  { %v5669_v59 = vadd.f32 %v5668_v31, %v5638_v30  ;;  %v5604_v49 = vadd.f32 %v5603_v24, %v13286_v2  ;;  %v5641_v53 = vmul.f32 %v13296_v9, %v13296_v9  ;;  %v13335_v31 = vld [vmem:[%s11919_s17 + $0xd0] sm:$0x3f]  ;;  %v11737_v30 = vld [vmem:[%s11919_s17 + $0xc8] sm:$0x3f] }
 0x3c7   :  { %v5344_v5 = vpop.f32.mrb[80].mxu0  ;;  %v4552_v24 = vrot.slane %v13335_v31, %v13158_v32 }
 0x3c8   :  { %v5670_v6 = vadd.f32 %v5669_v59, %v5639_v26  ;;  %v5605_v11 = vadd.f32 %v5604_v49, %v13284_v36  ;;  %v5345_v44 = vadd.f32 %v5344_v5, %v4528_v4  ;;  %v5385_v7 = vpop.f32.mrb[88].mxu1  ;;  %v5346_v19 = vpop.f32.mrb[81].mxu0  ;;  %v4548_v26 = vrot.slane %v11737_v30, %v13158_v32 }
 0x3c9   :  { %v5386_v54 = vadd.f32 %v5385_v7, %v4536_v3  ;;  %v5347_v43 = vadd.f32 %v5346_v19, %v4532_v33  ;;  %v5387_v12 = vpop.f32.mrb[89].mxu1  ;;  %v5348_v56 = vpop.f32.mrb[82].mxu0  ;;  %v11738_v33 = vld [vmem:[%s11919_s17 + $0xd8] sm:$0x3f] }
 0x3ca   :  { %v5606_v27 = vadd.f32 %v5605_v11, %v13296_v9  ;;  %v5671_v46 = vadd.f32 %v5670_v6, %v5640_v15  ;;  %v13316_v52 = vmax.f32 %v5345_v44, 0.0  ;;  %v5388_v10 = vadd.f32 %v5387_v12, %v4540_v50  ;;  %v5389_v20 = vpop.f32.mrb[90].mxu1  ;;  %v5349_v28 = vpop.f32.mrb[83].mxu0 }
 0x3cb   :  { %v13318_v1 = vmax.f32 %v5386_v54, 0.0  ;;  %v13320_v8 = vmax.f32 %v5347_v43, 0.0  ;;  %v5390_v58 = vpop.f32.mrb[91].mxu1  ;;  %v4556_v59 = vrot.slane %v11738_v33, %v13158_v32 }
 0x3cc   :  { %v5672_v37 = vadd.f32 %v5671_v46, %v5641_v53  ;;  %v5607_v25 = vadd.f32 %v5606_v27, %v13316_v52  ;;  %v5642_v62 = vmul.f32 %v13316_v52, %v13316_v52  ;;  %v13330_v34 = vmax.f32 %v5388_v10, 0.0 }
 0x3cd   :  { %v5643_v4 = vmul.f32 %v13320_v8, %v13320_v8  ;;  %v5644_v38 = vmul.f32 %v13318_v1, %v13318_v1 }
 0x3ce   :  { %v5673_v3 = vadd.f32 %v5672_v37, %v5642_v62  ;;  %v5608_v16 = vadd.f32 %v5607_v25, %v13320_v8  ;;  %v5645_v44 = vmul.f32 %v13330_v34, %v13330_v34 }
 0x3cf   :  { %v5426_v49 = vpop.f32.mrb[84].mxu0 }
 0x3d0   :  { %v5674_v50 = vadd.f32 %v5673_v3, %v5643_v4  ;;  %v5609_v5 = vadd.f32 %v5608_v16, %v13318_v1  ;;  %v5427_v15 = vadd.f32 %v5426_v49, %v4544_v40  ;;  %v5467_v6 = vpop.f32.mrb[92].mxu1  ;;  %v5428_v11 = vpop.f32.mrb[85].mxu0  ;;  %v13357_v40 = vld [vmem:[%s11919_s17 + $0xe0] sm:$0x3f]  ;;  %v13374_v16 = vld [vmem:[%s11919_s17 + $0xe8] sm:$0x3f] }
 0x3d1   :  { %v5468_v7 = vadd.f32 %v5467_v6, %v4552_v24  ;;  %v5429_v19 = vadd.f32 %v5428_v11, %v4548_v26  ;;  %v5469_v53 = vpop.f32.mrb[93].mxu1  ;;  %v5430_v54 = vpop.f32.mrb[86].mxu0  ;;  %v4560_v37 = vrot.slane %v13357_v40, %v13158_v32  ;;  %v13369_v26 = vld [vmem:[%s11919_s17 + $0xf0] sm:$0x3f]  ;;  %v4564_v33 = vrot.slane %v13374_v16, %v13158_v32 }
 0x3d2   :  { %v5610_v43 = vadd.f32 %v5609_v5, %v13330_v34  ;;  %v5675_v12 = vadd.f32 %v5674_v50, %v5644_v38  ;;  %v13350_v56 = vmax.f32 %v5427_v15, 0.0  ;;  %v5470_v27 = vadd.f32 %v5469_v53, %v4556_v59  ;;  %v5471_v46 = vpop.f32.mrb[94].mxu1  ;;  %v5431_v10 = vpop.f32.mrb[87].mxu0  ;;  %14498 = vst [vmem:[#allocation5_spill] sm:$0xff] %v13369_v26  ;;  %v11742_v38 = vld [vmem:[%s11919_s17 + $0xf8] sm:$0x3f] }
 0x3d3   :  { %v13352_v20 = vmax.f32 %v5468_v7, 0.0  ;;  %v13354_v28 = vmax.f32 %v5429_v19, 0.0  ;;  %v5472_v58 = vpop.f32.mrb[95].mxu1  ;;  %v4568_v3 = vrot.slane %v13369_v26, %v13158_v32  ;;  %v4572_v50 = vrot.slane %v11742_v38, %v13158_v32 }
 0x3d4   :  { %v5676_v25 = vadd.f32 %v5675_v12, %v5645_v44  ;;  %v5611_v62 = vadd.f32 %v5610_v43, %v13350_v56  ;;  %v5646_v4 = vmul.f32 %v13350_v56, %v13350_v56  ;;  %v13364_v24 = vmax.f32 %v5470_v27, 0.0 }
 0x3d5   :  { %v5647_v30 = vmul.f32 %v13354_v28, %v13354_v28  ;;  %v5648_v15 = vmul.f32 %v13352_v20, %v13352_v20 }
 0x3d6   :  { %v5677_v59 = vadd.f32 %v5676_v25, %v5646_v4  ;;  %v5612_v49 = vadd.f32 %v5611_v62, %v13354_v28  ;;  %v5649_v53 = vmul.f32 %v13364_v24, %v13364_v24 }
 0x3d7   :  { %v5508_v5 = vpop.f32.mrb[88].mxu0 }
 0x3d8   :  { %v5678_v6 = vadd.f32 %v5677_v59, %v5647_v30  ;;  %v5613_v11 = vadd.f32 %v5612_v49, %v13352_v20  ;;  %v5509_v44 = vadd.f32 %v5508_v5, %v4560_v37  ;;  %v5549_v7 = vpop.f32.mrb[96].mxu1  ;;  %v5510_v19 = vpop.f32.mrb[89].mxu0 }
 0x3d9   :  { %v5550_v54 = vadd.f32 %v5549_v7, %v4568_v3  ;;  %v5511_v43 = vadd.f32 %v5510_v19, %v4564_v33  ;;  %v5551_v12 = vpop.f32.mrb[97].mxu1  ;;  %v5512_v27 = vpop.f32.mrb[90].mxu0 }
 0x3da   :  { %v5614_v46 = vadd.f32 %v5613_v11, %v13364_v24  ;;  %v5679_v32 = vadd.f32 %v5678_v6, %v5648_v15  ;;  %v13387_v10 = vmax.f32 %v5509_v44, 0.0  ;;  %v5552_v58 = vadd.f32 %v5551_v12, %v4572_v50  ;;  %v5553_v25 = vpop.f32.mrb[98].mxu1  ;;  %v5513_v62 = vpop.f32.mrb[91].mxu0  ;;  %v11379_v12 = vld [vmem:[%s13151_s26 + $0x8] sm:$0xff]  }
 0x3db   :  { %v13389_v4 = vmax.f32 %v5550_v54, 0.0  ;;  %v13391_v37 = vmax.f32 %v5511_v43, 0.0  ;;  %v5554_v30 = vpop.f32.mrb[99].mxu1  ;;  %v11377_v54 = vld [vmem:[%s13151_s26 + $0x48] sm:$0xff]   ;;  %v11384_v25 = vld [vmem:[%s13151_s26 + $0x90] sm:$0xff]   ;;  %v11385_v62 = vld [vmem:[%s13151_s26 + $0x58] sm:$0xff]  }
 0x3dc   :  { %v5680_v59 = vadd.f32 %v5679_v32, %v5649_v53  ;;  %v5615_v3 = vadd.f32 %v5614_v46, %v13387_v10  ;;  %v5650_v33 = vmul.f32 %v13387_v10, %v13387_v10  ;;  %v13396_v49 = vmax.f32 %v5552_v58, 0.0  ;;  %v11378_v43 = vld [vmem:[%s13151_s26 + $0xc8] sm:$0xff]   ;;  %10600 = vmatprep.subr.bf16.mxu0 %v11377_v54  ;;  %v11381_v46 = vld [vmem:[%s13151_s26 + $0x50] sm:$0xff]   ;;  %v11386_v30 = vld [vmem:[%s13151_s26 + $0xd8] sm:$0xff]  }
 0x3dd   :  { %v5651_v38 = vmul.f32 %v13391_v37, %v13391_v37  ;;  %v5652_v6 = vmul.f32 %v13389_v4, %v13389_v4  ;;  %10622 = vmatprep.subr.bf16.mxu1 %v11378_v43  ;;  %v11380_v27 = vld [vmem:[%s13151_s26 + $0x88] sm:$0xff]   ;;  %10601 = vmatpush3.bf16.msra.mxu0 %v11379_v12  ;;  %v11382_v32 = vld [vmem:[%s13151_s26 + $0xd0] sm:$0xff]   ;;  %v11401_v43 = vld [vmem:[%s13151_s26 + $0x78] sm:$0xff]  }
 0x3de   :  { %v5616_v50 = vadd.f32 %v5615_v3, %v13391_v37  ;;  %v5681_v5 = vadd.f32 %v5680_v59, %v5650_v33  ;;  %v5653_v7 = vmul.f32 %v13396_v49, %v13396_v49  ;;  %10623 = vmatpush3.bf16.msra.mxu1 %v11380_v27  ;;  %v11383_v58 = vld [vmem:[%s13151_s26 + $0x10] sm:$0xff]   ;;  %10602 = vmatprep.subr.bf16.mxu0 %v11381_v46  ;;  %v11387_v59 = vld [vmem:[%s13151_s26 + $0x18] sm:$0xff]   ;;  %v11389_v33 = vld [vmem:[%s13151_s26 + $0x60] sm:$0xff]  }
 0x3df   :  { %10624 = vmatprep.subr.bf16.mxu1 %v11382_v32  ;;  %v11388_v3 = vld [vmem:[%s13151_s26 + $0x98] sm:$0xff]   ;;  %v11400_v54 = vld [vmem:[%s13151_s26 + $0xb0] sm:$0xff]   ;;  %v11405_v32 = vld [vmem:[%s13151_s26 + $0x140] sm:$0xff]  }
 0x3e0   :  { %v5617_v15 = vadd.f32 %v5616_v50, %v13389_v4  ;;  %v5682_v11 = vadd.f32 %v5681_v5, %v5651_v38  ;;  %v11390_v38 = vld [vmem:[%s13151_s26 + $0xe0] sm:$0xff]   ;;  %v11402_v12 = vld [vmem:[%s13151_s26 + $0xf8] sm:$0xff]  }
 0x3e1   :  { %10603 = vmatpush3.bf16.msra.mxu0 %v11383_v58  ;;  %v11391_v50 = vld [vmem:[%s13151_s26 + $0x20] sm:$0xff]   ;;  %v11403_v27 = vld [vmem:[%s13151_s26 + $0x38] sm:$0xff]  }
 0x3e2   :  { %v5618_v44 = vadd.f32 %v5617_v15, %v13396_v49  ;;  %v5683_v19 = vadd.f32 %v5682_v11, %v5652_v6  ;;  %10625 = vmatpush3.bf16.msra.mxu1 %v11384_v25  ;;  %10604 = vmatprep.subr.bf16.mxu0 %v11385_v62  ;;  %v11392_v5 = vld [vmem:[%s13151_s26 + $0xa0] sm:$0xff]   ;;  %v11393_v15 = vld [vmem:[%s13151_s26 + $0x68] sm:$0xff]   ;;  %v11404_v46 = vld [vmem:[%s13151_s26 + $0xb8] sm:$0xff]  }
 0x3e3   :  { %10626 = vmatprep.subr.bf16.mxu1 %v11386_v30  ;;  %v11394_v6 = vld [vmem:[%s13151_s26 + $0xe8] sm:$0xff]   ;;  %v11406_v58 = vld [vmem:[%s13151_s26 + $0x1c0] sm:$0xff]  }
 0x3e4   :  { %5619 = vadd.xlane.f32.xlu1 %v5618_v44  ;;  %v5684_v53 = vadd.f32 %v5683_v19, %v5653_v7  ;;  %v11395_v11 = vld [vmem:[%s13151_s26 + $0x28] sm:$0xff]   ;;  %v11397_v7 = vld [vmem:[%s13151_s26 + $0x70] sm:$0xff]  }
 0x3e5   :  { %10605 = vmatpush3.bf16.msra.mxu0 %v11387_v59  ;;  %v11396_v44 = vld [vmem:[%s13151_s26 + $0xa8] sm:$0xff]   ;;  %v11398_v19 = vld [vmem:[%s13151_s26 + $0xf0] sm:$0xff]   ;;  %v13440_v59 = vsub.s32 4, %v14492_v35 }
 0x3e6   :  { %5685 = vadd.xlane.f32.xlu0 %v5684_v53  ;;  %10627 = vmatpush3.bf16.msra.mxu1 %v11388_v3  ;;  %v11399_v53 = vld [vmem:[%s13151_s26 + $0x30] sm:$0xff]  }
 0x3e7   :  { %10606 = vmatprep.subr.bf16.mxu0 %v11389_v33  ;;  %10628 = vmatprep.subr.bf16.mxu1 %v11390_v38 }
 0x3e9   :  { %10607 = vmatpush3.bf16.msra.mxu0 %v11391_v50  ;;  %v13445_v50 = vld [vmem:[%s11919_s17] sm:$0x3f] }
 0x3ea   :  { %10629 = vmatpush3.bf16.msra.mxu1 %v11392_v5  ;;  %10608 = vmatprep.subr.bf16.mxu0 %v11393_v15  ;;  %v13450_v15 = vld [vmem:[%s11919_s17 + $0x10] sm:$0x3f] }
 0x3eb   :  { %10630 = vmatprep.subr.bf16.mxu1 %v11394_v6  ;;  %v13566_v6 = vld [vmem:[%s11919_s17 + $0xa8] sm:$0x3f] }
 0x3ed   :  { %10609 = vmatpush3.bf16.msra.mxu0 %v11395_v11  ;;  %v13455_v11 = vld [vmem:[%s11919_s17 + $0x40] sm:$0x3f] }
 0x3ee   :  { %10631 = vmatpush3.bf16.msra.mxu1 %v11396_v44  ;;  %10610 = vmatprep.subr.bf16.mxu0 %v11397_v7 }
 0x3ef   :  { %10632 = vmatprep.subr.bf16.mxu1 %v11398_v19  ;;  %v13460_v19 = vld [vmem:[%s11919_s17 + $0x50] sm:$0x3f] }
 0x3f1   :  { %10611 = vmatpush3.bf16.msra.mxu0 %v11399_v53  ;;  %v13552_v53 = vld [vmem:[%s11919_s17 + $0x88] sm:$0x3f] }
 0x3f2   :  { %10633 = vmatpush3.bf16.msra.mxu1 %v11400_v54  ;;  %10612 = vmatprep.subr.bf16.mxu0 %v11401_v43  ;;  %v13465_v54 = vld [vmem:[%s11919_s17 + $0x60] sm:$0x3f]  ;;  %v13500_v43 = vld [vmem:[%s11919_s17 + $0x8] sm:$0x3f] }
 0x3f3   :  { %10634 = vmatprep.subr.bf16.mxu1 %v11402_v12  ;;  %v13470_v12 = vld [vmem:[%s11919_s17 + $0x70] sm:$0x3f] }
 0x3f5   :  { %10613 = vmatpush3.bf16.msra.mxu0 %v11403_v27 }
 0x3f6   :  { %10635 = vmatpush3.bf16.msra.mxu1 %v11404_v46  ;;  %10642 = vmatprep.subr.bf16.mxu0 %v11405_v32  ;;  %v13475_v46 = vsub.s32 5, %v14492_v35  ;;  %v13478_v32 = vld [vmem:[%s11919_s17 + $0x80] sm:$0x3f]  ;;  %v13505_v35 = vld [vmem:[%s11919_s17 + $0x18] sm:$0x3f] }
 0x3f7   :  { %10664 = vmatprep.subr.bf16.mxu1 %v11406_v58  ;;  %v13541_v58 = vld [vmem:[%s11919_s17 + $0x78] sm:$0x3f] }
 0x471   :  { %v5620_v25 = vpop.xlane.xlu1 %5619 }
 0x472   :  { %v13437_v62 = vmul.f32 0.00024414063, %v5620_v25  ;;  %v13483_v25 = vld [vmem:[%s11919_s17 + $0x90] sm:$0x3f] }
 0x473   :  { %v5686_v30 = vpop.xlane.xlu0 %5685 }
 0x474   :  { %14499 = vst [vmem:[#allocation6_spill] sm:$0xff] %v13437_v62  ;;  %v5687_v3 = vmul.f32 0.00024414063, %v5686_v30  ;;  %v5688_v33 = vmul.f32 %v13437_v62, %v13437_v62  ;;  %v13514_v30 = vld [vmem:[%s11919_s17 + $0x28] sm:$0x3f]  ;;  %v5691_v61 = vsub.f32 %v13170_v47, %v13437_v62  ;;  %v5692_v5 = vsub.f32 %v13174_v57, %v13437_v62 }
 0x475   :  { %v5693_v44 = vsub.f32 %v13172_v39, %v13437_v62  ;;  %v5694_v27 = vsub.f32 %v13178_v14, %v13437_v62  ;;  %v5698_v29 = vsub.f32 %v13209_v0, %v13437_v62  ;;  %v5701_v47 = vsub.f32 %v13228_v42, %v13437_v62 }
 0x476   :  { %v5689_v38 = vsub.f32 %v5687_v3, %v5688_v33  ;;  %v13519_v3 = vld [vmem:[%s11919_s17 + $0x38] sm:$0x3f]  ;;  %v5703_v57 = vsub.f32 %v13254_v41, %v13437_v62  ;;  %v5704_v39 = vsub.f32 %v13258_v21, %v13437_v62  ;;  %v5705_v14 = vsub.f32 %v13256_v48, %v13437_v62 }
 0x477   :  { %v5707_v0 = vsub.f32 %v13282_v18, %v13437_v62  ;;  %v5709_v42 = vsub.f32 %v13284_v36, %v13437_v62  ;;  %v5710_v41 = vsub.f32 %v13296_v9, %v13437_v62  ;;  %v5711_v48 = vsub.f32 %v13316_v52, %v13437_v62 }
 0x478   :  { %v5690_v7 = vmax.f32 %v5689_v38, 0.0  ;;  %v5696_v38 = vsub.f32 %v13200_v60, %v13437_v62  ;;  %v5706_v60 = vsub.f32 %v13265_v22, %v13437_v62  ;;  %v5712_v21 = vsub.f32 %v13320_v8, %v13437_v62 }
 0x479   :  { %v5713_v22 = vsub.f32 %v13318_v1, %v13437_v62  ;;  %v5714_v18 = vsub.f32 %v13330_v34, %v13437_v62  ;;  %v5715_v36 = vsub.f32 %v13350_v56, %v13437_v62  ;;  %v5717_v9 = vsub.f32 %v13352_v20, %v13437_v62 }
 0x47a   :  { %v5723_v33 = vadd.f32 1e-12, %v5690_v7  ;;  %v13536_v7 = vld [vmem:[%s11919_s17 + $0x68] sm:$0x3f]  ;;  %v5718_v52 = vsub.f32 %v13364_v24, %v13437_v62  ;;  %v5719_v8 = vsub.f32 %v13387_v10, %v13437_v62  ;;  %v5720_v1 = vsub.f32 %v13391_v37, %v13437_v62 }
 0x47b   :  { %v5721_v34 = vsub.f32 %v13389_v4, %v13437_v62  ;;  %v5722_v56 = vsub.f32 %v13396_v49, %v13437_v62 }
 0x47c   :  { %11667 = vrsqrt.f32 %v5723_v33  ;;  %v5699_v33 = vsub.f32 %v13226_v55, %v13437_v62  ;;  %v5708_v55 = vsub.f32 %v13286_v2, %v13437_v62  ;;  %v5716_v2 = vsub.f32 %v13354_v28, %v13437_v62 }
 0x486   :  { %v13602_v23 = vpop.eup %11667 }
 0x487   :  { %14500 = vst [vmem:[#allocation7_spill] sm:$0xff] %v13602_v23  ;;  %v5725_v28 = vmul.f32 %v13602_v23, %v5691_v61  ;;  %v5727_v51 = vmul.f32 %v13602_v23, %v5693_v44  ;;  %v5733_v20 = vmul.f32 %v13602_v23, %v5699_v33  ;;  %v5735_v24 = vmul.f32 %v13602_v23, %v5701_v47 }
 0x488   :  { %v13633_v26 = vmul.f32 %v13602_v23, %v5703_v57  ;;  %v13636_v10 = vmul.f32 %v13602_v23, %v5704_v39  ;;  %v13639_v37 = vmul.f32 %v13602_v23, %v5705_v14  ;;  %v13642_v4 = vmul.f32 %v13602_v23, %v5706_v60 }
 0x489   :  { %v13645_v61 = vmul.f32 %v13602_v23, %v5707_v0  ;;  %v13648_v49 = vmul.f32 %v13602_v23, %v5708_v55  ;;  %v13651_v44 = vmul.f32 %v13602_v23, %v5709_v42  ;;  %v13654_v33 = vmul.f32 %v13602_v23, %v5710_v41 }
 0x48a   :  { %v13657_v47 = vmul.f32 %v13602_v23, %v5711_v48  ;;  %v13660_v57 = vmul.f32 %v13602_v23, %v5712_v21  ;;  %v13663_v39 = vmul.f32 %v13602_v23, %v5713_v22  ;;  %v13666_v14 = vmul.f32 %v13602_v23, %v5714_v18 }
 0x48b   :  { %v13669_v60 = vmul.f32 %v13602_v23, %v5715_v36  ;;  %v13672_v0 = vmul.f32 %v13602_v23, %v5716_v2  ;;  %v13675_v55 = vmul.f32 %v13602_v23, %v5717_v9  ;;  %v13678_v42 = vmul.f32 %v13602_v23, %v5718_v52 }
 0x48c   :  { %v13681_v41 = vmul.f32 %v13602_v23, %v5719_v8  ;;  %v13684_v48 = vmul.f32 %v13602_v23, %v5720_v1  ;;  %v13687_v21 = vmul.f32 %v13602_v23, %v5721_v34  ;;  %v13690_v22 = vmul.f32 %v13602_v23, %v5722_v56  ;;  %v13723_v56 = vld [vmem:[%s11919_s17 + $0xa0] sm:$0x3f] }
 0x48d   :  { %14501 = vst [vmem:[#allocation10_spill] sm:$0xff] %v13672_v0  ;;  %14502 = vst [vmem:[#allocation3_spill] sm:$0xff] %v13678_v42  ;;  %v5726_v18 = vmul.f32 %v13602_v23, %v5692_v5  ;;  %v5728_v36 = vmul.f32 %v13602_v23, %v5694_v27  ;;  %v14505_v2 = vrot.slane %v13445_v50, %v13440_v59  ;;  %v13728_v5 = vld [vmem:[%s11919_s17 + $0xb0] sm:$0x3f] }
 0x48e   :  { %14503 = vst [vmem:[#allocation13_spill] sm:$0xff] %v13684_v48  ;;  %14504 = vst [vmem:[#allocation14_spill] sm:$0xff] %v13690_v22  ;;  %v14506_v52 = vrot.slane %v13450_v15, %v13440_v59  ;;  %v5730_v1 = vmul.f32 %v13602_v23, %v5696_v38  ;;  %v5732_v34 = vmul.f32 %v13602_v23, %v5698_v29  ;;  %v13716_v38 = vld [vmem:[%s11919_s17 + $0xc8] sm:$0x3f]  ;;  %v13733_v23 = vld [vmem:[%s11919_s17 + $0xd8] sm:$0x3f] }
 0x48f   :  { %v5885_v9 = vmul.f32 %v14505_v2, %v5725_v28  ;;  %v13711_v2 = vld [vmem:[%s11919_s17 + $0xb8] sm:$0x3f]  ;;  %v14507_v29 = vrot.slane %v13500_v43, %v13440_v59  ;;  %v14509_v27 = vrot.slane %v13445_v50, %v13475_v46  ;;  %v14510_v28 = vrot.slane %v13450_v15, %v13475_v46 }
 0x490   :  { %v5887_v8 = vmul.f32 %v14506_v52, %v5727_v51  ;;  %v14508_v52 = vrot.slane %v13505_v35, %v13440_v59  ;;  %v14511_v51 = vrot.slane %v13455_v11, %v13440_v59 }
 0x491   :  { %v5886_v62 = vmul.f32 %v14507_v29, %v5726_v18  ;;  %v6045_v48 = vadd.f32 %v14509_v27, %v5885_v9  ;;  %v14512_v18 = vrot.slane %v13460_v19, %v13440_v59  ;;  %v14514_v9 = vrot.slane %v13519_v3, %v13440_v59 }
 0x492   :  { %v5888_v22 = vmul.f32 %v14508_v52, %v5728_v36  ;;  %v6047_v42 = vadd.f32 %v14510_v28, %v5887_v8  ;;  %v5893_v0 = vmul.f32 %v14511_v51, %v5733_v20  ;;  %v14513_v36 = vrot.slane %v13514_v30, %v13440_v59 }
 0x493   :  { %v5895_v29 = vmul.f32 %v14512_v18, %v5735_v24  ;;  %v5892_v15 = vmul.f32 %v14514_v9, %v5732_v34  ;;  %v14515_v8 = vrot.slane %v13500_v43, %v13475_v46  ;;  %v14516_v20 = vrot.slane %v13505_v35, %v13475_v46  ;;  %v11408_v9 = vld [vmem:[%s13151_s26 + $0x180] sm:$0xff]  }
 0x494   :  { %v5890_v50 = vmul.f32 %v14513_v36, %v5730_v1  ;;  %v6020_v24 = vrot.slane %v13716_v38, %v13475_v46  ;;  %v5876_v51 = vrot.slane %v13374_v16, %v13440_v59  ;;  %v6077_v52 = vpack.c.bf16 %v6045_v48, %v6045_v48  ;;  %v11407_v36 = vld [vmem:[%s13151_s26 + $0x100] sm:$0xff]  }
 0x495   :  { %v6046_v27 = vadd.f32 %v14515_v8, %v5886_v62  ;;  %v6048_v28 = vadd.f32 %v14516_v20, %v5888_v22  ;;  %v6079_v1 = vpack.c.bf16 %v6047_v42, %v6047_v42  ;;  %v14517_v18 = vrot.slane %v13514_v30, %v13475_v46  ;;  %v13782_v48 = vld [vmem:[%s11919_s17 + $0xc0] sm:$0x3f] }
 0x496   :  { %v14518_v43 = vrot.slane %v13519_v3, %v13475_v46  ;;  %v6028_v8 = vrot.slane %v13733_v23, %v13475_v46  ;;  %v6016_v30 = vrot.slane %v13782_v48, %v13475_v46  ;;  %v14519_v3 = vrot.slane %v13465_v54, %v13440_v59 }
 0x497   :  { %v6050_v34 = vadd.f32 %v14517_v18, %v5890_v50  ;;  %v6078_v35 = vpack.c.bf16 %v6046_v27, %v6046_v27  ;;  %v6080_v22 = vpack.c.bf16 %v6048_v28, %v6048_v28  ;;  %v14520_v50 = vrot.slane %v13470_v12, %v13440_v59 }
 0x498   :  { %v6052_v62 = vadd.f32 %v14518_v43, %v5892_v15  ;;  %v5897_v42 = vmul.f32 %v14519_v3, %v13633_v26  ;;  %v14521_v27 = vrot.slane %v13455_v11, %v13475_v46  ;;  %v14522_v28 = vrot.slane %v13460_v19, %v13475_v46  ;;  %v11410_v3 = vld [vmem:[%s13151_s26 + $0x1c8] sm:$0xff]   ;;  %v13815_v19 = vld [vmem:[%s11919_s17 + $0xd0] sm:$0x3f] }
 0x499   :  { %v5899_v15 = vmul.f32 %v14520_v50, %v13639_v37  ;;  %v14523_v43 = vrot.slane %v13478_v32, %v13440_v59  ;;  %8189 = vmatprep.mubr.bf16.mxu0 %v6078_v35  ;;  %8229 = vmatprep.mubr.bf16.mxu1 %v6080_v22  ;;  %v11409_v37 = vld [vmem:[%s13151_s26 + $0x148] sm:$0xff]   ;;  %v14524_v11 = vrot.slane %v13536_v7, %v13440_v59 }
 0x49a   :  { %v13797_v20 = vadd.f32 %v14521_v27, %v5893_v0  ;;  %v13802_v18 = vadd.f32 %v14522_v28, %v5895_v29  ;;  %v6024_v29 = vrot.slane %v13815_v19, %v13475_v46  ;;  %8190 = vmatmul.mubr.bf16.vlgmr.msra.gmra.mrb[92].mxu0 %v6077_v52  ;;  %8230 = vmatmul.mubr.bf16.vlgmr.msra.gmra.mrb[100].mxu1 %v6079_v1  ;;  %v11411_v28 = vld [vmem:[%s13151_s26 + $0x108] sm:$0xff]  }
 0x49b   :  { %v5901_v26 = vmul.f32 %v14523_v43, %v13645_v61  ;;  %v5898_v0 = vmul.f32 %v14524_v11, %v13636_v10  ;;  %v6082_v61 = vpack.c.bf16 %v6050_v34, %v6050_v34  ;;  %v6084_v35 = vpack.c.bf16 %v6052_v62, %v6052_v62  ;;  %10643 = vmatpush3.bf16.msra.mxu0 %v11407_v36  ;;  %v11412_v43 = vld [vmem:[%s13151_s26 + $0x188] sm:$0xff]   ;;  %v13835_v34 = vld [vmem:[%s11919_s17 + $0xf8] sm:$0x3f]  ;;  %v11414_v11 = vld [vmem:[%s13151_s26 + $0x1d0] sm:$0xff]  }
 0x49c   :  { %v14525_v22 = vrot.slane %v13541_v58, %v13440_v59  ;;  %v14526_v10 = vrot.slane %v13483_v25, %v13440_v59  ;;  %10665 = vmatpush3.bf16.msra.mxu1 %v11408_v9  ;;  %v14527_v52 = vrot.slane %v13536_v7, %v13475_v46  ;;  %v5884_v62 = vrot.slane %v13835_v34, %v13440_v59  ;;  %v11425_v19 = vld [vmem:[%s13151_s26 + $0x168] sm:$0xff]  }
 0x49d   :  { %8269 = vmatprep.mubr.bf16.mxu0 %v6082_v61  ;;  %8309 = vmatprep.mubr.bf16.mxu1 %v6084_v35  ;;  %v14529_v7 = vrot.slane %v13465_v54, %v13475_v46  ;;  %v14531_v61 = vrot.slane %v13289_v17, %v13440_v59 }
 0x49e   :  { %v5900_v50 = vmul.f32 %v14525_v22, %v13642_v4  ;;  %v5903_v27 = vmul.f32 %v14526_v10, %v13651_v44  ;;  %v13832_v1 = vadd.f32 %v14527_v52, %v5898_v0  ;;  %v11413_v4 = vld [vmem:[%s13151_s26 + $0x150] sm:$0xff]   ;;  %v14528_v44 = vrot.slane %v13541_v58, %v13475_v46  ;;  %10644 = vmatprep.subr.bf16.mxu0 %v11409_v37 }
 0x49f   :  { %v13849_v9 = vadd.f32 %v14529_v7, %v5897_v42  ;;  %v14530_v0 = vrot.slane %v13470_v12, %v13475_v46  ;;  %v5905_v35 = vmul.f32 %v14531_v61, %v13657_v47  ;;  %10666 = vmatprep.subr.bf16.mxu1 %v11410_v3  ;;  %v14532_v58 = vrot.slane %v13552_v53, %v13440_v59  ;;  %v11415_v10 = vld [vmem:[%s13151_s26 + $0x110] sm:$0xff]  }
 0x4a0   :  { %v13844_v36 = vadd.f32 %v14528_v44, %v5900_v50  ;;  %v14533_v42 = vrot.slane %v13561_v13, %v13440_v59  ;;  %v14535_v47 = vrot.slane %v13323_v45, %v13440_v59  ;;  %v11768_v50 = vld [vmem:[%s11919_s17 + $0xe0] sm:$0x3f]  ;;  %10645 = vmatpush3.bf16.msra.mxu0 %v11411_v28  ;;  %10667 = vmatpush3.bf16.msra.mxu1 %v11412_v43  ;;  %v11417_v28 = vld [vmem:[%s13151_s26 + $0x158] sm:$0xff]  }
 0x4a1   :  { %v13854_v22 = vadd.f32 %v14530_v0, %v5899_v15  ;;  %v5902_v54 = vmul.f32 %v14532_v58, %v13648_v49  ;;  %v14534_v15 = vrot.slane %v13301_v63, %v13440_v59  ;;  %v14536_v49 = vrot.slane %v13478_v32, %v13475_v46  ;;  %v11416_v63 = vld [vmem:[%s13151_s26 + $0x190] sm:$0xff]   ;;  %10646 = vmatprep.subr.bf16.mxu0 %v11413_v4  ;;  %v11418_v43 = vld [vmem:[%s13151_s26 + $0x1d8] sm:$0xff]  }
 0x4a2   :  { %v5904_v12 = vmul.f32 %v14533_v42, %v13654_v33  ;;  %v5909_v37 = vmul.f32 %v14535_v47, %v13669_v60  ;;  %v6032_v33 = vrot.slane %v11768_v50, %v13475_v46  ;;  %v14538_v45 = vrot.slane %v13561_v13, %v13475_v46  ;;  %10668 = vmatprep.subr.bf16.mxu1 %v11414_v11  ;;  %v11769_v0 = vld [vmem:[%s11919_s17 + $0xf0] sm:$0x3f]  ;;  %v11420_v47 = vld [vmem:[%s13151_s26 + $0x198] sm:$0xff]  }
 0x4a3   :  { %v5907_v17 = vmul.f32 %v14534_v15, %v13663_v39  ;;  %v13879_v3 = vadd.f32 %v14536_v49, %v5901_v26  ;;  %v14537_v39 = vrot.slane %v13552_v53, %v13475_v46  ;;  %v14539_v32 = vrot.slane %v13483_v25, %v13475_v46  ;;  %v14550_v15 = vld [vmem:[#allocation10_spill] sm:$0xff]  ;;  %v14552_v49 = vld [vmem:[#allocation3_spill] sm:$0xff] }
 0x4a4   :  { %v13893_v60 = vadd.f32 %v14538_v45, %v5904_v12  ;;  %v14540_v53 = vrot.slane %v13566_v6, %v13440_v59  ;;  %v14541_v13 = vrot.slane %v13711_v2, %v13440_v59  ;;  %v6040_v25 = vrot.slane %v11769_v0, %v13475_v46  ;;  %10647 = vmatpush3.bf16.msra.mxu0 %v11415_v10  ;;  %v11770_v10 = vld [vmem:[%s11919_s17 + $0xe8] sm:$0x3f] }
 0x4a5   :  { %v13888_v52 = vadd.f32 %v14537_v39, %v5902_v54  ;;  %v13898_v26 = vadd.f32 %v14539_v32, %v5903_v27  ;;  %v14542_v27 = vrot.slane %v13335_v31, %v13440_v59  ;;  %v14543_v11 = vrot.slane %v13357_v40, %v13440_v59  ;;  %10669 = vmatpush3.bf16.msra.mxu1 %v11416_v63  ;;  %v11422_v39 = vld [vmem:[%s13151_s26 + $0x1e0] sm:$0xff]   ;;  %v14554_v32 = vld [vmem:[#allocation13_spill] sm:$0xff] }
 0x4a6   :  { %v5906_v44 = vmul.f32 %v14540_v53, %v13660_v57  ;;  %v5908_v7 = vmul.f32 %v14541_v13, %v13666_v14  ;;  %v14544_v57 = vld [vmem:[#allocation5_spill] sm:$0xff]  ;;  %v14546_v54 = vrot.slane %v13723_v56, %v13475_v46  ;;  %v14547_v31 = vrot.slane %v13566_v6, %v13475_v46  ;;  %10648 = vmatprep.subr.bf16.mxu0 %v11417_v28  ;;  %v14555_v28 = vld [vmem:[#allocation14_spill] sm:$0xff] }
 0x4a7   :  { %v5911_v4 = vmul.f32 %v14542_v27, %v13675_v55  ;;  %v5913_v61 = vmul.f32 %v14543_v11, %v13681_v41  ;;  %v14545_v58 = vrot.slane %v14544_v57, %v13440_v59  ;;  %v14548_v40 = vrot.slane %v13711_v2, %v13475_v46  ;;  %v11419_v6 = vld [vmem:[%s13151_s26 + $0x118] sm:$0xff]   ;;  %10670 = vmatprep.subr.bf16.mxu1 %v11418_v43  ;;  %v11428_v57 = vld [vmem:[%s13151_s26 + $0x1a8] sm:$0xff]  }
 0x4a8   :  { %v13927_v42 = vadd.f32 %v14546_v54, %v5905_v35  ;;  %v13932_v55 = vadd.f32 %v14547_v31, %v5906_v44  ;;  %v14549_v12 = vrot.slane %v13728_v5, %v13475_v46  ;;  %v14551_v56 = vrot.slane %v13716_v38, %v13440_v59  ;;  %10649 = vmatpush3.bf16.msra.mxu0 %v11419_v6  ;;  %v14558_v44 = vld [vmem:[#allocation12_spill] sm:$0xff]  ;;  %v14561_v54 = vld [vmem:[#allocation7_spill] sm:$0xff] }
 0x4a9   :  { %v5915_v14 = vmul.f32 %v14545_v58, %v13687_v21  ;;  %v13937_v41 = vadd.f32 %v14548_v40, %v5908_v7  ;;  %v14553_v2 = vrot.slane %v13733_v23, %v13440_v59  ;;  %v13957_v5 = vadd.f32 %v6016_v30, %v5909_v37  ;;  %10671 = vmatpush3.bf16.msra.mxu1 %v11420_v47  ;;  %v11423_v23 = vld [vmem:[%s13151_s26 + $0x120] sm:$0xff]   ;;  %v14560_v58 = vld [vmem:[#allocation4_spill] sm:$0xff] }
 0x4aa   :  { %v13942_v21 = vadd.f32 %v14549_v12, %v5907_v17  ;;  %v5910_v35 = vmul.f32 %v14551_v56, %v14550_v15  ;;  %v11421_v17 = vld [vmem:[%s13151_s26 + $0x160] sm:$0xff]   ;;  %v6036_v63 = vrot.slane %v11770_v10, %v13475_v46  ;;  %v6044_v45 = vrot.slane %v13835_v34, %v13475_v46  ;;  %10672 = vmatprep.subr.bf16.mxu1 %v11422_v39  ;;  %v11429_v12 = vld [vmem:[%s13151_s26 + $0x170] sm:$0xff]  }
 0x4ab   :  { %v5912_v50 = vmul.f32 %v14553_v2, %v14552_v49  ;;  %v13978_v37 = vadd.f32 %v6024_v29, %v5911_v4  ;;  %v5914_v34 = vmul.f32 %v5876_v51, %v14554_v32  ;;  %v5916_v38 = vmul.f32 %v5884_v62, %v14555_v28  ;;  %10650 = vmatprep.subr.bf16.mxu0 %v11421_v17  ;;  %v11426_v29 = vld [vmem:[%s13151_s26 + $0x1e8] sm:$0xff]   ;;  %v14556_v62 = vld [vmem:[#allocation6_spill] sm:$0xff]  ;;  %v14559_v4 = vld [vmem:[#allocation9_spill] sm:$0xff] }
 0x4ac   :  { %v13968_v48 = vadd.f32 %v6020_v24, %v5910_v35  ;;  %v13985_v24 = vadd.f32 %v6032_v33, %v5913_v61  ;;  %v13987_v43 = vadd.f32 %v6040_v25, %v5915_v14  ;;  %v14557_v33 = vld [vmem:[#allocation11_spill] sm:$0xff]  ;;  %v5697_v13 = vsub.f32 %v14558_v44, %v14556_v62  ;;  %v11772_v25 = vld [vmem:[%s11919_s17 + $0x30] sm:$0x3f]  ;;  %10651 = vmatpush3.bf16.msra.mxu0 %v11423_v23  ;;  %v11774_v49 = vld [vmem:[%s11919_s17 + $0x58] sm:$0x3f] }
 0x4ad   :  { %v13973_v30 = vadd.f32 %v6028_v8, %v5912_v50  ;;  %v11424_v8 = vld [vmem:[%s13151_s26 + $0x1a0] sm:$0xff]   ;;  %v13993_v16 = vadd.f32 %v6036_v63, %v5914_v34  ;;  %v13995_v51 = vadd.f32 %v6044_v45, %v5916_v38  ;;  %v5695_v53 = vsub.f32 %v14557_v33, %v14556_v62  ;;  %v11427_v61 = vld [vmem:[%s13151_s26 + $0x128] sm:$0xff]   ;;  %10652 = vmatprep.subr.bf16.mxu0 %v11425_v19  ;;  %v11430_v15 = vld [vmem:[%s13151_s26 + $0x1f0] sm:$0xff]  }
 0x4ae   :  { %v11771_v7 = vld [vmem:[%s11919_s17 + $0x20] sm:$0x3f]  ;;  %v5784_v27 = vrot.slane %v11772_v25, %v13440_v59  ;;  %v5700_v11 = vsub.f32 %v14559_v4, %v14556_v62  ;;  %10673 = vmatpush3.bf16.msra.mxu1 %v11424_v8  ;;  %v5702_v14 = vsub.f32 %v14560_v58, %v14556_v62  ;;  %v5731_v40 = vmul.f32 %v14561_v54, %v5697_v13  ;;  %v11773_v35 = vld [vmem:[%s11919_s17 + $0x48] sm:$0x3f]  ;;  %v11431_v50 = vld [vmem:[%s13151_s26 + $0x130] sm:$0xff]   ;;  %s9530_s17 = sld [smem:[%s14403_s0 + %s11789_s14]]   ;;  %s11804_s14 = smov 28  }
 0x4af   :  { %v5776_v0 = vrot.slane %v11771_v7, %v13440_v59  ;;  %v5729_v31 = vmul.f32 %v14561_v54, %v5695_v53  ;;  %10674 = vmatprep.subr.bf16.mxu1 %v11426_v29  ;;  %v5796_v6 = vrot.slane %v11773_v35, %v13440_v59  ;;  %v5804_v2 = vrot.slane %v11774_v49, %v13440_v59  ;;  %v11432_v17 = vld [vmem:[%s13151_s26 + $0x1b0] sm:$0xff]   ;;  %v11433_v45 = vld [vmem:[%s13151_s26 + $0x178] sm:$0xff]   ;;  %v11437_v33 = vld [vmem:[%s13151_s26 + $0x240] sm:$0xff]  }
 0x4b0   :  { %v5734_v56 = vmul.f32 %v14561_v54, %v5700_v11  ;;  %v5736_v47 = vmul.f32 %v14561_v54, %v5702_v14  ;;  %10653 = vmatpush3.bf16.msra.mxu0 %v11427_v61  ;;  %v5936_v39 = vrot.slane %v11771_v7, %v13475_v46  ;;  %v5891_v63 = vmul.f32 %v5784_v27, %v5731_v40  ;;  %v11434_v32 = vld [vmem:[%s13151_s26 + $0x1f8] sm:$0xff]   ;;  %v11438_v53 = vld [vmem:[%s13151_s26 + $0x2c0] sm:$0xff]   ;;  %v11441_v4 = vld [vmem:[%s13151_s26 + $0x248] sm:$0xff]  }
 0x4b1   :  { %v5889_v10 = vmul.f32 %v5776_v0, %v5729_v31  ;;  %10654 = vmatprep.subr.bf16.mxu0 %v11429_v12  ;;  %v5944_v34 = vrot.slane %v11772_v25, %v13475_v46  ;;  %v5956_v59 = vrot.slane %v11773_v35, %v13475_v46  ;;  %v5964_v23 = vrot.slane %v11774_v49, %v13475_v46  ;;  %v11435_v8 = vld [vmem:[%s13151_s26 + $0x138] sm:$0xff]   ;;  %v11439_v7 = vld [vmem:[%s13151_s26 + $0x200] sm:$0xff]   ;;  %v11442_v11 = vld [vmem:[%s13151_s26 + $0x2c8] sm:$0xff]  }
 0x4b2   :  { %10675 = vmatpush3.bf16.msra.mxu1 %v11428_v57  ;;  %v5894_v28 = vmul.f32 %v5796_v6, %v5734_v56  ;;  %v5896_v38 = vmul.f32 %v5804_v2, %v5736_v47  ;;  %v11436_v19 = vld [vmem:[%s13151_s26 + $0x1b8] sm:$0xff]   ;;  %v11440_v25 = vld [vmem:[%s13151_s26 + $0x280] sm:$0xff]   ;;  %v11443_v57 = vld [vmem:[%s13151_s26 + $0x208] sm:$0xff]  }
 0x4b3   :  { %10676 = vmatprep.subr.bf16.mxu1 %v11430_v15  ;;  %v6049_v29 = vadd.f32 %v5936_v39, %v5889_v10  ;;  %v6051_v62 = vadd.f32 %v5944_v34, %v5891_v63  ;;  %v11444_v58 = vld [vmem:[%s13151_s26 + $0x288] sm:$0xff]   ;;  %v11445_v14 = vld [vmem:[%s13151_s26 + $0x250] sm:$0xff]   ;;  %v11449_v12 = vld [vmem:[%s13151_s26 + $0x258] sm:$0xff]  }
 0x4b4   :  { %10655 = vmatpush3.bf16.msra.mxu0 %v11431_v50  ;;  %v6054_v44 = vadd.f32 %v5956_v59, %v5894_v28  ;;  %v6056_v13 = vadd.f32 %v5964_v23, %v5896_v38  ;;  %v11446_v54 = vld [vmem:[%s13151_s26 + $0x2d0] sm:$0xff]   ;;  %v11450_v15 = vld [vmem:[%s13151_s26 + $0x2d8] sm:$0xff]   ;;  %v11453_v6 = vld [vmem:[%s13151_s26 + $0x260] sm:$0xff]  }
 0x4b5   :  { %10656 = vmatprep.subr.bf16.mxu0 %v11433_v45  ;;  %v6081_v46 = vpack.c.bf16 %v6049_v29, %v6049_v29  ;;  %v6083_v0 = vpack.c.bf16 %v6051_v62, %v6051_v62  ;;  %v11447_v31 = vld [vmem:[%s13151_s26 + $0x210] sm:$0xff]   ;;  %v11451_v56 = vld [vmem:[%s13151_s26 + $0x218] sm:$0xff]   ;;  %v11454_v47 = vld [vmem:[%s13151_s26 + $0x2e0] sm:$0xff]   ;;  %v6085_v62 = vpack.c.bf16 %v13797_v20, %v13797_v20  ;;  %v6092_v20 = vpack.c.bf16 %v13844_v36, %v13844_v36 }
 0x4b6   :  { %10677 = vmatpush3.bf16.msra.mxu1 %v11432_v17  ;;  %v6086_v27 = vpack.c.bf16 %v6054_v44, %v6054_v44  ;;  %v6088_v61 = vpack.c.bf16 %v6056_v13, %v6056_v13  ;;  %v11448_v40 = vld [vmem:[%s13151_s26 + $0x290] sm:$0xff]   ;;  %v11452_v35 = vld [vmem:[%s13151_s26 + $0x298] sm:$0xff]   ;;  %v11455_v49 = vld [vmem:[%s13151_s26 + $0x220] sm:$0xff]   ;;  %v6090_v13 = vpack.c.bf16 %v13832_v1, %v13832_v1 }
 0x4b7   :  { %10678 = vmatprep.subr.bf16.mxu1 %v11434_v32  ;;  %v11456_v2 = vld [vmem:[%s13151_s26 + $0x2a0] sm:$0xff]   ;;  %v11457_v50 = vld [vmem:[%s13151_s26 + $0x268] sm:$0xff]   ;;  %v11461_v63 = vld [vmem:[%s13151_s26 + $0x270] sm:$0xff]  }
 0x4b8   :  { %10657 = vmatpush3.bf16.msra.mxu0 %v11435_v8  ;;  %v11458_v17 = vld [vmem:[%s13151_s26 + $0x2e8] sm:$0xff]   ;;  %v11462_v45 = vld [vmem:[%s13151_s26 + $0x2f0] sm:$0xff]   ;;  %v11465_v28 = vld [vmem:[%s13151_s26 + $0x278] sm:$0xff]  }
 0x4b9   :  { %10686 = vmatprep.subr.bf16.mxu0 %v11437_v33  ;;  %v11459_v39 = vld [vmem:[%s13151_s26 + $0x228] sm:$0xff]   ;;  %v11463_v32 = vld [vmem:[%s13151_s26 + $0x230] sm:$0xff]   ;;  %v11466_v59 = vld [vmem:[%s13151_s26 + $0x2f8] sm:$0xff]  }
 0x4ba   :  { %10679 = vmatpush3.bf16.msra.mxu1 %v11436_v19  ;;  %v11460_v10 = vld [vmem:[%s13151_s26 + $0x2a8] sm:$0xff]   ;;  %v11464_v34 = vld [vmem:[%s13151_s26 + $0x2b0] sm:$0xff]   ;;  %v11467_v38 = vld [vmem:[%s13151_s26 + $0x238] sm:$0xff]  }
 0x4bb   :  { %10708 = vmatprep.subr.bf16.mxu1 %v11438_v53  ;;  %8270 = vmatmul.mubr.bf16.vlgmr.msra.gmra.mrb[96].mxu0 %v6081_v46  ;;  %v11468_v23 = vld [vmem:[%s13151_s26 + $0x2b8] sm:$0xff]   ;;  %v11469_v8 = vld [vmem:[%s13151_s26 + $0x340] sm:$0xff]   ;;  %v6087_v53 = vpack.c.bf16 %v13802_v18, %v13802_v18  ;;  %v11473_v44 = vld [vmem:[%s13151_s26 + $0x348] sm:$0xff]  }
 0x4bc   :  { %10687 = vmatpush3.bf16.msra.mxu0 %v11439_v7  ;;  %8349 = vmatprep.mubr.bf16.mxu0 %v6086_v27  ;;  %v11470_v19 = vld [vmem:[%s13151_s26 + $0x3c0] sm:$0xff]   ;;  %v11474_v7 = vld [vmem:[%s13151_s26 + $0x3c8] sm:$0xff]   ;;  %v11478_v1 = vld [vmem:[%s13151_s26 + $0x3d0] sm:$0xff]  }
 0x4bd   :  { %8310 = vmatmul.mubr.bf16.vlgmr.msra.gmra.mrb[104].mxu1 %v6083_v0  ;;  %10688 = vmatprep.subr.bf16.mxu0 %v11441_v4  ;;  %v11471_v29 = vld [vmem:[%s13151_s26 + $0x300] sm:$0xff]   ;;  %v11475_v46 = vld [vmem:[%s13151_s26 + $0x308] sm:$0xff]   ;;  %v11477_v0 = vld [vmem:[%s13151_s26 + $0x350] sm:$0xff]  }
 0x4be   :  { %10709 = vmatpush3.bf16.msra.mxu1 %v11440_v25  ;;  %8389 = vmatprep.mubr.bf16.mxu1 %v6088_v61  ;;  %v11472_v33 = vld [vmem:[%s13151_s26 + $0x380] sm:$0xff]   ;;  %v11476_v18 = vld [vmem:[%s13151_s26 + $0x388] sm:$0xff]   ;;  %v11479_v25 = vld [vmem:[%s13151_s26 + $0x310] sm:$0xff]  }
 0x4bf   :  { %10710 = vmatprep.subr.bf16.mxu1 %v11442_v11  ;;  %v11480_v36 = vld [vmem:[%s13151_s26 + $0x390] sm:$0xff]   ;;  %v11481_v27 = vld [vmem:[%s13151_s26 + $0x358] sm:$0xff]  }
 0x4c0   :  { %10689 = vmatpush3.bf16.msra.mxu0 %v11443_v57  ;;  %v11482_v4 = vld [vmem:[%s13151_s26 + $0x3d8] sm:$0xff]   ;;  %v11485_v57 = vld [vmem:[%s13151_s26 + $0x360] sm:$0xff]  }
 0x4c1   :  { %10690 = vmatprep.subr.bf16.mxu0 %v11445_v14  ;;  %v11483_v11 = vld [vmem:[%s13151_s26 + $0x318] sm:$0xff]   ;;  %v11487_v14 = vld [vmem:[%s13151_s26 + $0x320] sm:$0xff]  }
 0x4c2   :  { %10711 = vmatpush3.bf16.msra.mxu1 %v11444_v58  ;;  %v11484_v61 = vld [vmem:[%s13151_s26 + $0x398] sm:$0xff]   ;;  %v11486_v58 = vld [vmem:[%s13151_s26 + $0x3e0] sm:$0xff]  }
 0x4c3   :  { %10712 = vmatprep.subr.bf16.mxu1 %v11446_v54  ;;  %v11488_v54 = vld [vmem:[%s13151_s26 + $0x3a0] sm:$0xff]  }
 0x4c4   :  { %10691 = vmatpush3.bf16.msra.mxu0 %v11447_v31  ;;  %v11489_v31 = vld [vmem:[%s13151_s26 + $0x368] sm:$0xff]  }
 0x4c5   :  { %10692 = vmatprep.subr.bf16.mxu0 %v11449_v12  ;;  %v11491_v12 = vld [vmem:[%s13151_s26 + $0x328] sm:$0xff]  }
 0x4c6   :  { %10713 = vmatpush3.bf16.msra.mxu1 %v11448_v40  ;;  %v11490_v40 = vld [vmem:[%s13151_s26 + $0x3e8] sm:$0xff]  }
 0x4c7   :  { %10714 = vmatprep.subr.bf16.mxu1 %v11450_v15  ;;  %v11492_v15 = vld [vmem:[%s13151_s26 + $0x3a8] sm:$0xff]  }
 0x4c8   :  { %10693 = vmatpush3.bf16.msra.mxu0 %v11451_v56  ;;  %v11493_v56 = vld [vmem:[%s13151_s26 + $0x370] sm:$0xff]  }
 0x4c9   :  { %10694 = vmatprep.subr.bf16.mxu0 %v11453_v6  ;;  %v11495_v6 = vld [vmem:[%s13151_s26 + $0x330] sm:$0xff]  }
 0x4ca   :  { %10715 = vmatpush3.bf16.msra.mxu1 %v11452_v35  ;;  %v11494_v35 = vld [vmem:[%s13151_s26 + $0x3f0] sm:$0xff]  }
 0x4cb   :  { %10716 = vmatprep.subr.bf16.mxu1 %v11454_v47  ;;  %v11496_v47 = vld [vmem:[%s13151_s26 + $0x3b0] sm:$0xff]  }
 0x4cc   :  { %10695 = vmatpush3.bf16.msra.mxu0 %v11455_v49  ;;  %v11497_v49 = vld [vmem:[%s13151_s26 + $0x378] sm:$0xff]  }
 0x4cd   :  { %10696 = vmatprep.subr.bf16.mxu0 %v11457_v50  ;;  %v11499_v50 = vld [vmem:[%s13151_s26 + $0x338] sm:$0xff]  }
 0x4ce   :  { %10717 = vmatpush3.bf16.msra.mxu1 %v11456_v2  ;;  %v11498_v2 = vld [vmem:[%s13151_s26 + $0x3f8] sm:$0xff]  }
 0x4cf   :  { %10718 = vmatprep.subr.bf16.mxu1 %v11458_v17  ;;  %v11500_v17 = vld [vmem:[%s13151_s26 + $0x3b8] sm:$0xff]  }
 0x4d0   :  { %10697 = vmatpush3.bf16.msra.mxu0 %v11459_v39  ;;  %v11501_v39 = vld [vmem:[%s13151_s26 + $0x440] sm:$0xff]  }
 0x4d1   :  { %10698 = vmatprep.subr.bf16.mxu0 %v11461_v63  ;;  %v11503_v63 = vld [vmem:[%s13151_s26 + $0x400] sm:$0xff]  }
 0x4d2   :  { %10719 = vmatpush3.bf16.msra.mxu1 %v11460_v10  ;;  %v11502_v10 = vld [vmem:[%s13151_s26 + $0x4c0] sm:$0xff]  }
 0x4d3   :  { %10720 = vmatprep.subr.bf16.mxu1 %v11462_v45  ;;  %v6089_v45 = vpack.c.bf16 %v13849_v9, %v13849_v9  ;;  %v6096_v9 = vpack.c.bf16 %v13893_v60, %v13893_v60  ;;  %v11512_v60 = vld [vmem:[%s13151_s26 + $0x490] sm:$0xff]  }
 0x4d4   :  { %10699 = vmatpush3.bf16.msra.mxu0 %v11463_v32  ;;  %v11504_v32 = vld [vmem:[%s13151_s26 + $0x480] sm:$0xff]  }
 0x4d5   :  { %10700 = vmatprep.subr.bf16.mxu0 %v11465_v28  ;;  %v11505_v28 = vld [vmem:[%s13151_s26 + $0x448] sm:$0xff]  }
 0x4d6   :  { %10721 = vmatpush3.bf16.msra.mxu1 %v11464_v34  ;;  %v6091_v34 = vpack.c.bf16 %v13854_v22, %v13854_v22  ;;  %v11508_v22 = vld [vmem:[%s13151_s26 + $0x488] sm:$0xff]  }
 0x4d7   :  { %10722 = vmatprep.subr.bf16.mxu1 %v11466_v59  ;;  %v6094_v59 = vpack.c.bf16 %v13888_v52, %v13888_v52  ;;  %v11510_v52 = vld [vmem:[%s13151_s26 + $0x4d0] sm:$0xff]  }
 0x4d8   :  { %10701 = vmatpush3.bf16.msra.mxu0 %v11467_v38  ;;  %v11506_v38 = vld [vmem:[%s13151_s26 + $0x4c8] sm:$0xff]  }
 0x4d9   :  { %10730 = vmatprep.subr.bf16.mxu0 %v11469_v8  ;;  %v11509_v8 = vld [vmem:[%s13151_s26 + $0x450] sm:$0xff]  }
 0x4da   :  { %10723 = vmatpush3.bf16.msra.mxu1 %v11468_v23  ;;  %v11507_v23 = vld [vmem:[%s13151_s26 + $0x408] sm:$0xff]  }
 0x4db   :  { %10752 = vmatprep.subr.bf16.mxu1 %v11470_v19  ;;  %8350 = vmatmul.mubr.bf16.vlgmr.msra.gmra.mrb[100].mxu0 %v6085_v62  ;;  %v11511_v19 = vld [vmem:[%s13151_s26 + $0x410] sm:$0xff]   ;;  %v11514_v62 = vld [vmem:[%s13151_s26 + $0x4d8] sm:$0xff]  }
 0x4dc   :  { %10731 = vmatpush3.bf16.msra.mxu0 %v11471_v29  ;;  %8429 = vmatprep.mubr.bf16.mxu0 %v6090_v13  ;;  %v11513_v29 = vld [vmem:[%s13151_s26 + $0x458] sm:$0xff]   ;;  %v11518_v13 = vld [vmem:[%s13151_s26 + $0x4e0] sm:$0xff]  }
 0x4dd   :  { %8390 = vmatmul.mubr.bf16.vlgmr.msra.gmra.mrb[108].mxu1 %v6087_v53  ;;  %10732 = vmatprep.subr.bf16.mxu0 %v11473_v44  ;;  %v11516_v53 = vld [vmem:[%s13151_s26 + $0x498] sm:$0xff]   ;;  %v11517_v44 = vld [vmem:[%s13151_s26 + $0x460] sm:$0xff]  }
 0x4de   :  { %10753 = vmatpush3.bf16.msra.mxu1 %v11472_v33  ;;  %8469 = vmatprep.mubr.bf16.mxu1 %v6092_v20  ;;  %v11515_v33 = vld [vmem:[%s13151_s26 + $0x418] sm:$0xff]   ;;  %v11520_v20 = vld [vmem:[%s13151_s26 + $0x4a0] sm:$0xff]  }
 0x4df   :  { %10754 = vmatprep.subr.bf16.mxu1 %v11474_v7  ;;  %v11519_v7 = vld [vmem:[%s13151_s26 + $0x420] sm:$0xff]  }
 0x4e0   :  { %10733 = vmatpush3.bf16.msra.mxu0 %v11475_v46  ;;  %v11521_v46 = vld [vmem:[%s13151_s26 + $0x468] sm:$0xff]  }
 0x4e1   :  { %10734 = vmatprep.subr.bf16.mxu0 %v11477_v0  ;;  %v11523_v0 = vld [vmem:[%s13151_s26 + $0x428] sm:$0xff]  }
 0x4e2   :  { %10755 = vmatpush3.bf16.msra.mxu1 %v11476_v18  ;;  %v11522_v18 = vld [vmem:[%s13151_s26 + $0x4e8] sm:$0xff]  }
 0x4e3   :  { %10756 = vmatprep.subr.bf16.mxu1 %v11478_v1  ;;  %v11524_v1 = vld [vmem:[%s13151_s26 + $0x4a8] sm:$0xff]  }
 0x4e4   :  { %10735 = vmatpush3.bf16.msra.mxu0 %v11479_v25  ;;  %v11525_v25 = vld [vmem:[%s13151_s26 + $0x470] sm:$0xff]  }
 0x4e5   :  { %10736 = vmatprep.subr.bf16.mxu0 %v11481_v27  ;;  %v11527_v27 = vld [vmem:[%s13151_s26 + $0x430] sm:$0xff]  }
 0x4e6   :  { %10757 = vmatpush3.bf16.msra.mxu1 %v11480_v36  ;;  %v11526_v36 = vld [vmem:[%s13151_s26 + $0x4f0] sm:$0xff]  }
 0x4e7   :  { %10758 = vmatprep.subr.bf16.mxu1 %v11482_v4  ;;  %v11528_v4 = vld [vmem:[%s13151_s26 + $0x4b0] sm:$0xff]  }
 0x4e8   :  { %10737 = vmatpush3.bf16.msra.mxu0 %v11483_v11  ;;  %v11529_v11 = vld [vmem:[%s13151_s26 + $0x478] sm:$0xff]  }
 0x4e9   :  { %10738 = vmatprep.subr.bf16.mxu0 %v11485_v57  ;;  %v11531_v57 = vld [vmem:[%s13151_s26 + $0x438] sm:$0xff]  }
 0x4ea   :  { %10759 = vmatpush3.bf16.msra.mxu1 %v11484_v61  ;;  %v11530_v61 = vld [vmem:[%s13151_s26 + $0x4f8] sm:$0xff]  }
 0x4eb   :  { %10760 = vmatprep.subr.bf16.mxu1 %v11486_v58  ;;  %v11532_v58 = vld [vmem:[%s13151_s26 + $0x4b8] sm:$0xff]  }
 0x4ec   :  { %10739 = vmatpush3.bf16.msra.mxu0 %v11487_v14  ;;  %v11533_v14 = vld [vmem:[%s13151_s26 + $0x540] sm:$0xff]  }
 0x4ed   :  { %10740 = vmatprep.subr.bf16.mxu0 %v11489_v31  ;;  %v11535_v31 = vld [vmem:[%s13151_s26 + $0x500] sm:$0xff]  }
 0x4ee   :  { %10761 = vmatpush3.bf16.msra.mxu1 %v11488_v54  ;;  %v11534_v54 = vld [vmem:[%s13151_s26 + $0x5c0] sm:$0xff]  }
 0x4ef   :  { %10762 = vmatprep.subr.bf16.mxu1 %v11490_v40  ;;  %v6093_v40 = vpack.c.bf16 %v13879_v3, %v13879_v3  ;;  %v6100_v3 = vpack.c.bf16 %v13937_v41, %v13937_v41  ;;  %v11544_v41 = vld [vmem:[%s13151_s26 + $0x590] sm:$0xff]  }
 0x4f0   :  { %10741 = vmatpush3.bf16.msra.mxu0 %v11491_v12  ;;  %v11536_v12 = vld [vmem:[%s13151_s26 + $0x580] sm:$0xff]  }
 0x4f1   :  { %10742 = vmatprep.subr.bf16.mxu0 %v11493_v56  ;;  %v11537_v56 = vld [vmem:[%s13151_s26 + $0x548] sm:$0xff]  }
 0x4f2   :  { %10763 = vmatpush3.bf16.msra.mxu1 %v11492_v15  ;;  %v6095_v15 = vpack.c.bf16 %v13898_v26, %v13898_v26  ;;  %v11540_v26 = vld [vmem:[%s13151_s26 + $0x588] sm:$0xff]  }
 0x4f3   :  { %10764 = vmatprep.subr.bf16.mxu1 %v11494_v35  ;;  %v6098_v35 = vpack.c.bf16 %v13932_v55, %v13932_v55  ;;  %v11542_v55 = vld [vmem:[%s13151_s26 + $0x5d0] sm:$0xff]  }
 0x4f4   :  { %10743 = vmatpush3.bf16.msra.mxu0 %v11495_v6  ;;  %v11538_v6 = vld [vmem:[%s13151_s26 + $0x5c8] sm:$0xff]  }
 0x4f5   :  { %10744 = vmatprep.subr.bf16.mxu0 %v11497_v49  ;;  %v11541_v49 = vld [vmem:[%s13151_s26 + $0x550] sm:$0xff]  }
 0x4f6   :  { %10765 = vmatpush3.bf16.msra.mxu1 %v11496_v47  ;;  %v11539_v47 = vld [vmem:[%s13151_s26 + $0x508] sm:$0xff]  }
 0x4f7   :  { %10766 = vmatprep.subr.bf16.mxu1 %v11498_v2  ;;  %v11543_v2 = vld [vmem:[%s13151_s26 + $0x510] sm:$0xff]  }
 0x4f8   :  { %10745 = vmatpush3.bf16.msra.mxu0 %v11499_v50  ;;  %v11545_v50 = vld [vmem:[%s13151_s26 + $0x558] sm:$0xff]  }
 0x4f9   :  { %10774 = vmatprep.subr.bf16.mxu0 %v11501_v39  ;;  %v11547_v39 = vld [vmem:[%s13151_s26 + $0x518] sm:$0xff]  }
 0x4fa   :  { %10767 = vmatpush3.bf16.msra.mxu1 %v11500_v17  ;;  %v11546_v17 = vld [vmem:[%s13151_s26 + $0x5d8] sm:$0xff]  }
 0x4fb   :  { %10796 = vmatprep.subr.bf16.mxu1 %v11502_v10  ;;  %8430 = vmatmul.mubr.bf16.vlgmr.msra.gmra.mrb[104].mxu0 %v6089_v45  ;;  %v11548_v10 = vld [vmem:[%s13151_s26 + $0x598] sm:$0xff]   ;;  %v11550_v45 = vld [vmem:[%s13151_s26 + $0x5e0] sm:$0xff]  }
 0x4fc   :  { %10775 = vmatpush3.bf16.msra.mxu0 %v11503_v63  ;;  %8509 = vmatprep.mubr.bf16.mxu0 %v6094_v59  ;;  %v11549_v63 = vld [vmem:[%s13151_s26 + $0x560] sm:$0xff]   ;;  %v11554_v59 = vld [vmem:[%s13151_s26 + $0x5e8] sm:$0xff]  }
 0x4fd   :  { %8470 = vmatmul.mubr.bf16.vlgmr.msra.gmra.mrb[112].mxu1 %v6091_v34  ;;  %10776 = vmatprep.subr.bf16.mxu0 %v11505_v28  ;;  %v11552_v34 = vld [vmem:[%s13151_s26 + $0x5a0] sm:$0xff]   ;;  %v11553_v28 = vld [vmem:[%s13151_s26 + $0x568] sm:$0xff]  }
 0x4fe   :  { %10797 = vmatpush3.bf16.msra.mxu1 %v11504_v32  ;;  %8549 = vmatprep.mubr.bf16.mxu1 %v6096_v9  ;;  %v11551_v32 = vld [vmem:[%s13151_s26 + $0x520] sm:$0xff]   ;;  %v11556_v9 = vld [vmem:[%s13151_s26 + $0x5a8] sm:$0xff]  }
 0x4ff   :  { %10798 = vmatprep.subr.bf16.mxu1 %v11506_v38  ;;  %v11555_v38 = vld [vmem:[%s13151_s26 + $0x528] sm:$0xff]  }
 0x500   :  { %10777 = vmatpush3.bf16.msra.mxu0 %v11507_v23  ;;  %v11557_v23 = vld [vmem:[%s13151_s26 + $0x570] sm:$0xff]  }
 0x501   :  { %10778 = vmatprep.subr.bf16.mxu0 %v11509_v8  ;;  %v11559_v8 = vld [vmem:[%s13151_s26 + $0x530] sm:$0xff]  }
 0x502   :  { %10799 = vmatpush3.bf16.msra.mxu1 %v11508_v22  ;;  %v11558_v22 = vld [vmem:[%s13151_s26 + $0x5f0] sm:$0xff]  }
 0x503   :  { %10800 = vmatprep.subr.bf16.mxu1 %v11510_v52  ;;  %v11560_v52 = vld [vmem:[%s13151_s26 + $0x5b0] sm:$0xff]  }
 0x504   :  { %10779 = vmatpush3.bf16.msra.mxu0 %v11511_v19  ;;  %v11561_v19 = vld [vmem:[%s13151_s26 + $0x578] sm:$0xff]  }
 0x505   :  { %10780 = vmatprep.subr.bf16.mxu0 %v11513_v29  ;;  %v11563_v29 = vld [vmem:[%s13151_s26 + $0x538] sm:$0xff]  }
 0x506   :  { %10801 = vmatpush3.bf16.msra.mxu1 %v11512_v60  ;;  %v11562_v60 = vld [vmem:[%s13151_s26 + $0x5f8] sm:$0xff]  }
 0x507   :  { %10802 = vmatprep.subr.bf16.mxu1 %v11514_v62  ;;  %v11564_v62 = vld [vmem:[%s13151_s26 + $0x5b8] sm:$0xff]  }
 0x508   :  { %10781 = vmatpush3.bf16.msra.mxu0 %v11515_v33  ;;  %v11565_v33 = vld [vmem:[%s13151_s26 + $0x640] sm:$0xff]  }
 0x509   :  { %10782 = vmatprep.subr.bf16.mxu0 %v11517_v44  ;;  %v11567_v44 = vld [vmem:[%s13151_s26 + $0x600] sm:$0xff]  }
 0x50a   :  { %10803 = vmatpush3.bf16.msra.mxu1 %v11516_v53  ;;  %v11566_v53 = vld [vmem:[%s13151_s26 + $0x6c0] sm:$0xff]  }
 0x50b   :  { %10804 = vmatprep.subr.bf16.mxu1 %v11518_v13  ;;  %v6097_v13 = vpack.c.bf16 %v13927_v42, %v13927_v42  ;;  %v6104_v42 = vpack.c.bf16 %v13973_v30, %v13973_v30  ;;  %v11576_v30 = vld [vmem:[%s13151_s26 + $0x690] sm:$0xff]  }
 0x50c   :  { %10783 = vmatpush3.bf16.msra.mxu0 %v11519_v7  ;;  %v11568_v7 = vld [vmem:[%s13151_s26 + $0x680] sm:$0xff]  }
 0x50d   :  { %10784 = vmatprep.subr.bf16.mxu0 %v11521_v46  ;;  %v11569_v46 = vld [vmem:[%s13151_s26 + $0x648] sm:$0xff]  }
 0x50e   :  { %10805 = vmatpush3.bf16.msra.mxu1 %v11520_v20  ;;  %v6099_v20 = vpack.c.bf16 %v13942_v21, %v13942_v21  ;;  %v11572_v21 = vld [vmem:[%s13151_s26 + $0x688] sm:$0xff]  }
 0x50f   :  { %10806 = vmatprep.subr.bf16.mxu1 %v11522_v18  ;;  %v6102_v18 = vpack.c.bf16 %v13968_v48, %v13968_v48  ;;  %v11574_v48 = vld [vmem:[%s13151_s26 + $0x6d0] sm:$0xff]  }
 0x510   :  { %10785 = vmatpush3.bf16.msra.mxu0 %v11523_v0  ;;  %v11570_v0 = vld [vmem:[%s13151_s26 + $0x6c8] sm:$0xff]  }
 0x511   :  { %10786 = vmatprep.subr.bf16.mxu0 %v11525_v25  ;;  %v11573_v25 = vld [vmem:[%s13151_s26 + $0x650] sm:$0xff]  }
 0x512   :  { %10807 = vmatpush3.bf16.msra.mxu1 %v11524_v1  ;;  %v11571_v1 = vld [vmem:[%s13151_s26 + $0x608] sm:$0xff]  }
 0x513   :  { %10808 = vmatprep.subr.bf16.mxu1 %v11526_v36  ;;  %v11575_v36 = vld [vmem:[%s13151_s26 + $0x610] sm:$0xff]  }
 0x514   :  { %10787 = vmatpush3.bf16.msra.mxu0 %v11527_v27  ;;  %v11577_v27 = vld [vmem:[%s13151_s26 + $0x658] sm:$0xff]  }
 0x515   :  { %10788 = vmatprep.subr.bf16.mxu0 %v11529_v11  ;;  %v11579_v11 = vld [vmem:[%s13151_s26 + $0x618] sm:$0xff]  }
 0x516   :  { %10809 = vmatpush3.bf16.msra.mxu1 %v11528_v4  ;;  %v11578_v4 = vld [vmem:[%s13151_s26 + $0x6d8] sm:$0xff]  }
 0x517   :  { %10810 = vmatprep.subr.bf16.mxu1 %v11530_v61  ;;  %v11580_v61 = vld [vmem:[%s13151_s26 + $0x698] sm:$0xff]  }
 0x518   :  { %10789 = vmatpush3.bf16.msra.mxu0 %v11531_v57  ;;  %v11581_v57 = vld [vmem:[%s13151_s26 + $0x660] sm:$0xff]  }
 0x519   :  { %10818 = vmatprep.subr.bf16.mxu0 %v11533_v14  ;;  %v11583_v14 = vld [vmem:[%s13151_s26 + $0x620] sm:$0xff]  }
 0x51a   :  { %10811 = vmatpush3.bf16.msra.mxu1 %v11532_v58  ;;  %v11582_v58 = vld [vmem:[%s13151_s26 + $0x6e0] sm:$0xff]  }
 0x51b   :  { %10840 = vmatprep.subr.bf16.mxu1 %v11534_v54  ;;  %8510 = vmatmul.mubr.bf16.vlgmr.msra.gmra.mrb[108].mxu0 %v6093_v40  ;;  %v11584_v54 = vld [vmem:[%s13151_s26 + $0x6a0] sm:$0xff]   ;;  %v11586_v40 = vld [vmem:[%s13151_s26 + $0x6e8] sm:$0xff]  }
 0x51c   :  { %10819 = vmatpush3.bf16.msra.mxu0 %v11535_v31  ;;  %8589 = vmatprep.mubr.bf16.mxu0 %v6098_v35  ;;  %v11585_v31 = vld [vmem:[%s13151_s26 + $0x668] sm:$0xff]   ;;  %v11590_v35 = vld [vmem:[%s13151_s26 + $0x6f0] sm:$0xff]  }
 0x51d   :  { %8550 = vmatmul.mubr.bf16.vlgmr.msra.gmra.mrb[116].mxu1 %v6095_v15  ;;  %10820 = vmatprep.subr.bf16.mxu0 %v11537_v56  ;;  %v11588_v15 = vld [vmem:[%s13151_s26 + $0x6a8] sm:$0xff]   ;;  %v11589_v56 = vld [vmem:[%s13151_s26 + $0x670] sm:$0xff]  }
 0x51e   :  { %10841 = vmatpush3.bf16.msra.mxu1 %v11536_v12  ;;  %8629 = vmatprep.mubr.bf16.mxu1 %v6100_v3  ;;  %v11587_v12 = vld [vmem:[%s13151_s26 + $0x628] sm:$0xff]   ;;  %v11592_v3 = vld [vmem:[%s13151_s26 + $0x6b0] sm:$0xff]  }
 0x51f   :  { %10842 = vmatprep.subr.bf16.mxu1 %v11538_v6  ;;  %v11591_v6 = vld [vmem:[%s13151_s26 + $0x630] sm:$0xff]  }
 0x520   :  { %10821 = vmatpush3.bf16.msra.mxu0 %v11539_v47  ;;  %v11593_v47 = vld [vmem:[%s13151_s26 + $0x678] sm:$0xff]  }
 0x521   :  { %10822 = vmatprep.subr.bf16.mxu0 %v11541_v49  ;;  %v11595_v49 = vld [vmem:[%s13151_s26 + $0x638] sm:$0xff]  }
 0x522   :  { %10843 = vmatpush3.bf16.msra.mxu1 %v11540_v26  ;;  %v11594_v26 = vld [vmem:[%s13151_s26 + $0x6f8] sm:$0xff]  }
 0x523   :  { %10844 = vmatprep.subr.bf16.mxu1 %v11542_v55  ;;  %v11596_v55 = vld [vmem:[%s13151_s26 + $0x6b8] sm:$0xff]  }
 0x524   :  { %10823 = vmatpush3.bf16.msra.mxu0 %v11543_v2  ;;  %v11597_v2 = vld [vmem:[%s13151_s26 + $0x740] sm:$0xff]  }
 0x525   :  { %10824 = vmatprep.subr.bf16.mxu0 %v11545_v50  ;;  %v11599_v50 = vld [vmem:[%s13151_s26 + $0x700] sm:$0xff]  }
 0x526   :  { %10845 = vmatpush3.bf16.msra.mxu1 %v11544_v41  ;;  %v11598_v41 = vld [vmem:[%s13151_s26 + $0x7c0] sm:$0xff]  }
 0x527   :  { %10846 = vmatprep.subr.bf16.mxu1 %v11546_v17  ;;  %v6101_v17 = vpack.c.bf16 %v13957_v5, %v13957_v5  ;;  %v6108_v5 = vpack.c.bf16 %v13995_v51, %v13995_v51  ;;  %v11608_v51 = vld [vmem:[%s13151_s26 + $0x790] sm:$0xff]  }
 0x528   :  { %10825 = vmatpush3.bf16.msra.mxu0 %v11547_v39  ;;  %v11600_v39 = vld [vmem:[%s13151_s26 + $0x780] sm:$0xff]  }
 0x529   :  { %10826 = vmatprep.subr.bf16.mxu0 %v11549_v63  ;;  %v11601_v63 = vld [vmem:[%s13151_s26 + $0x748] sm:$0xff]  }
 0x52a   :  { %10847 = vmatpush3.bf16.msra.mxu1 %v11548_v10  ;;  %v6103_v10 = vpack.c.bf16 %v13978_v37, %v13978_v37  ;;  %v11604_v37 = vld [vmem:[%s13151_s26 + $0x788] sm:$0xff]  }
 0x52b   :  { %10848 = vmatprep.subr.bf16.mxu1 %v11550_v45  ;;  %v6106_v45 = vpack.c.bf16 %v13993_v16, %v13993_v16  ;;  %v11606_v16 = vld [vmem:[%s13151_s26 + $0x7d0] sm:$0xff]  }
 0x52c   :  { %10827 = vmatpush3.bf16.msra.mxu0 %v11551_v32  ;;  %v11602_v32 = vld [vmem:[%s13151_s26 + $0x7c8] sm:$0xff]  }
 0x52d   :  { %10828 = vmatprep.subr.bf16.mxu0 %v11553_v28  ;;  %v11605_v28 = vld [vmem:[%s13151_s26 + $0x750] sm:$0xff]  }
 0x52e   :  { %10849 = vmatpush3.bf16.msra.mxu1 %v11552_v34  ;;  %v11603_v34 = vld [vmem:[%s13151_s26 + $0x708] sm:$0xff]  }
 0x52f   :  { %10850 = vmatprep.subr.bf16.mxu1 %v11554_v59  ;;  %v11607_v59 = vld [vmem:[%s13151_s26 + $0x710] sm:$0xff]  }
 0x530   :  { %10829 = vmatpush3.bf16.msra.mxu0 %v11555_v38  ;;  %v11609_v38 = vld [vmem:[%s13151_s26 + $0x758] sm:$0xff]  }
 0x531   :  { %10830 = vmatprep.subr.bf16.mxu0 %v11557_v23  ;;  %v11611_v23 = vld [vmem:[%s13151_s26 + $0x718] sm:$0xff]  }
 0x532   :  { %10851 = vmatpush3.bf16.msra.mxu1 %v11556_v9  ;;  %v11610_v9 = vld [vmem:[%s13151_s26 + $0x7d8] sm:$0xff]  }
 0x533   :  { %10852 = vmatprep.subr.bf16.mxu1 %v11558_v22  ;;  %v11612_v22 = vld [vmem:[%s13151_s26 + $0x798] sm:$0xff]  }
 0x534   :  { %10831 = vmatpush3.bf16.msra.mxu0 %v11559_v8  ;;  %v11613_v8 = vld [vmem:[%s13151_s26 + $0x760] sm:$0xff]  }
 0x535   :  { %10832 = vmatprep.subr.bf16.mxu0 %v11561_v19  ;;  %v11615_v19 = vld [vmem:[%s13151_s26 + $0x720] sm:$0xff]  }
 0x536   :  { %10853 = vmatpush3.bf16.msra.mxu1 %v11560_v52  ;;  %v11614_v52 = vld [vmem:[%s13151_s26 + $0x7e0] sm:$0xff]  }
 0x537   :  { %10854 = vmatprep.subr.bf16.mxu1 %v11562_v60  ;;  %v11616_v60 = vld [vmem:[%s13151_s26 + $0x7a0] sm:$0xff]  }
 0x538   :  { %10833 = vmatpush3.bf16.msra.mxu0 %v11563_v29  ;;  %v11617_v29 = vld [vmem:[%s13151_s26 + $0x768] sm:$0xff]  }
 0x539   :  { %10862 = vmatprep.subr.bf16.mxu0 %v11565_v33  ;;  %v11619_v33 = vld [vmem:[%s13151_s26 + $0x728] sm:$0xff]  }
 0x53a   :  { %10855 = vmatpush3.bf16.msra.mxu1 %v11564_v62  ;;  %v11618_v62 = vld [vmem:[%s13151_s26 + $0x7e8] sm:$0xff]  }
 0x53b   :  { %10884 = vmatprep.subr.bf16.mxu1 %v11566_v53  ;;  %8590 = vmatmul.mubr.bf16.vlgmr.msra.gmra.mrb[112].mxu0 %v6097_v13  ;;  %v11620_v53 = vld [vmem:[%s13151_s26 + $0x7a8] sm:$0xff]  }
 0x53c   :  { %10863 = vmatpush3.bf16.msra.mxu0 %v11567_v44  ;;  %8669 = vmatprep.mubr.bf16.mxu0 %v6102_v18  ;;  %v11621_v44 = vld [vmem:[%s13151_s26 + $0x770] sm:$0xff]  }
 0x53d   :  { %8630 = vmatmul.mubr.bf16.vlgmr.msra.gmra.mrb[120].mxu1 %v6099_v20  ;;  %10864 = vmatprep.subr.bf16.mxu0 %v11569_v46  ;;  %v11622_v20 = vld [vmem:[%s13151_s26 + $0x7f0] sm:$0xff]  }
 0x53e   :  { %10885 = vmatpush3.bf16.msra.mxu1 %v11568_v7  ;;  %8709 = vmatprep.mubr.bf16.mxu1 %v6104_v42 }
 0x53f   :  { %10886 = vmatprep.subr.bf16.mxu1 %v11570_v0 }
 0x540   :  { %10865 = vmatpush3.bf16.msra.mxu0 %v11571_v1 }
 0x541   :  { %10866 = vmatprep.subr.bf16.mxu0 %v11573_v25  ;;  %v11623_v25 = vld [vmem:[%s13151_s26 + $0x730] sm:$0xff]  }
 0x542   :  { %10887 = vmatpush3.bf16.msra.mxu1 %v11572_v21 }
 0x543   :  { %10888 = vmatprep.subr.bf16.mxu1 %v11574_v48 }
 0x544   :  { %10867 = vmatpush3.bf16.msra.mxu0 %v11575_v36 }
 0x545   :  { %10868 = vmatprep.subr.bf16.mxu0 %v11577_v27  ;;  %v11625_v27 = vld [vmem:[%s13151_s26 + $0x778] sm:$0xff]  }
 0x546   :  { %10889 = vmatpush3.bf16.msra.mxu1 %v11576_v30  ;;  %v11624_v30 = vld [vmem:[%s13151_s26 + $0x7b0] sm:$0xff]  }
 0x547   :  { %10890 = vmatprep.subr.bf16.mxu1 %v11578_v4 }
 0x548   :  { %10869 = vmatpush3.bf16.msra.mxu0 %v11579_v11  ;;  %v11626_v11 = vld [vmem:[%s13151_s26 + $0x7f8] sm:$0xff]  }
 0x549   :  { %10870 = vmatprep.subr.bf16.mxu0 %v11581_v57  ;;  %v11628_v57 = vld [vmem:[%s13151_s26 + $0x7b8] sm:$0xff]  }
 0x54a   :  { %10891 = vmatpush3.bf16.msra.mxu1 %v11580_v61  ;;  %v11627_v61 = vld [vmem:[%s13151_s26 + $0x738] sm:$0xff]   ;;  %s11792_s26 = smov 15  }
 0x54b   :  { %10892 = vmatprep.subr.bf16.mxu1 %v11582_v58  ;;  %v6105_v58 = vpack.c.bf16 %v13985_v24, %v13985_v24  ;;  %s9536_s29 = sld [smem:[%s14403_s0 + %s11792_s26]]   ;;  %s11807_s26 = smov 27  }
 0x54c   :  { %10871 = vmatpush3.bf16.msra.mxu0 %v11583_v14  ;;  %v6107_v14 = vpack.c.bf16 %v13987_v43, %v13987_v43 }
 0x54d   :  { %10872 = vmatprep.subr.bf16.mxu0 %v11585_v31 }
 0x54e   :  { %10893 = vmatpush3.bf16.msra.mxu1 %v11584_v54 }
 0x54f   :  { %10894 = vmatprep.subr.bf16.mxu1 %v11586_v40 }
 0x550   :  { %10873 = vmatpush3.bf16.msra.mxu0 %v11587_v12 }
 0x551   :  { %10874 = vmatprep.subr.bf16.mxu0 %v11589_v56 }
 0x552   :  { %10895 = vmatpush3.bf16.msra.mxu1 %v11588_v15 }
 0x553   :  { %10896 = vmatprep.subr.bf16.mxu1 %v11590_v35 }
 0x554   :  { %10875 = vmatpush3.bf16.msra.mxu0 %v11591_v6 }
 0x555   :  { %10876 = vmatprep.subr.bf16.mxu0 %v11593_v47 }
 0x556   :  { %10897 = vmatpush3.bf16.msra.mxu1 %v11592_v3 }
 0x557   :  { %10898 = vmatprep.subr.bf16.mxu1 %v11594_v26 }
 0x558   :  { %10877 = vmatpush3.bf16.msra.mxu0 %v11595_v49 }
 0x559   :  { %10906 = vmatprep.subr.bf16.mxu0 %v11597_v2 }
 0x55a   :  { %10899 = vmatpush3.bf16.msra.mxu1 %v11596_v55 }
 0x55b   :  { %10928 = vmatprep.subr.bf16.mxu1 %v11598_v41  ;;  %8670 = vmatmul.mubr.bf16.vlgmr.msra.gmra.mrb[116].mxu0 %v6101_v17 }
 0x55c   :  { %10907 = vmatpush3.bf16.msra.mxu0 %v11599_v50  ;;  %8749 = vmatprep.mubr.bf16.mxu0 %v6106_v45 }
 0x55d   :  { %8710 = vmatmul.mubr.bf16.vlgmr.msra.gmra.mrb[124].mxu1 %v6103_v10  ;;  %10908 = vmatprep.subr.bf16.mxu0 %v11601_v63 }
 0x55e   :  { %10929 = vmatpush3.bf16.msra.mxu1 %v11600_v39  ;;  %8789 = vmatprep.mubr.bf16.mxu1 %v6108_v5 }
 0x55f   :  { %10930 = vmatprep.subr.bf16.mxu1 %v11602_v32 }
 0x560   :  { %10909 = vmatpush3.bf16.msra.mxu0 %v11603_v34 }
 0x561   :  { %10910 = vmatprep.subr.bf16.mxu0 %v11605_v28 }
 0x562   :  { %10931 = vmatpush3.bf16.msra.mxu1 %v11604_v37 }
 0x563   :  { %10932 = vmatprep.subr.bf16.mxu1 %v11606_v16 }
 0x564   :  { %10911 = vmatpush3.bf16.msra.mxu0 %v11607_v59 }
 0x565   :  { %10912 = vmatprep.subr.bf16.mxu0 %v11609_v38 }
 0x566   :  { %10933 = vmatpush3.bf16.msra.mxu1 %v11608_v51 }
 0x567   :  { %10934 = vmatprep.subr.bf16.mxu1 %v11610_v9 }
 0x568   :  { %10913 = vmatpush3.bf16.msra.mxu0 %v11611_v23 }
 0x569   :  { %10914 = vmatprep.subr.bf16.mxu0 %v11613_v8 }
 0x56a   :  { %10935 = vmatpush3.bf16.msra.mxu1 %v11612_v22 }
 0x56b   :  { %10936 = vmatprep.subr.bf16.mxu1 %v11614_v52  ;;  %v11782_v52 = vmov 0.0  }
 0x56c   :  { %10915 = vmatpush3.bf16.msra.mxu0 %v11615_v19  ;;  %v11629_v19 = vld [vmem:[%s14271_s30] sm:$0xff]  }
 0x56d   :  { %10916 = vmatprep.subr.bf16.mxu0 %v11617_v29  ;;  %v10614_v13 = vpop.f32.mrb[92].mxu0  ;;  %v10636_v7 = vpop.f32.mrb[100].mxu1  ;;  %v11631_v29 = vld [vmem:[%s14271_s30 + $0x10] sm:$0xff]  }
 0x56e   :  { %10937 = vmatpush3.bf16.msra.mxu1 %v11616_v60  ;;  %v10615_v46 = vpop.f32.mrb[93].mxu0  ;;  %v10637_v18 = vpop.f32.mrb[101].mxu1  ;;  %v11630_v60 = vld [vmem:[%s14271_s30 + $0x8] sm:$0xff]  }
 0x56f   :  { %10938 = vmatprep.subr.bf16.mxu1 %v11618_v62  ;;  %v10616_v0 = vadd.f32 %v10615_v46, %v10614_v13  ;;  %v10638_v42 = vadd.f32 %v10637_v18, %v10636_v7  ;;  %v10617_v1 = vpop.f32.mrb[94].mxu0  ;;  %v10639_v21 = vpop.f32.mrb[102].mxu1 }
 0x570   :  { %10917 = vmatpush3.bf16.msra.mxu0 %v11619_v33  ;;  %v10618_v48 = vpop.f32.mrb[95].mxu0  ;;  %v10640_v36 = vpop.f32.mrb[103].mxu1 }
 0x571   :  { %10918 = vmatprep.subr.bf16.mxu0 %v11621_v44  ;;  %v8232_v4 = vadd.f32 %v10638_v42, %v10616_v0 }
 0x572   :  { %10939 = vmatpush3.bf16.msra.mxu1 %v11620_v53 }
 0x573   :  { %10940 = vmatprep.subr.bf16.mxu1 %v11622_v20 }
 0x574   :  { %10919 = vmatpush3.bf16.msra.mxu0 %v11623_v25 }
 0x575   :  { %10920 = vmatprep.subr.bf16.mxu0 %v11625_v27 }
 0x576   :  { %10941 = vmatpush3.bf16.msra.mxu1 %v11624_v30 }
 0x577   :  { %10942 = vmatprep.subr.bf16.mxu1 %v11626_v11 }
 0x578   :  { %10921 = vmatpush3.bf16.msra.mxu0 %v11627_v61 }
 0x579   :  { %10991 = vmatprep.subr.bf16.mxu0 %v11782_v52 }
 0x57a   :  { %10943 = vmatpush3.bf16.msra.mxu1 %v11628_v57 }
 0x57b   :  { %8750 = vmatmul.mubr.bf16.vlgmr.msra.gmra.mrb[120].mxu0 %v6105_v58  ;;  %11003 = vmatprep.subr.bf16.mxu1 %v11782_v52 }
 0x57c   :  { %10992 = vmatpush3.bf16.msra.mxu0 %v11629_v19  ;;  %10999 = vmatprep.mubr.msk.bf16.mxu0 %vm11784_vm2, %v11782_v52 }
 0x57d   :  { %8790 = vmatmul.mubr.bf16.vlgmr.msra.gmra.mrb[128].mxu1 %v6107_v14  ;;  %10993 = vmatprep.subr.bf16.mxu0 %v11782_v52 }
 0x57e   :  { %11019 = vmatprep.mubr.msk.bf16.mxu1 %vm11784_vm2, %v11782_v52 }
 0x580   :  { %10994 = vmatpush3.bf16.msra.mxu0 %v11630_v60 }
 0x581   :  { %10995 = vmatprep.subr.bf16.mxu0 %v11782_v52 }
 0x584   :  { %10996 = vmatpush3.bf16.msra.mxu0 %v11631_v29 }
 0x585   :  { %10997 = vmatprep.subr.bf16.mxu0 %v11782_v52 }
 0x58e   :  { %v10658_v54 = vpop.f32.mrb[96].mxu0 }
 0x58f   :  { %v10659_v40 = vpop.f32.mrb[97].mxu0 }
 0x590   :  { %v10680_v31 = vpop.f32.mrb[104].mxu1  ;;  %v10660_v15 = vadd.f32 %v10659_v40, %v10658_v54  ;;  %v10661_v35 = vpop.f32.mrb[98].mxu0 }
 0x591   :  { %v10681_v12 = vpop.f32.mrb[105].mxu1  ;;  %v10662_v3 = vpop.f32.mrb[99].mxu0 }
 0x592   :  { %v10682_v56 = vadd.f32 %v10681_v12, %v10680_v31  ;;  %v10683_v6 = vpop.f32.mrb[106].mxu1  ;;  %v8272_v26 = vadd.f32 %v10660_v15, %v8232_v4 }
 0x593   :  { %v10684_v47 = vpop.f32.mrb[107].mxu1 }
 0x594   :  { %v8312_v49 = vadd.f32 %v10682_v56, %v8272_v26 }
 0x5ae   :  { %v10702_v55 = vpop.f32.mrb[100].mxu0 }
 0x5af   :  { %v10703_v24 = vpop.f32.mrb[101].mxu0 }
 0x5b0   :  { %v10724_v2 = vpop.f32.mrb[108].mxu1  ;;  %v10704_v41 = vadd.f32 %v10703_v24, %v10702_v55  ;;  %v10705_v43 = vpop.f32.mrb[102].mxu0  ;;  %v11632_v55 = vld [vmem:[%s14271_s30 + $0x18] sm:$0xff]   ;;  %s11793_s30 = smov 13  }
 0x5b1   :  { %v10725_v50 = vpop.f32.mrb[109].mxu1  ;;  %v10706_v10 = vpop.f32.mrb[103].mxu0  ;;  %10998 = vmatpush3.bf16.msra.mxu0 %v11632_v55  ;;  %v11645_v55 = vld [vmem:[%s9536_s29 + $0x20] sm:$0xff]   ;;  %s9534_s3 = sld [smem:[%s14403_s0 + %s11793_s30]]   ;;  %s11808_s30 = smov 29  }
 0x5b2   :  { %v10726_v17 = vadd.f32 %v10725_v50, %v10724_v2  ;;  %v10727_v39 = vpop.f32.mrb[110].mxu1  ;;  %v8352_v63 = vadd.f32 %v10704_v41, %v8312_v49  ;;  %11023 = vmatprep.subr.bf16.mxu0 %v11782_v52 }
 0x5b3   :  { %v10728_v45 = vpop.f32.mrb[111].mxu1 }
 0x5b4   :  { %v8392_v32 = vadd.f32 %v10726_v17, %v8352_v63 }
 0x5ce   :  { %v10746_v5 = vpop.f32.mrb[104].mxu0 }
 0x5cf   :  { %v10747_v37 = vpop.f32.mrb[105].mxu0 }
 0x5d0   :  { %v10768_v34 = vpop.f32.mrb[112].mxu1  ;;  %v10748_v28 = vadd.f32 %v10747_v37, %v10746_v5  ;;  %v10749_v59 = vpop.f32.mrb[106].mxu0 }
 0x5d1   :  { %v10769_v16 = vpop.f32.mrb[113].mxu1  ;;  %v10750_v9 = vpop.f32.mrb[107].mxu0 }
 0x5d2   :  { %v10770_v51 = vadd.f32 %v10769_v16, %v10768_v34  ;;  %v10771_v38 = vpop.f32.mrb[114].mxu1  ;;  %v8432_v23 = vadd.f32 %v10748_v28, %v8392_v32  ;;  %v10191_v34 = vld [vmem:[%s9527_s5] ss:$0 sm:$0xff]  ;;  %v14562_v28 = vld [vmem:[#allocation8_spill] sm:$0xff]  ;;  %s9542_s5 = sld [smem:[%s14403_s0 + %s11801_s2]]  }
 0x5d3   :  { %v10772_v22 = vpop.f32.mrb[115].mxu1  ;;  %v11633_v38 = vld [vmem:[%s14296_s9] sm:$0xff]  }
 0x5d4   :  { %v8472_v8 = vadd.f32 %v10770_v51, %v8432_v23  ;;  %11004 = vmatpush3.bf16.msra.mxu1 %v11633_v38  ;;  %v10192_v9 = vld [vmem:[%s9529_s13] ss:$0 sm:$0xff]  ;;  %s9545_s13 = sld [smem:[%s14403_s0 + %s11803_s10]]  }
 0x5d5   :  { %11005 = vmatprep.subr.bf16.mxu1 %v11782_v52 }
 0x5ee   :  { %v10790_v62 = vpop.f32.mrb[108].mxu0 }
 0x5ef   :  { %v10791_v53 = vpop.f32.mrb[109].mxu0 }
 0x5f0   :  { %v10812_v33 = vpop.f32.mrb[116].mxu1  ;;  %v10792_v44 = vadd.f32 %v10791_v53, %v10790_v62  ;;  %v10793_v7 = vpop.f32.mrb[110].mxu0  ;;  %v11635_v53 = vld [vmem:[%s14296_s9 + $0x10] sm:$0xff]  }
 0x5f1   :  { %v10813_v13 = vpop.f32.mrb[117].mxu1  ;;  %v10794_v18 = vpop.f32.mrb[111].mxu0  ;;  %v11638_v7 = vld [vmem:[%s14296_s9 + $0x28] sm:$0xff]  }
 0x5f2   :  { %v10814_v20 = vadd.f32 %v10813_v13, %v10812_v33  ;;  %v10815_v46 = vpop.f32.mrb[118].mxu1  ;;  %v8512_v0 = vadd.f32 %v10792_v44, %v8472_v8  ;;  %v11634_v33 = vld [vmem:[%s14296_s9 + $0x8] sm:$0xff]   ;;  %v11636_v44 = vld [vmem:[%s14296_s9 + $0x18] sm:$0xff]   ;;  %v11637_v13 = vld [vmem:[%s14296_s9 + $0x20] sm:$0xff]  }
 0x5f3   :  { %v10816_v42 = vpop.f32.mrb[119].mxu1  ;;  %11006 = vmatpush3.bf16.msra.mxu1 %v11634_v33  ;;  %v11640_v46 = vld [vmem:[%s14296_s9 + $0x38] sm:$0xff]   ;;  %v11649_v33 = vld [vmem:[%s9540_s15] sm:$0xff]  }
 0x5f4   :  { %v8552_v1 = vadd.f32 %v10814_v20, %v8512_v0  ;;  %11007 = vmatprep.subr.bf16.mxu1 %v11782_v52  ;;  %v11639_v20 = vld [vmem:[%s14296_s9 + $0x30] sm:$0xff]   ;;  %s9543_s9 = sld [smem:[%s14403_s0 + %s11802_s6]]  }
 0x5f7   :  { %11008 = vmatpush3.bf16.msra.mxu1 %v11635_v53  ;;  %v11650_v53 = vld [vmem:[%s9540_s15 + $0x8] sm:$0xff]  }
 0x5f8   :  { %11009 = vmatprep.subr.bf16.mxu1 %v11782_v52 }
 0x5fb   :  { %11010 = vmatpush3.bf16.msra.mxu1 %v11636_v44  ;;  %v11651_v44 = vld [vmem:[%s9540_s15 + $0x10] sm:$0xff]  }
 0x5fc   :  { %11011 = vmatprep.subr.bf16.mxu1 %v11782_v52 }
 0x5ff   :  { %11012 = vmatpush3.bf16.msra.mxu1 %v11637_v13  ;;  %v11652_v13 = vld [vmem:[%s9540_s15 + $0x18] sm:$0xff]  }
 0x600   :  { %11013 = vmatprep.subr.bf16.mxu1 %v11782_v52 }
 0x603   :  { %11014 = vmatpush3.bf16.msra.mxu1 %v11638_v7  ;;  %v11653_v7 = vld [vmem:[%s9540_s15 + $0x20] sm:$0xff]  }
 0x604   :  { %11015 = vmatprep.subr.bf16.mxu1 %v11782_v52 }
 0x607   :  { %11016 = vmatpush3.bf16.msra.mxu1 %v11639_v20  ;;  %v11654_v20 = vld [vmem:[%s9540_s15 + $0x28] sm:$0xff]  }
 0x608   :  { %11017 = vmatprep.subr.bf16.mxu1 %v11782_v52 }
 0x60b   :  { %11018 = vmatpush3.bf16.msra.mxu1 %v11640_v46  ;;  %v11655_v46 = vld [vmem:[%s9540_s15 + $0x30] sm:$0xff]  }
 0x60c   :  { %11043 = vmatprep.subr.bf16.mxu1 %v11782_v52 }
 0x60e   :  { %v10834_v21 = vpop.f32.mrb[112].mxu0 }
 0x60f   :  { %v10835_v48 = vpop.f32.mrb[113].mxu0 }
 0x610   :  { %v10856_v25 = vpop.f32.mrb[120].mxu1  ;;  %v10836_v36 = vadd.f32 %v10835_v48, %v10834_v21  ;;  %v10837_v27 = vpop.f32.mrb[114].mxu0 }
 0x611   :  { %v10857_v30 = vpop.f32.mrb[121].mxu1  ;;  %v10838_v61 = vpop.f32.mrb[115].mxu0 }
 0x612   :  { %v10858_v4 = vadd.f32 %v10857_v30, %v10856_v25  ;;  %v10859_v11 = vpop.f32.mrb[122].mxu1  ;;  %v8592_v57 = vadd.f32 %v10836_v36, %v8552_v1  ;;  %v10199_v61 = vld [vmem:[%s9531_s21] ss:$0 sm:$0xff]  ;;  %s9546_s21 = sld [smem:[%s14403_s0 + %s11805_s18]]  }
 0x613   :  { %v10860_v58 = vpop.f32.mrb[123].mxu1 }
 0x614   :  { %v8632_v14 = vadd.f32 %v10858_v4, %v8592_v57  ;;  %v10198_v4 = vld [vmem:[%s9530_s17] ss:$0 sm:$0xff]  ;;  %s9549_s17 = sld [smem:[%s14403_s0 + %s11804_s14]]  }
 0x62e   :  { %v10878_v54 = vpop.f32.mrb[116].mxu0 }
 0x62f   :  { %v10879_v40 = vpop.f32.mrb[117].mxu0 }
 0x630   :  { %v10900_v31 = vpop.f32.mrb[124].mxu1  ;;  %v10880_v12 = vadd.f32 %v10879_v40, %v10878_v54  ;;  %v10881_v56 = vpop.f32.mrb[118].mxu0  ;;  %v10200_v54 = vld [vmem:[%s9533_s25] ss:$0 sm:$0xff]  ;;  %s9547_s25 = sld [smem:[%s14403_s0 + %s11806_s22]]  }
 0x631   :  { %v10901_v15 = vpop.f32.mrb[125].mxu1  ;;  %v10882_v3 = vpop.f32.mrb[119].mxu0 }
 0x632   :  { %v10902_v35 = vadd.f32 %v10901_v15, %v10900_v31  ;;  %v10903_v6 = vpop.f32.mrb[126].mxu1  ;;  %v8672_v47 = vadd.f32 %v10880_v12, %v8632_v14  ;;  %v11641_v3 = vld [vmem:[%s9536_s29] sm:$0xff]  }
 0x633   :  { %v10904_v26 = vpop.f32.mrb[127].mxu1 }
 0x634   :  { %v8712_v49 = vadd.f32 %v10902_v35, %v8672_v47  ;;  %v11642_v47 = vld [vmem:[%s9536_s29 + $0x8] sm:$0xff]   ;;  %v11643_v26 = vld [vmem:[%s9536_s29 + $0x10] sm:$0xff]  }
 0x64e   :  { %v10922_v2 = vpop.f32.mrb[120].mxu0 }
 0x64f   :  { %v10923_v41 = vpop.f32.mrb[121].mxu0 }
 0x650   :  { %v10944_v24 = vpop.f32.mrb[128].mxu1  ;;  %v10924_v50 = vadd.f32 %v10923_v41, %v10922_v2  ;;  %v10925_v17 = vpop.f32.mrb[122].mxu0  ;;  %v11646_v2 = vld [vmem:[%s9536_s29 + $0x28] sm:$0xff]   ;;  %v11648_v41 = vld [vmem:[%s9536_s29 + $0x38] sm:$0xff]  }
 0x651   :  { %v10945_v43 = vpop.f32.mrb[129].mxu1  ;;  %v10926_v63 = vpop.f32.mrb[123].mxu0 }
 0x652   :  { %v10946_v39 = vadd.f32 %v10945_v43, %v10944_v24  ;;  %v10947_v10 = vpop.f32.mrb[130].mxu1  ;;  %v8752_v45 = vadd.f32 %v10924_v50, %v8712_v49  ;;  %v11644_v49 = vld [vmem:[%s9536_s29 + $0x18] sm:$0xff]   ;;  %v11647_v24 = vld [vmem:[%s9536_s29 + $0x30] sm:$0xff]   ;;  %s9548_s29 = sld [smem:[%s14403_s0 + %s11807_s26]]  }
 0x653   :  { %v10948_v32 = vpop.f32.mrb[131].mxu1 }
 0x654   :  { %v8792_v5 = vadd.f32 %v10946_v39, %v8752_v45 }
 0x656   :  { %8798 = vrot.lane.b32.xlu0 %v8792_v5, %s11785_s1  ;;  %s9544_s1 = sld [smem:[%s14403_s0 + %s11800_s28]]  }
 0x6c8   :  { %v8799_v37 = vpop.permute.xlu0 %8798 }
 0x6c9   :  { %v8801_v16 = vsel %vm4896_vm1, %v14562_v28, %v8799_v37  ;;  %v10209_v37 = vld [vmem:[%s9534_s3] ss:$0 sm:$0xff]  ;;  %s9550_s3 = sld [smem:[%s14403_s0 + %s11808_s30]]  }
 0x6ca   :  { %v8809_v59 = vadd.f32 %v10191_v34, %v8801_v16  ;;  %v10210_v16 = vld [vmem:[%s9535_s7] ss:$0 sm:$0xff] }
 0x6cc   :  { %v8810_v51 = vpack.c.bf16 %v8809_v59, %v8809_v59 }
 0x6ce   :  { %11000 = vmatmul.mubr.msk.bf16.vlgmr.msra.gmra.mrb[124].mxu0 %vm8850_vm3, %v8810_v51 }
 0x6cf   :  { %11039 = vmatprep.mubr.msk.bf16.mxu0 %vm11784_vm2, %v11782_v52  ;;  %11024 = vmatpush3.bf16.msra.mxu0 %v11641_v3 }
 0x6d0   :  { %11025 = vmatprep.subr.bf16.mxu0 %v11782_v52 }
 0x6d3   :  { %11026 = vmatpush3.bf16.msra.mxu0 %v11642_v47  ;;  %v11657_v47 = vld [vmem:[%s9544_s1] sm:$0xff]  }
 0x6d4   :  { %11027 = vmatprep.subr.bf16.mxu0 %v11782_v52 }
 0x6d7   :  { %11028 = vmatpush3.bf16.msra.mxu0 %v11643_v26  ;;  %v11658_v26 = vld [vmem:[%s9544_s1 + $0x8] sm:$0xff]  }
 0x6d8   :  { %11029 = vmatprep.subr.bf16.mxu0 %v11782_v52 }
 0x6db   :  { %11030 = vmatpush3.bf16.msra.mxu0 %v11644_v49  ;;  %v11659_v49 = vld [vmem:[%s9544_s1 + $0x10] sm:$0xff]  }
 0x6dc   :  { %11031 = vmatprep.subr.bf16.mxu0 %v11782_v52 }
 0x6df   :  { %11032 = vmatpush3.bf16.msra.mxu0 %v11645_v55  ;;  %v11660_v55 = vld [vmem:[%s9544_s1 + $0x18] sm:$0xff]  }
 0x6e0   :  { %11033 = vmatprep.subr.bf16.mxu0 %v11782_v52 }
 0x6e3   :  { %11034 = vmatpush3.bf16.msra.mxu0 %v11646_v2  ;;  %v11661_v2 = vld [vmem:[%s9544_s1 + $0x20] sm:$0xff]  }
 0x6e4   :  { %11035 = vmatprep.subr.bf16.mxu0 %v11782_v52 }
 0x6e7   :  { %11036 = vmatpush3.bf16.msra.mxu0 %v11647_v24  ;;  %v11662_v24 = vld [vmem:[%s9544_s1 + $0x28] sm:$0xff]  }
 0x6e8   :  { %11037 = vmatprep.subr.bf16.mxu0 %v11782_v52 }
 0x6eb   :  { %11038 = vmatpush3.bf16.msra.mxu0 %v11648_v41  ;;  %v11663_v41 = vld [vmem:[%s9544_s1 + $0x30] sm:$0xff]  }
 0x6ec   :  { %11063 = vmatprep.subr.bf16.mxu0 %v11782_v52 }
 0x7a1   :  { %v8888_v23 = vpop.f32.mrb[124].mxu0 }
 0x7a2   :  { %v8889_v22 = vadd.f32 %v10192_v9, %v8888_v23  ;;  %v11001_v8 = vpop.f32.mrb[125].mxu0  ;;  %v10211_v9 = vld [vmem:[%s9537_s11] ss:$0 sm:$0xff] }
 0x7a3   :  { %v8891_v19 = vpop.f32.mrb[126].mxu0 }
 0x7a4   :  { %v8894_v60 = vmax.f32 %v8889_v22, 0.0  ;;  %v11002_v29 = vpop.f32.mrb[127].mxu0 }
 0x7a6   :  { %8897 = vadd.xlane.f32.xlu0 %v8894_v60  ;;  %v8901_v62 = vmul.f32 %v8894_v60, %v8894_v60 }
 0x7a8   :  { %8902 = vadd.xlane.f32.xlu1 %v8901_v62 }
 0x833   :  { %v8898_v18 = vpop.xlane.xlu0 %8897 }
 0x834   :  { %v8900_v0 = vmul.f32 0.0078125, %v8898_v18  ;;  %v11656_v18 = vld [vmem:[%s9540_s15 + $0x38] sm:$0xff]  }
 0x835   :  { %v8903_v42 = vpop.xlane.xlu1 %8902 }
 0x836   :  { %v8905_v1 = vmul.f32 %v8900_v0, %v8900_v0  ;;  %v8904_v21 = vmul.f32 0.0078125, %v8903_v42  ;;  %v8908_v30 = vsub.f32 %v8894_v60, %v8900_v0 }
 0x838   :  { %v8906_v25 = vsub.f32 %v8904_v21, %v8905_v1 }
 0x83a   :  { %v8907_v48 = vmax.f32 %v8906_v25, 0.0 }
 0x83c   :  { %v8909_v36 = vadd.f32 1e-12, %v8907_v48 }
 0x83e   :  { %11669 = vrsqrt.f32 %v8909_v36 }
 0x848   :  { %v11670_v27 = vpop.eup %11669 }
 0x849   :  { %v8911_v11 = vmul.f32 %v11670_v27, %v8908_v30 }
 0x84b   :  { %v8918_v57 = vmul.f32 %v10198_v4, %v8911_v11  ;;  %v10220_v11 = vld [vmem:[%s9538_s19] ss:$0 sm:$0xff] }
 0x84d   :  { %v8925_v58 = vadd.f32 %v10199_v61, %v8918_v57  ;;  %v10221_v57 = vld [vmem:[%s9539_s23] ss:$0 sm:$0xff] }
 0x84f   :  { %v8926_v14 = vpack.c.bf16 %v8925_v58, %v8925_v58 }
 0x851   :  { %11020 = vmatmul.mubr.bf16.vlgmr.msra.gmra.mrb[132].mxu1 %v8926_v14 }
 0x852   :  { %11059 = vmatprep.mubr.msk.bf16.mxu1 %vm11784_vm2, %v11782_v52  ;;  %11044 = vmatpush3.bf16.msra.mxu1 %v11649_v33  ;;  %v64_v33 = vstv %s9549_s17 }
 0x853   :  { %11045 = vmatprep.subr.bf16.mxu1 %v11782_v52  ;;  %65 = vst [vmem:[#allocation2] sm:$0x1] %v64_v33 }
 0x856   :  { %11046 = vmatpush3.bf16.msra.mxu1 %v11650_v53 }
 0x857   :  { %11047 = vmatprep.subr.bf16.mxu1 %v11782_v52 }
 0x85a   :  { %11048 = vmatpush3.bf16.msra.mxu1 %v11651_v44 }
 0x85b   :  { %11049 = vmatprep.subr.bf16.mxu1 %v11782_v52 }
 0x85e   :  { %11050 = vmatpush3.bf16.msra.mxu1 %v11652_v13 }
 0x85f   :  { %11051 = vmatprep.subr.bf16.mxu1 %v11782_v52 }
 0x862   :  { %11052 = vmatpush3.bf16.msra.mxu1 %v11653_v7 }
 0x863   :  { %11053 = vmatprep.subr.bf16.mxu1 %v11782_v52 }
 0x866   :  { %11054 = vmatpush3.bf16.msra.mxu1 %v11654_v20 }
 0x867   :  { %11055 = vmatprep.subr.bf16.mxu1 %v11782_v52 }
 0x86a   :  { %11056 = vmatpush3.bf16.msra.mxu1 %v11655_v46 }
 0x86b   :  { %11057 = vmatprep.subr.bf16.mxu1 %v11782_v52 }
 0x86e   :  { %11058 = vmatpush3.bf16.msra.mxu1 %v11656_v18 }
 0x924   :  { %v9032_v31 = vpop.f32.mrb[132].mxu1 }
 0x925   :  { %v9033_v40 = vadd.f32 %v10200_v54, %v9032_v31  ;;  %v11021_v12 = vpop.f32.mrb[133].mxu1  ;;  %v10222_v31 = vld [vmem:[%s9541_s27] ss:$0 sm:$0xff] }
 0x926   :  { %v9035_v15 = vpop.f32.mrb[134].mxu1 }
 0x927   :  { %v9038_v56 = vmax.f32 %v9033_v40, 0.0  ;;  %v11022_v35 = vpop.f32.mrb[135].mxu1 }
 0x929   :  { %9041 = vadd.xlane.f32.xlu1 %v9038_v56  ;;  %v9044_v6 = vmul.f32 %v9038_v56, %v9038_v56 }
 0x92d   :  { %9045 = vadd.xlane.f32.xlu1 %v9044_v6 }
 0x9b6   :  { %v9042_v50 = vpop.xlane.xlu1 %9041 }
 0x9b7   :  { %v9043_v43 = vmul.f32 0.0078125, %v9042_v50  ;;  %v11664_v50 = vld [vmem:[%s9544_s1 + $0x38] sm:$0xff]  }
 0x9b9   :  { %v9048_v39 = vmul.f32 %v9043_v43, %v9043_v43  ;;  %v9051_v5 = vsub.f32 %v9038_v56, %v9043_v43 }
 0x9ba   :  { %v9046_v17 = vpop.xlane.xlu1 %9045 }
 0x9bb   :  { %v9047_v10 = vmul.f32 0.0078125, %v9046_v17 }
 0x9bd   :  { %v9049_v63 = vsub.f32 %v9047_v10, %v9048_v39 }
 0x9bf   :  { %v9050_v45 = vmax.f32 %v9049_v63, 0.0 }
 0x9c1   :  { %v9052_v32 = vadd.f32 1e-12, %v9050_v45 }
 0x9c3   :  { %11671 = vrsqrt.f32 %v9052_v32 }
 0x9cd   :  { %v11672_v34 = vpop.eup %11671 }
 0x9ce   :  { %v9054_v28 = vmul.f32 %v11672_v34, %v9051_v5 }
 0x9d0   :  { %v9061_v59 = vmul.f32 %v10209_v37, %v9054_v28  ;;  %v10231_v37 = vld [vmem:[%s9542_s5] ss:$0 sm:$0xff] }
 0x9d2   :  { %v9068_v51 = vadd.f32 %v10210_v16, %v9061_v59  ;;  %v10232_v16 = vld [vmem:[%s9543_s9] ss:$0 sm:$0xff] }
 0x9d4   :  { %v9069_v38 = vpack.c.bf16 %v9068_v51, %v9068_v51 }
 0x9d6   :  { %11040 = vmatmul.mubr.bf16.vlgmr.msra.gmra.mrb[128].mxu0 %v9069_v38 }
 0x9d7   :  { %11079 = vmatprep.mubr.msk.bf16.mxu0 %vm11784_vm2, %v11782_v52  ;;  %11064 = vmatpush3.bf16.msra.mxu0 %v11657_v47 }
 0x9d8   :  { %11065 = vmatprep.subr.bf16.mxu0 %v11782_v52 }
 0x9db   :  { %11066 = vmatpush3.bf16.msra.mxu0 %v11658_v26 }
 0x9dc   :  { %11067 = vmatprep.subr.bf16.mxu0 %v11782_v52 }
 0x9df   :  { %11068 = vmatpush3.bf16.msra.mxu0 %v11659_v49 }
 0x9e0   :  { %11069 = vmatprep.subr.bf16.mxu0 %v11782_v52 }
 0x9e3   :  { %11070 = vmatpush3.bf16.msra.mxu0 %v11660_v55 }
 0x9e4   :  { %11071 = vmatprep.subr.bf16.mxu0 %v11782_v52 }
 0x9e7   :  { %11072 = vmatpush3.bf16.msra.mxu0 %v11661_v2 }
 0x9e8   :  { %11073 = vmatprep.subr.bf16.mxu0 %v11782_v52 }
 0x9eb   :  { %11074 = vmatpush3.bf16.msra.mxu0 %v11662_v24 }
 0x9ec   :  { %11075 = vmatprep.subr.bf16.mxu0 %v11782_v52 }
 0x9ef   :  { %11076 = vmatpush3.bf16.msra.mxu0 %v11663_v41 }
 0x9f0   :  { %11077 = vmatprep.subr.bf16.mxu0 %v11782_v52 }
 0x9f3   :  { %11078 = vmatpush3.bf16.msra.mxu0 %v11664_v50 }
 0xaa9   :  { %v9175_v23 = vpop.f32.mrb[128].mxu0 }
 0xaaa   :  { %v9176_v22 = vadd.f32 %v10211_v9, %v9175_v23  ;;  %v11041_v8 = vpop.f32.mrb[129].mxu0  ;;  %v10233_v9 = vld [vmem:[%s9545_s13] ss:$0 sm:$0xff] }
 0xaab   :  { %v9178_v19 = vpop.f32.mrb[130].mxu0 }
 0xaac   :  { %v9181_v60 = vmax.f32 %v9176_v22, 0.0  ;;  %v11042_v29 = vpop.f32.mrb[131].mxu0 }
 0xaae   :  { %9184 = vadd.xlane.f32.xlu1 %v9181_v60  ;;  %v9187_v62 = vmul.f32 %v9181_v60, %v9181_v60 }
 0xab2   :  { %9188 = vadd.xlane.f32.xlu1 %v9187_v62 }
 0xb3b   :  { %v9185_v0 = vpop.xlane.xlu1 %9184 }
 0xb3c   :  { %v9186_v42 = vmul.f32 0.0078125, %v9185_v0 }
 0xb3e   :  { %v9191_v21 = vmul.f32 %v9186_v42, %v9186_v42  ;;  %v9194_v27 = vsub.f32 %v9181_v60, %v9186_v42 }
 0xb3f   :  { %v9189_v1 = vpop.xlane.xlu1 %9188 }
 0xb40   :  { %v9190_v25 = vmul.f32 0.0078125, %v9189_v1 }
 0xb42   :  { %v9192_v48 = vsub.f32 %v9190_v25, %v9191_v21  ;;  %v10242_v21 = vld [vmem:[%s9546_s21] ss:$0 sm:$0xff] }
 0xb44   :  { %v9193_v36 = vmax.f32 %v9192_v48, 0.0  ;;  %v10243_v48 = vld [vmem:[%s9547_s25] ss:$0 sm:$0xff] }
 0xb46   :  { %v9195_v30 = vadd.f32 1e-12, %v9193_v36 }
 0xb48   :  { %11673 = vrsqrt.f32 %v9195_v30  ;;  %v10244_v30 = vld [vmem:[%s9548_s29] ss:$0 sm:$0xff] }
 0xb52   :  { %v11674_v4 = vpop.eup %11673 }
 0xb53   :  { %v9197_v61 = vmul.f32 %v11674_v4, %v9194_v27 }
 0xb55   :  { %v9204_v58 = vmul.f32 %v10220_v11, %v9197_v61  ;;  %v10245_v11 = vld [vmem:[#allocation2] ss:$0 sm:$0xff] }
 0xb57   :  { %v9211_v14 = vadd.f32 %v10221_v57, %v9204_v58 }
 0xb59   :  { %v9212_v54 = vpack.c.bf16 %v9211_v14, %v9211_v14 }
 0xb5b   :  { %11060 = vmatmul.mubr.bf16.vlgmr.msra.gmra.mrb[136].mxu1 %v9212_v54 }
 0xc2e   :  { %v9318_v40 = vpop.f32.mrb[136].mxu1 }
 0xc2f   :  { %v9319_v12 = vadd.f32 %v10222_v31, %v9318_v40  ;;  %v11061_v15 = vpop.f32.mrb[137].mxu1 }
 0xc30   :  { %v9321_v56 = vpop.f32.mrb[138].mxu1 }
 0xc31   :  { %v9324_v35 = vmax.f32 %v9319_v12, 0.0  ;;  %v11062_v6 = vpop.f32.mrb[139].mxu1 }
 0xc33   :  { %9327 = vadd.xlane.f32.xlu1 %v9324_v35  ;;  %v9330_v3 = vmul.f32 %v9324_v35, %v9324_v35 }
 0xc37   :  { %9331 = vadd.xlane.f32.xlu1 %v9330_v3 }
 0xcc0   :  { %v9328_v43 = vpop.xlane.xlu1 %9327 }
 0xcc1   :  { %v9329_v17 = vmul.f32 0.0078125, %v9328_v43 }
 0xcc3   :  { %v9334_v10 = vmul.f32 %v9329_v17, %v9329_v17  ;;  %v9337_v52 = vsub.f32 %v9324_v35, %v9329_v17 }
 0xcc4   :  { %v9332_v39 = vpop.xlane.xlu1 %9331 }
 0xcc5   :  { %v9333_v63 = vmul.f32 0.0078125, %v9332_v39 }
 0xcc7   :  { %v9335_v45 = vsub.f32 %v9333_v63, %v9334_v10 }
 0xcc9   :  { %v9336_v32 = vmax.f32 %v9335_v45, 0.0 }
 0xccb   :  { %v9338_v5 = vadd.f32 1e-12, %v9336_v32 }
 0xccd   :  { %11675 = vrsqrt.f32 %v9338_v5 }
 0xcd7   :  { %v11676_v34 = vpop.eup %11675 }
 0xcd8   :  { %v9340_v28 = vmul.f32 %v11676_v34, %v9337_v52 }
 0xcda   :  { %v9347_v59 = vmul.f32 %v10231_v37, %v9340_v28 }
 0xcdc   :  { %v9354_v51 = vadd.f32 %v10232_v16, %v9347_v59 }
 0xcde   :  { %v9355_v38 = vpack.c.bf16 %v9354_v51, %v9354_v51 }
 0xce0   :  { %11080 = vmatmul.mubr.bf16.vlgmr.msra.gmra.mrb[132].mxu0 %v9355_v38 }
 0xdb3   :  { %v9461_v23 = vpop.f32.mrb[132].mxu0 }
 0xdb4   :  { %v9462_v22 = vadd.f32 %v10233_v9, %v9461_v23  ;;  %v11081_v8 = vpop.f32.mrb[133].mxu0 }
 0xdb5   :  { %v9464_v19 = vpop.f32.mrb[134].mxu0 }
 0xdb6   :  { %v9467_v60 = vmax.f32 %v9462_v22, 0.0  ;;  %v11082_v29 = vpop.f32.mrb[135].mxu0 }
 0xdb8   :  { %9470 = vadd.xlane.f32.xlu0 %v9467_v60  ;;  %v9473_v62 = vmul.f32 %v9467_v60, %v9467_v60 }
 0xdba   :  { %9474 = vadd.xlane.f32.xlu1 %v9473_v62 }
 0xe45   :  { %v9471_v53 = vpop.xlane.xlu0 %9470 }
 0xe46   :  { %v9472_v44 = vmul.f32 0.0078125, %v9471_v53 }
 0xe47   :  { %v9475_v13 = vpop.xlane.xlu1 %9474 }
 0xe48   :  { %v9477_v7 = vmul.f32 %v9472_v44, %v9472_v44  ;;  %v9476_v20 = vmul.f32 0.0078125, %v9475_v13  ;;  %v9480_v42 = vsub.f32 %v9467_v60, %v9472_v44 }
 0xe4a   :  { %v9478_v46 = vsub.f32 %v9476_v20, %v9477_v7 }
 0xe4c   :  { %v9479_v18 = vmax.f32 %v9478_v46, 0.0 }
 0xe4e   :  { %v9481_v0 = vadd.f32 1e-12, %v9479_v18 }
 0xe50   :  { %11677 = vrsqrt.f32 %v9481_v0 }
 0xe5a   :  { %v11678_v1 = vpop.eup %11677 }
 0xe5b   :  { %v9483_v25 = vmul.f32 %v11678_v1, %v9480_v42 }
 0xe5d   :  { %v9490_v36 = vmul.f32 %v10242_v21, %v9483_v25 }
 0xe5f   :  { %v9497_v27 = vadd.f32 %v10243_v48, %v9490_v36 }
 0xe61   :  { %v9505_v4 = vmul.f32 %v10244_v30, %v9497_v27 }
 0xe63   :  { %9506 = vadd.xlane.f32.xlu0 %v9505_v4 }
 0xef0   :  { %v9507_v61 = vpop.xlane.xlu0 %9506 }
 0xef1   :  { %v9515_v57 = vadd.f32 %v10245_v11, %v9507_v61 }
 0xef3   :  { %9517 = vst.msk [vmem:[%s9550_s3] sm:$0xff] %vm9516_vm4, %v9515_v57 }

</bundles_post_ra>
